<compile_context>
chip_gen: v5e
topology: v5e:2x2
jax: 0.10.0
libtpu: 0.0.40
codegen_flags: <defaults>
</compile_context>

<pallas_src>
import functools

import jax
import jax.numpy as jnp
from jax import lax
from jax.experimental import pallas as pl
from jax.experimental.pallas import tpu as pltpu


# ---------------------------------------------------------------------------
# helpers
# ---------------------------------------------------------------------------

def _round_up(n, m):
    return ((n + m - 1) // m) * m


def _pick_tile(n, target, unit):
    """Largest tile <= target (halving) that divides n; fall back to n."""
    t = min(target, n)
    while t > unit and n % t != 0:
        t //= 2
    return t if (n % t == 0) else n


def _pad_lanes(x, c_pad):
    c = x.shape[-1]
    if c == c_pad:
        return x
    pads = [(0, 0)] * (x.ndim - 1) + [(0, c_pad - c)]
    return jnp.pad(x, pads)


# ---------------------------------------------------------------------------
# kernel bodies
# ---------------------------------------------------------------------------

def _matmul_stats_kernel(p_ref, w_ref, y_ref, sum_ref, sq_ref):
    """Pass A: y = patches @ W (bf16 operands, f32 accum) + BN partial stats."""

    @pl.when((pl.program_id(0) == 0) & (pl.program_id(1) == 0))
    def _init():
        sum_ref[...] = jnp.zeros_like(sum_ref)
        sq_ref[...] = jnp.zeros_like(sq_ref)

    y = jnp.dot(p_ref[0], w_ref[0], preferred_element_type=jnp.float32)
    y_ref[0] = y
    sum_ref[...] += jnp.sum(y, axis=0, keepdims=True)
    sq_ref[...] += jnp.sum(y * y, axis=0, keepdims=True)


def _scale_act_kernel(y_ref, scale_ref, shift_ref, o_ref, *, act):
    """Pass B: o = act(y * scale + shift) with BN folded into scale/shift."""
    y = y_ref[0] * scale_ref[...] + shift_ref[...]
    if act == "relu":
        y = jnp.maximum(y, 0.0)
    o_ref[0] = y.astype(o_ref.dtype)


def _matmul_bias_kernel(x_ref, w_ref, b_ref, o_ref):
    y = jnp.dot(x_ref[...], w_ref[...], preferred_element_type=jnp.float32)
    o_ref[...] = (y + b_ref[...]).astype(o_ref.dtype)


def _matmul_tanh_kernel(p_ref, w_ref, o_ref):
    y = jnp.dot(p_ref[...], w_ref[...], preferred_element_type=jnp.float32)
    o_ref[...] = jnp.tanh(y).astype(o_ref.dtype)


# ---------------------------------------------------------------------------
# pallas_call wrappers
# ---------------------------------------------------------------------------

def _matmul_stats(patches, weights, *, tm):
    g, m, k = patches.shape
    c_pad = weights.shape[2]
    n_mt = m // tm
    flops = 2 * g * m * k * c_pad
    bytes_accessed = (patches.size * 2 + weights.size * 2
                      + g * m * c_pad * 4 + 2 * c_pad * 4)
    return pl.pallas_call(
        _matmul_stats_kernel,
        out_shape=(jax.ShapeDtypeStruct((g, m, c_pad), jnp.float32),
                   jax.ShapeDtypeStruct((1, c_pad), jnp.float32),
                   jax.ShapeDtypeStruct((1, c_pad), jnp.float32)),
        grid_spec=pltpu.PrefetchScalarGridSpec(
            num_scalar_prefetch=0,
            grid=(g, n_mt),
            in_specs=[
                pl.BlockSpec((1, tm, k), lambda gi, mi: (gi, mi, 0)),
                pl.BlockSpec((1, k, c_pad), lambda gi, mi: (gi, 0, 0)),
            ],
            out_specs=(
                pl.BlockSpec((1, tm, c_pad), lambda gi, mi: (gi, mi, 0)),
                pl.BlockSpec((1, c_pad), lambda gi, mi: (0, 0)),
                pl.BlockSpec((1, c_pad), lambda gi, mi: (0, 0)),
            )),
        # Both axes 'arbitrary': the stats outputs are resident accumulators
        # shared across the whole grid (a parallel split would race on them).
        compiler_params=pltpu.CompilerParams(
            dimension_semantics=("arbitrary", "arbitrary")),
        cost_estimate=pl.CostEstimate(flops=flops, transcendentals=0,
                                      bytes_accessed=bytes_accessed),
    )(patches, weights)


def _scale_act(y_pre, scale, shift, *, tm, act, out_dtype):
    g, m, c_pad = y_pre.shape
    n_mt = m // tm
    return pl.pallas_call(
        functools.partial(_scale_act_kernel, act=act),
        out_shape=jax.ShapeDtypeStruct((g, m, c_pad), out_dtype),
        grid_spec=pltpu.PrefetchScalarGridSpec(
            num_scalar_prefetch=0,
            grid=(g, n_mt),
            in_specs=[
                pl.BlockSpec((1, tm, c_pad), lambda gi, mi: (gi, mi, 0)),
                pl.BlockSpec((1, c_pad), lambda gi, mi: (0, 0)),
                pl.BlockSpec((1, c_pad), lambda gi, mi: (0, 0)),
            ],
            out_specs=pl.BlockSpec((1, tm, c_pad), lambda gi, mi: (gi, mi, 0))),
        compiler_params=pltpu.CompilerParams(
            dimension_semantics=("parallel", "parallel")),
    )(y_pre, scale, shift)


def _fc_matmul(x, w, b, *, tf):
    n, k = x.shape
    f = w.shape[1]
    n_ft = f // tf
    return pl.pallas_call(
        _matmul_bias_kernel,
        out_shape=jax.ShapeDtypeStruct((n, f), jnp.float32),
        grid_spec=pltpu.PrefetchScalarGridSpec(
            num_scalar_prefetch=0,
            grid=(n_ft,),
            in_specs=[
                pl.BlockSpec((n, k), lambda j: (0, 0)),
                pl.BlockSpec((k, tf), lambda j: (0, j)),
                pl.BlockSpec((1, tf), lambda j: (0, j)),
            ],
            out_specs=pl.BlockSpec((n, tf), lambda j: (0, j))),
        compiler_params=pltpu.CompilerParams(
            dimension_semantics=("parallel",)),
    )(x, w, b)


def _matmul_tanh(patches, w, *, tm):
    m, k = patches.shape
    c_pad = w.shape[1]
    n_mt = m // tm
    return pl.pallas_call(
        _matmul_tanh_kernel,
        out_shape=jax.ShapeDtypeStruct((m, c_pad), jnp.float32),
        grid_spec=pltpu.PrefetchScalarGridSpec(
            num_scalar_prefetch=0,
            grid=(n_mt,),
            in_specs=[
                pl.BlockSpec((tm, k), lambda i: (i, 0)),
                pl.BlockSpec((k, c_pad), lambda i: (0, 0)),
            ],
            out_specs=pl.BlockSpec((tm, c_pad), lambda i: (i, 0))),
        compiler_params=pltpu.CompilerParams(
            dimension_semantics=("parallel",)),
        cost_estimate=pl.CostEstimate(flops=2 * m * k * c_pad,
                                      transcendentals=m * c_pad,
                                      bytes_accessed=patches.size * 2
                                      + w.size * 2 + m * c_pad * 4),
    )(patches, w)


# ---------------------------------------------------------------------------
# ConvTranspose2d(k=4, s=2, p=1) sub-pixel decomposition
#   output pixel (2i+a, 2j+b) only uses a 2x2 window of the (zero-padded)
#   input; row-phase a uses padded rows (i+a, i+a+1) with kernel taps _TAPS[a]
#   (same for columns).
# ---------------------------------------------------------------------------

_TAPS = ((3, 1), (2, 0))


def _convt_phase_patches(x_nhwc, dtype):
    """(N,H,W,C) -> (4, N*H*W, 4*C); K flatten order (u, v, ci)."""
    n, h, w, c = x_nhwc.shape
    xp = jnp.pad(x_nhwc, ((0, 0), (1, 1), (1, 1), (0, 0)))
    views = [xp[:, u:u + h + 1, v:v + w + 1, :]
             for u in range(2) for v in range(2)]
    base = jnp.stack(views, axis=3)                      # (N, H+1, W+1, 4, C)
    phases = []
    for a in range(2):
        for b in range(2):
            pab = base[:, a:a + h, b:b + w]              # (N, H, W, 4, C)
            phases.append(pab.reshape(n * h * w, 4 * c))
    return jnp.stack(phases, axis=0).astype(dtype)       # (4, M, 4*C)


def _convt_phase_weights(wt, c_pad, dtype):
    """PyTorch ConvT weight (C_in, C_out, 4, 4) -> (4, 4*C_in, c_pad)."""
    c_in, c_out = wt.shape[0], wt.shape[1]
    mats = []
    for a in range(2):
        wa = jnp.take(wt, jnp.array(_TAPS[a]), axis=2)           # (Ci,Co,2,4)
        for b in range(2):
            wab = jnp.take(wa, jnp.array(_TAPS[b]), axis=3)      # (Ci,Co,2,2)
            wab = jnp.transpose(wab, (2, 3, 0, 1))               # (u,v,Ci,Co)
            mats.append(wab.reshape(4 * c_in, c_out))
    w = jnp.stack(mats, axis=0)                                  # (4, 4Ci, Co)
    return _pad_lanes(w, c_pad).astype(dtype)


def _conv3x3_patches(x_nhwc, dtype):
    n, h, w, c = x_nhwc.shape
    xp = jnp.pad(x_nhwc, ((0, 0), (1, 1), (1, 1), (0, 0)))
    views = [xp[:, u:u + h, v:v + w, :] for u in range(3) for v in range(3)]
    return jnp.stack(views, axis=3).reshape(n * h * w, 9 * c).astype(dtype)


# ---------------------------------------------------------------------------
# model blocks
# ---------------------------------------------------------------------------

def generator_block(x_nhwc, wt, gamma, beta, *, eps=1e-5):
    """ConvT(k4,s2,p1,bias=False) + BatchNorm2d(batch stats) + ReLU (NHWC)."""
    n, h, w, _ = x_nhwc.shape
    c_out = wt.shape[1]
    c_pad = _round_up(c_out, 128)
    m = n * h * w
    tm = _pick_tile(m, 512, 8)

    patches = _convt_phase_patches(x_nhwc, jnp.bfloat16)       # (4, M, 4*Ci)
    weights = _convt_phase_weights(wt, c_pad, jnp.bfloat16)    # (4, 4*Ci, Cp)

    # Pass A: conv-as-matmul + per-channel sum / sum-of-squares.
    y_pre, ysum, ysq = _matmul_stats(patches, weights, tm=tm)

    # Fold BatchNorm (stats over all 4*M = N*2H*2W positions) into one
    # per-channel scale/shift; tiny (1, Cp) math done in plain JAX.
    count = jnp.float32(4 * m)
    mean = ysum / count
    var = jnp.maximum(ysq / count - mean * mean, 0.0)
    inv = lax.rsqrt(var + eps)
    scale = _pad_lanes(gamma, c_pad).reshape(1, c_pad) * inv
    shift = _pad_lanes(beta, c_pad).reshape(1, c_pad) - mean * scale

    # Pass B: normalize + ReLU, emit bf16 for the next layer's matmul.
    y = _scale_act(y_pre, scale, shift, tm=tm, act="relu",
                   out_dtype=jnp.bfloat16)                     # (4, M, Cp)

    # Interleave the 4 phases back onto the 2x-upsampled NHWC grid.
    y = y[..., :c_out].reshape(2, 2, n, h, w, c_out)
    y = jnp.transpose(y, (2, 3, 0, 4, 1, 5)).reshape(n, 2 * h, 2 * w, c_out)
    return y


def generator128_forward(x, params, *, eps=1e-5):
    """Pallas forward of Generator128.  x: (N, latent, 1, 1) -> NCHW image."""
    n, latent = x.shape[0], x.shape[1]
    assert x.shape[2] == 1 and x.shape[3] == 1, "fc expects a 1x1 latent map"

    # fc: 1x1 conv == dense (N, latent) @ (latent, 8*8*C0) + bias.
    w_fc, b_fc = params["fc_w"], params["fc_b"]
    f = w_fc.shape[0]
    c0 = f // 64
    tf = _pick_tile(f, 2048, 128)
    y = _fc_matmul(x.reshape(n, latent).astype(jnp.bfloat16),
                   w_fc.reshape(f, latent).T.astype(jnp.bfloat16),
                   b_fc.reshape(1, f).astype(jnp.float32), tf=tf)   # (N, F)

    # view(-1, C0, 8, 8), then NHWC for the block pipeline.
    y = jnp.transpose(y.reshape(n, c0, 8, 8), (0, 2, 3, 1)).astype(jnp.bfloat16)

    for i in range(4):
        y = generator_block(y, params[f"block{i}_w"],
                            params[f"block{i}_gamma"],
                            params[f"block{i}_beta"], eps=eps)

    # Final Conv2d(k=3, p=1, bias=False) + Tanh.
    w_last = params["last_w"]                        # (C_out, C_in, 3, 3)
    c_out, c_in = w_last.shape[0], w_last.shape[1]
    c_pad = _round_up(c_out, 128)
    n_, h_, w_, _ = y.shape
    patches = _conv3x3_patches(y, jnp.bfloat16)      # (M, 9*C_in)
    wmat = jnp.transpose(w_last, (2, 3, 1, 0)).reshape(9 * c_in, c_out)
    wmat = _pad_lanes(wmat, c_pad).astype(jnp.bfloat16)
    m = patches.shape[0]
    tm = _pick_tile(m, 512, 8)
    out = _matmul_tanh(patches, wmat, tm=tm)         # (M, Cp) f32
    out = out[:, :c_out].reshape(n_, h_, w_, c_out)
    return jnp.transpose(out, (0, 3, 1, 2))          # NCHW to match PyTorch


# ---------------------------------------------------------------------------
# pure-JAX reference (mirrors the PyTorch module; conv/matmul operands cast to
# bf16 with f32 accumulation to match the kernel's intentional dtype policy)
# ---------------------------------------------------------------------------

def _reference_forward(x, params, *, eps=1e-5, operand_dtype=jnp.bfloat16):
    n, latent = x.shape[0], x.shape[1]
    w_fc, b_fc = params["fc_w"], params["fc_b"]
    f = w_fc.shape[0]
    c0 = f // 64
    y = jnp.dot(x.reshape(n, latent).astype(operand_dtype),
                w_fc.reshape(f, latent).T.astype(operand_dtype),
                preferred_element_type=jnp.float32) + b_fc
    y = y.reshape(n, c0, 8, 8)
    for i in range(4):
        wt = params[f"block{i}_w"]                   # (Ci, Co, 4, 4)
        w_eq = jnp.transpose(wt, (1, 0, 2, 3))[:, :, ::-1, ::-1]
        y = lax.conv_general_dilated(
            y.astype(operand_dtype), w_eq.astype(operand_dtype),
            window_strides=(1, 1), padding=((2, 2), (2, 2)),
            lhs_dilation=(2, 2), dimension_numbers=("NCHW", "OIHW", "NCHW"),
            preferred_element_type=jnp.float32)
        mean = jnp.mean(y, axis=(0, 2, 3), keepdims=True)
        var = jnp.mean((y - mean) ** 2, axis=(0, 2, 3), keepdims=True)
        g = params[f"block{i}_gamma"].reshape(1, -1, 1, 1)
        b = params[f"block{i}_beta"].reshape(1, -1, 1, 1)
        y = (y - mean) * lax.rsqrt(var + eps) * g + b
        y = jnp.maximum(y, 0.0)
    y = lax.conv_general_dilated(
        y.astype(operand_dtype), params["last_w"].astype(operand_dtype),
        window_strides=(1, 1), padding=((1, 1), (1, 1)),
        dimension_numbers=("NCHW", "OIHW", "NCHW"),
        preferred_element_type=jnp.float32)
    return jnp.tanh(y)


# ---------------------------------------------------------------------------
# demo / self-test
# ---------------------------------------------------------------------------

if __name__ == "__main__":
    key = jax.random.PRNGKey(0)
    keys = jax.random.split(key, 8)

    # Scaled-down Generator128 (same architecture, smaller widths so the demo
    # runs fast): latent 16, channel stack 64->32->16->8->4, RGB output.
    # The real module uses latent 128 and 1024->512->256->128->64.
    latent = 16
    chans = (64, 32, 16, 8, 4)
    out_ch = 3
    batch = 2

    params = {}
    f = 8 * 8 * chans[0]
    bfc = 1.0 / (latent ** 0.5)
    params["fc_w"] = jax.random.uniform(keys[0], (f, latent, 1, 1),
                                        minval=-bfc, maxval=bfc,
                                        dtype=jnp.float32)
    params["fc_b"] = jax.random.uniform(keys[1], (f,), minval=-bfc,
                                        maxval=bfc, dtype=jnp.float32)
    for i in range(4):
        c_in, c_out = chans[i], chans[i + 1]
        bd = 1.0 / ((c_out * 4 * 4) ** 0.5)
        params[f"block{i}_w"] = jax.random.uniform(
            keys[2 + i], (c_in, c_out, 4, 4), minval=-bd, maxval=bd,
            dtype=jnp.float32)
        params[f"block{i}_gamma"] = jnp.ones((c_out,), jnp.float32)
        params[f"block{i}_beta"] = jnp.zeros((c_out,), jnp.float32)
    bd = 1.0 / ((chans[4] * 3 * 3) ** 0.5)
    params["last_w"] = jax.random.uniform(keys[6], (out_ch, chans[4], 3, 3),
                                          minval=-bd, maxval=bd,
                                          dtype=jnp.float32)

    x = jax.random.normal(keys[7], (batch, latent, 1, 1), dtype=jnp.float32)

    out = jax.block_until_ready(jax.jit(generator128_forward)(x, params))
    ref = jax.block_until_ready(jax.jit(_reference_forward)(x, params))

    assert out.shape == (batch, out_ch, 128, 128), out.shape
    err = float(jnp.max(jnp.abs(out - ref)))
    assert err < 1e-2, f"max |out - ref| = {err}"
    print("KERNEL_OK")
</pallas_src>

<mosaic_0001>
module attributes {stable_mosaic.version = 11 : i64} {
  func.func @_matmul_bias_kernel(%arg0: i32, %arg1: memref<2x16xbf16, #tpu.memory_space<vmem>>, %arg2: memref<16x2048xbf16, #tpu.memory_space<vmem>>, %arg3: memref<1x2048xf32, #tpu.memory_space<vmem>>, %arg4: memref<2x2048xf32, #tpu.memory_space<vmem>>) attributes {dimension_semantics = [#tpu.dimension_semantics<parallel>], iteration_bounds = array<i64: 2>, scalar_prefetch = 0 : i64, scratch_operands = 0 : i64, tpu.core_type = #tpu.core_type<tc>, window_params = [{pipeline_mode = #tpu.pipeline_mode<synchronous>, transform_indices = @transform_0, window_bounds = array<i64: 2, 16>}, {transform_indices = @transform_1, window_bounds = array<i64: 16, 2048>}, {transform_indices = @transform_2, window_bounds = array<i64: 1, 2048>}, {transform_indices = @transform_3, window_bounds = array<i64: 2, 2048>}]} {
    %c0 = arith.constant 0 : index
    %c0_0 = arith.constant 0 : index
    %0 = vector.load %arg1[%c0, %c0_0] : memref<2x16xbf16, #tpu.memory_space<vmem>>, vector<2x16xbf16>
    %c0_1 = arith.constant 0 : index
    %c0_2 = arith.constant 0 : index
    %1 = vector.load %arg2[%c0_1, %c0_2] : memref<16x2048xbf16, #tpu.memory_space<vmem>>, vector<16x2048xbf16>
    %cst = arith.constant dense<0.000000e+00> : vector<2x2048xf32>
    %2 = tpu.matmul %0, %1, %cst {dimension_numbers = #tpu.dot_dimension_numbers<[1], [0], [0], [1], [0, 0, 1, 1], [], []>} : vector<2x16xbf16>, vector<16x2048xbf16>, vector<2x2048xf32> -> vector<2x2048xf32>
    %c0_3 = arith.constant 0 : index
    %c0_4 = arith.constant 0 : index
    %3 = vector.load %arg3[%c0_3, %c0_4] : memref<1x2048xf32, #tpu.memory_space<vmem>>, vector<1x2048xf32>
    %4 = vector.broadcast %3 : vector<1x2048xf32> to vector<2x2048xf32>
    %5 = arith.addf %2, %4 : vector<2x2048xf32>
    %c0_5 = arith.constant 0 : index
    %c0_6 = arith.constant 0 : index
    %6 = vector.load %arg4[%c0_5, %c0_6] : memref<2x2048xf32, #tpu.memory_space<vmem>>, vector<2x2048xf32>
    tpu.vector_store %arg4[%c0_5, %c0_6], %5 {strides = array<i32>} : memref<2x2048xf32, #tpu.memory_space<vmem>>, vector<2x2048xf32>,
    return
  }
  func.func @transform_0(%arg0: i32) -> (i32, i32) {
    %c0_i32 = arith.constant 0 : i32
    %c0_i32_0 = arith.constant 0 : i32
    %c0_i32_1 = arith.constant 0 : i32
    return %c0_i32, %c0_i32_0 : i32, i32
  }
  func.func @transform_1(%arg0: i32) -> (i32, i32) {
    %c0_i32 = arith.constant 0 : i32
    %c0_i32_0 = arith.constant 0 : i32
    return %c0_i32, %arg0 : i32, i32
  }
  func.func @transform_2(%arg0: i32) -> (i32, i32) {
    %c0_i32 = arith.constant 0 : i32
    %c0_i32_0 = arith.constant 0 : i32
    return %c0_i32, %arg0 : i32, i32
  }
  func.func @transform_3(%arg0: i32) -> (i32, i32) {
    %c0_i32 = arith.constant 0 : i32
    %c0_i32_0 = arith.constant 0 : i32
    return %c0_i32, %arg0 : i32, i32
  }
}

module attributes {stable_mosaic.version = 11 : i64} {
  func.func @_matmul_stats_kernel(%arg0: i32, %arg1: i32, %arg2: memref<1x128x256xbf16, #tpu.memory_space<vmem>>, %arg3: memref<1x256x128xbf16, #tpu.memory_space<vmem>>, %arg4: memref<1x128x128xf32, #tpu.memory_space<vmem>>, %arg5: memref<1x128xf32, #tpu.memory_space<vmem>>, %arg6: memref<1x128xf32, #tpu.memory_space<vmem>>) attributes {dimension_semantics = [#tpu.dimension_semantics<arbitrary>, #tpu.dimension_semantics<arbitrary>], iteration_bounds = array<i64: 4, 1>, scalar_prefetch = 0 : i64, scratch_operands = 0 : i64, tpu.core_type = #tpu.core_type<tc>, window_params = [{transform_indices = @transform_0, window_bounds = array<i64: 1, 128, 256>}, {transform_indices = @transform_1, window_bounds = array<i64: 1, 256, 128>}, {transform_indices = @transform_2, window_bounds = array<i64: 1, 128, 128>}, {pipeline_mode = #tpu.pipeline_mode<synchronous>, transform_indices = @transform_3, window_bounds = array<i64: 1, 128>}, {pipeline_mode = #tpu.pipeline_mode<synchronous>, transform_indices = @transform_4, window_bounds = array<i64: 1, 128>}]} {
    %c0_i32 = arith.constant 0 : i32
    %0 = arith.cmpi eq, %arg0, %c0_i32 : i32
    %c0_i32_0 = arith.constant 0 : i32
    %1 = arith.cmpi eq, %arg1, %c0_i32_0 : i32
    %2 = arith.andi %0, %1 : i1
    %3 = arith.extui %2 : i1 to i32
    %c0_i32_1 = arith.constant 0 : i32
    %4 = arith.cmpi ne, %3, %c0_i32_1 : i32
    scf.if %4 {
      %cst_20 = arith.constant 0.000000e+00 : f32
      %24 = vector.broadcast %cst_20 : f32 to vector<1x128xf32>
      %c0_21 = arith.constant 0 : index
      %c0_22 = arith.constant 0 : index
      %25 = vector.load %arg5[%c0_21, %c0_22] : memref<1x128xf32, #tpu.memory_space<vmem>>, vector<1x128xf32>
      tpu.vector_store %arg5[%c0_21, %c0_22], %24 {strides = array<i32>} : memref<1x128xf32, #tpu.memory_space<vmem>>, vector<1x128xf32>,
      %cst_23 = arith.constant 0.000000e+00 : f32
      %26 = vector.broadcast %cst_23 : f32 to vector<1x128xf32>
      %c0_24 = arith.constant 0 : index
      %c0_25 = arith.constant 0 : index
      %27 = vector.load %arg6[%c0_24, %c0_25] : memref<1x128xf32, #tpu.memory_space<vmem>>, vector<1x128xf32>
      tpu.vector_store %arg6[%c0_24, %c0_25], %26 {strides = array<i32>} : memref<1x128xf32, #tpu.memory_space<vmem>>, vector<1x128xf32>,
    } else {
    }
    %c0 = arith.constant 0 : index
    %c0_2 = arith.constant 0 : index
    %c0_3 = arith.constant 0 : index
    %5 = vector.load %arg2[%c0, %c0_2, %c0_3] : memref<1x128x256xbf16, #tpu.memory_space<vmem>>, vector<1x128x256xbf16>
    %6 = vector.shape_cast %5 : vector<1x128x256xbf16> to vector<128x256xbf16>
    %c0_4 = arith.constant 0 : index
    %c0_5 = arith.constant 0 : index
    %c0_6 = arith.constant 0 : index
    %7 = vector.load %arg3[%c0_4, %c0_5, %c0_6] : memref<1x256x128xbf16, #tpu.memory_space<vmem>>, vector<1x256x128xbf16>
    %8 = vector.shape_cast %7 : vector<1x256x128xbf16> to vector<256x128xbf16>
    %cst = arith.constant dense<0.000000e+00> : vector<128x128xf32>
    %9 = tpu.matmul %6, %8, %cst {dimension_numbers = #tpu.dot_dimension_numbers<[1], [0], [0], [1], [0, 0, 1, 1], [], []>} : vector<128x256xbf16>, vector<256x128xbf16>, vector<128x128xf32> -> vector<128x128xf32>
    %c0_7 = arith.constant 0 : index
    %c0_8 = arith.constant 0 : index
    %c0_9 = arith.constant 0 : index
    %10 = vector.load %arg4[%c0_7, %c0_8, %c0_9] : memref<1x128x128xf32, #tpu.memory_space<vmem>>, vector<1x128x128xf32>
    %11 = vector.shape_cast %10 : vector<1x128x128xf32> to vector<128x128xf32>
    %12 = vector.shape_cast %9 : vector<128x128xf32> to vector<1x128x128xf32>
    tpu.vector_store %arg4[%c0_7, %c0_8, %c0_9], %12 {strides = array<i32>} : memref<1x128x128xf32, #tpu.memory_space<vmem>>, vector<1x128x128xf32>,
    %c0_10 = arith.constant 0 : index
    %c0_11 = arith.constant 0 : index
    %13 = vector.load %arg5[%c0_10, %c0_11] : memref<1x128xf32, #tpu.memory_space<vmem>>, vector<1x128xf32>
    %cst_12 = arith.constant dense<0.000000e+00> : vector<128xf32>
    %14 = vector.multi_reduction <add>, %9, %cst_12 [0] : vector<128x128xf32> to vector<128xf32>
    %15 = vector.shape_cast %14 : vector<128xf32> to vector<1x128xf32>
    %16 = arith.addf %13, %15 : vector<1x128xf32>
    %c0_13 = arith.constant 0 : index
    %c0_14 = arith.constant 0 : index
    %17 = vector.load %arg5[%c0_13, %c0_14] : memref<1x128xf32, #tpu.memory_space<vmem>>, vector<1x128xf32>
    tpu.vector_store %arg5[%c0_13, %c0_14], %16 {strides = array<i32>} : memref<1x128xf32, #tpu.memory_space<vmem>>, vector<1x128xf32>,
    %c0_15 = arith.constant 0 : index
    %c0_16 = arith.constant 0 : index
    %18 = vector.load %arg6[%c0_15, %c0_16] : memref<1x128xf32, #tpu.memory_space<vmem>>, vector<1x128xf32>
    %19 = arith.mulf %9, %9 : vector<128x128xf32>
    %cst_17 = arith.constant dense<0.000000e+00> : vector<128xf32>
    %20 = vector.multi_reduction <add>, %19, %cst_17 [0] : vector<128x128xf32> to vector<128xf32>
    %21 = vector.shape_cast %20 : vector<128xf32> to vector<1x128xf32>
    %22 = arith.addf %18, %21 : vector<1x128xf32>
    %c0_18 = arith.constant 0 : index
    %c0_19 = arith.constant 0 : index
    %23 = vector.load %arg6[%c0_18, %c0_19] : memref<1x128xf32, #tpu.memory_space<vmem>>, vector<1x128xf32>
    tpu.vector_store %arg6[%c0_18, %c0_19], %22 {strides = array<i32>} : memref<1x128xf32, #tpu.memory_space<vmem>>, vector<1x128xf32>,
    return
  }
  func.func @transform_0(%arg0: i32, %arg1: i32) -> (i32, i32, i32) {
    %c0_i32 = arith.constant 0 : i32
    %c0_i32_0 = arith.constant 0 : i32
    return %arg0, %arg1, %c0_i32 : i32, i32, i32
  }
  func.func @transform_1(%arg0: i32, %arg1: i32) -> (i32, i32, i32) {
    %c0_i32 = arith.constant 0 : i32
    %c0_i32_0 = arith.constant 0 : i32
    %c0_i32_1 = arith.constant 0 : i32
    return %arg0, %c0_i32, %c0_i32_0 : i32, i32, i32
  }
  func.func @transform_2(%arg0: i32, %arg1: i32) -> (i32, i32, i32) {
    %c0_i32 = arith.constant 0 : i32
    %c0_i32_0 = arith.constant 0 : i32
    return %arg0, %arg1, %c0_i32 : i32, i32, i32
  }
  func.func @transform_3(%arg0: i32, %arg1: i32) -> (i32, i32) {
    %c0_i32 = arith.constant 0 : i32
    %c0_i32_0 = arith.constant 0 : i32
    %c0_i32_1 = arith.constant 0 : i32
    return %c0_i32, %c0_i32_0 : i32, i32
  }
  func.func @transform_4(%arg0: i32, %arg1: i32) -> (i32, i32) {
    %c0_i32 = arith.constant 0 : i32
    %c0_i32_0 = arith.constant 0 : i32
    %c0_i32_1 = arith.constant 0 : i32
    return %c0_i32, %c0_i32_0 : i32, i32
  }
}

module attributes {stable_mosaic.version = 11 : i64} {
  func.func @_scale_act_kernel(%arg0: i32, %arg1: i32, %arg2: memref<1x128x128xf32, #tpu.memory_space<vmem>>, %arg3: memref<1x128xf32, #tpu.memory_space<vmem>>, %arg4: memref<1x128xf32, #tpu.memory_space<vmem>>, %arg5: memref<1x128x128xbf16, #tpu.memory_space<vmem>>) attributes {dimension_semantics = [#tpu.dimension_semantics<parallel>, #tpu.dimension_semantics<parallel>], iteration_bounds = array<i64: 4, 1>, scalar_prefetch = 0 : i64, scratch_operands = 0 : i64, tpu.core_type = #tpu.core_type<tc>, window_params = [{transform_indices = @transform_0, window_bounds = array<i64: 1, 128, 128>}, {pipeline_mode = #tpu.pipeline_mode<synchronous>, transform_indices = @transform_1, window_bounds = array<i64: 1, 128>}, {pipeline_mode = #tpu.pipeline_mode<synchronous>, transform_indices = @transform_2, window_bounds = array<i64: 1, 128>}, {transform_indices = @transform_3, window_bounds = array<i64: 1, 128, 128>}]} {
    %c0 = arith.constant 0 : index
    %c0_0 = arith.constant 0 : index
    %c0_1 = arith.constant 0 : index
    %0 = vector.load %arg2[%c0, %c0_0, %c0_1] : memref<1x128x128xf32, #tpu.memory_space<vmem>>, vector<1x128x128xf32>
    %1 = vector.shape_cast %0 : vector<1x128x128xf32> to vector<128x128xf32>
    %c0_2 = arith.constant 0 : index
    %c0_3 = arith.constant 0 : index
    %2 = vector.load %arg3[%c0_2, %c0_3] : memref<1x128xf32, #tpu.memory_space<vmem>>, vector<1x128xf32>
    %3 = vector.broadcast %2 : vector<1x128xf32> to vector<128x128xf32>
    %4 = arith.mulf %1, %3 : vector<128x128xf32>
    %c0_4 = arith.constant 0 : index
    %c0_5 = arith.constant 0 : index
    %5 = vector.load %arg4[%c0_4, %c0_5] : memref<1x128xf32, #tpu.memory_space<vmem>>, vector<1x128xf32>
    %6 = vector.broadcast %5 : vector<1x128xf32> to vector<128x128xf32>
    %7 = arith.addf %4, %6 : vector<128x128xf32>
    %cst = arith.constant 0.000000e+00 : f32
    %8 = vector.broadcast %cst : f32 to vector<128x128xf32>
    %9 = arith.maximumf %7, %8 : vector<128x128xf32>
    %10 = arith.truncf %9 : vector<128x128xf32> to vector<128x128xbf16>
    %c0_6 = arith.constant 0 : index
    %c0_7 = arith.constant 0 : index
    %c0_8 = arith.constant 0 : index
    %11 = vector.load %arg5[%c0_6, %c0_7, %c0_8] : memref<1x128x128xbf16, #tpu.memory_space<vmem>>, vector<1x128x128xbf16>
    %12 = vector.shape_cast %11 : vector<1x128x128xbf16> to vector<128x128xbf16>
    %13 = vector.shape_cast %10 : vector<128x128xbf16> to vector<1x128x128xbf16>
    tpu.vector_store %arg5[%c0_6, %c0_7, %c0_8], %13 {strides = array<i32>} : memref<1x128x128xbf16, #tpu.memory_space<vmem>>, vector<1x128x128xbf16>,
    return
  }
  func.func @transform_0(%arg0: i32, %arg1: i32) -> (i32, i32, i32) {
    %c0_i32 = arith.constant 0 : i32
    %c0_i32_0 = arith.constant 0 : i32
    return %arg0, %arg1, %c0_i32 : i32, i32, i32
  }
  func.func @transform_1(%arg0: i32, %arg1: i32) -> (i32, i32) {
    %c0_i32 = arith.constant 0 : i32
    %c0_i32_0 = arith.constant 0 : i32
    %c0_i32_1 = arith.constant 0 : i32
    return %c0_i32, %c0_i32_0 : i32, i32
  }
  func.func @transform_2(%arg0: i32, %arg1: i32) -> (i32, i32) {
    %c0_i32 = arith.constant 0 : i32
    %c0_i32_0 = arith.constant 0 : i32
    %c0_i32_1 = arith.constant 0 : i32
    return %c0_i32, %c0_i32_0 : i32, i32
  }
  func.func @transform_3(%arg0: i32, %arg1: i32) -> (i32, i32, i32) {
    %c0_i32 = arith.constant 0 : i32
    %c0_i32_0 = arith.constant 0 : i32
    return %arg0, %arg1, %c0_i32 : i32, i32, i32
  }
}

module attributes {stable_mosaic.version = 11 : i64} {
  func.func @_matmul_stats_kernel(%arg0: i32, %arg1: i32, %arg2: memref<1x512x128xbf16, #tpu.memory_space<vmem>>, %arg3: memref<1x128x128xbf16, #tpu.memory_space<vmem>>, %arg4: memref<1x512x128xf32, #tpu.memory_space<vmem>>, %arg5: memref<1x128xf32, #tpu.memory_space<vmem>>, %arg6: memref<1x128xf32, #tpu.memory_space<vmem>>) attributes {dimension_semantics = [#tpu.dimension_semantics<arbitrary>, #tpu.dimension_semantics<arbitrary>], iteration_bounds = array<i64: 4, 1>, scalar_prefetch = 0 : i64, scratch_operands = 0 : i64, tpu.core_type = #tpu.core_type<tc>, window_params = [{transform_indices = @transform_0, window_bounds = array<i64: 1, 512, 128>}, {transform_indices = @transform_1, window_bounds = array<i64: 1, 128, 128>}, {transform_indices = @transform_2, window_bounds = array<i64: 1, 512, 128>}, {pipeline_mode = #tpu.pipeline_mode<synchronous>, transform_indices = @transform_3, window_bounds = array<i64: 1, 128>}, {pipeline_mode = #tpu.pipeline_mode<synchronous>, transform_indices = @transform_4, window_bounds = array<i64: 1, 128>}]} {
    %c0_i32 = arith.constant 0 : i32
    %0 = arith.cmpi eq, %arg0, %c0_i32 : i32
    %c0_i32_0 = arith.constant 0 : i32
    %1 = arith.cmpi eq, %arg1, %c0_i32_0 : i32
    %2 = arith.andi %0, %1 : i1
    %3 = arith.extui %2 : i1 to i32
    %c0_i32_1 = arith.constant 0 : i32
    %4 = arith.cmpi ne, %3, %c0_i32_1 : i32
    scf.if %4 {
      %cst_20 = arith.constant 0.000000e+00 : f32
      %24 = vector.broadcast %cst_20 : f32 to vector<1x128xf32>
      %c0_21 = arith.constant 0 : index
      %c0_22 = arith.constant 0 : index
      %25 = vector.load %arg5[%c0_21, %c0_22] : memref<1x128xf32, #tpu.memory_space<vmem>>, vector<1x128xf32>
      tpu.vector_store %arg5[%c0_21, %c0_22], %24 {strides = array<i32>} : memref<1x128xf32, #tpu.memory_space<vmem>>, vector<1x128xf32>,
      %cst_23 = arith.constant 0.000000e+00 : f32
      %26 = vector.broadcast %cst_23 : f32 to vector<1x128xf32>
      %c0_24 = arith.constant 0 : index
      %c0_25 = arith.constant 0 : index
      %27 = vector.load %arg6[%c0_24, %c0_25] : memref<1x128xf32, #tpu.memory_space<vmem>>, vector<1x128xf32>
      tpu.vector_store %arg6[%c0_24, %c0_25], %26 {strides = array<i32>} : memref<1x128xf32, #tpu.memory_space<vmem>>, vector<1x128xf32>,
    } else {
    }
    %c0 = arith.constant 0 : index
    %c0_2 = arith.constant 0 : index
    %c0_3 = arith.constant 0 : index
    %5 = vector.load %arg2[%c0, %c0_2, %c0_3] : memref<1x512x128xbf16, #tpu.memory_space<vmem>>, vector<1x512x128xbf16>
    %6 = vector.shape_cast %5 : vector<1x512x128xbf16> to vector<512x128xbf16>
    %c0_4 = arith.constant 0 : index
    %c0_5 = arith.constant 0 : index
    %c0_6 = arith.constant 0 : index
    %7 = vector.load %arg3[%c0_4, %c0_5, %c0_6] : memref<1x128x128xbf16, #tpu.memory_space<vmem>>, vector<1x128x128xbf16>
    %8 = vector.shape_cast %7 : vector<1x128x128xbf16> to vector<128x128xbf16>
    %cst = arith.constant dense<0.000000e+00> : vector<512x128xf32>
    %9 = tpu.matmul %6, %8, %cst {dimension_numbers = #tpu.dot_dimension_numbers<[1], [0], [0], [1], [0, 0, 1, 1], [], []>} : vector<512x128xbf16>, vector<128x128xbf16>, vector<512x128xf32> -> vector<512x128xf32>
    %c0_7 = arith.constant 0 : index
    %c0_8 = arith.constant 0 : index
    %c0_9 = arith.constant 0 : index
    %10 = vector.load %arg4[%c0_7, %c0_8, %c0_9] : memref<1x512x128xf32, #tpu.memory_space<vmem>>, vector<1x512x128xf32>
    %11 = vector.shape_cast %10 : vector<1x512x128xf32> to vector<512x128xf32>
    %12 = vector.shape_cast %9 : vector<512x128xf32> to vector<1x512x128xf32>
    tpu.vector_store %arg4[%c0_7, %c0_8, %c0_9], %12 {strides = array<i32>} : memref<1x512x128xf32, #tpu.memory_space<vmem>>, vector<1x512x128xf32>,
    %c0_10 = arith.constant 0 : index
    %c0_11 = arith.constant 0 : index
    %13 = vector.load %arg5[%c0_10, %c0_11] : memref<1x128xf32, #tpu.memory_space<vmem>>, vector<1x128xf32>
    %cst_12 = arith.constant dense<0.000000e+00> : vector<128xf32>
    %14 = vector.multi_reduction <add>, %9, %cst_12 [0] : vector<512x128xf32> to vector<128xf32>
    %15 = vector.shape_cast %14 : vector<128xf32> to vector<1x128xf32>
    %16 = arith.addf %13, %15 : vector<1x128xf32>
    %c0_13 = arith.constant 0 : index
    %c0_14 = arith.constant 0 : index
    %17 = vector.load %arg5[%c0_13, %c0_14] : memref<1x128xf32, #tpu.memory_space<vmem>>, vector<1x128xf32>
    tpu.vector_store %arg5[%c0_13, %c0_14], %16 {strides = array<i32>} : memref<1x128xf32, #tpu.memory_space<vmem>>, vector<1x128xf32>,
    %c0_15 = arith.constant 0 : index
    %c0_16 = arith.constant 0 : index
    %18 = vector.load %arg6[%c0_15, %c0_16] : memref<1x128xf32, #tpu.memory_space<vmem>>, vector<1x128xf32>
    %19 = arith.mulf %9, %9 : vector<512x128xf32>
    %cst_17 = arith.constant dense<0.000000e+00> : vector<128xf32>
    %20 = vector.multi_reduction <add>, %19, %cst_17 [0] : vector<512x128xf32> to vector<128xf32>
    %21 = vector.shape_cast %20 : vector<128xf32> to vector<1x128xf32>
    %22 = arith.addf %18, %21 : vector<1x128xf32>
    %c0_18 = arith.constant 0 : index
    %c0_19 = arith.constant 0 : index
    %23 = vector.load %arg6[%c0_18, %c0_19] : memref<1x128xf32, #tpu.memory_space<vmem>>, vector<1x128xf32>
    tpu.vector_store %arg6[%c0_18, %c0_19], %22 {strides = array<i32>} : memref<1x128xf32, #tpu.memory_space<vmem>>, vector<1x128xf32>,
    return
  }
  func.func @transform_0(%arg0: i32, %arg1: i32) -> (i32, i32, i32) {
    %c0_i32 = arith.constant 0 : i32
    %c0_i32_0 = arith.constant 0 : i32
    return %arg0, %arg1, %c0_i32 : i32, i32, i32
  }
  func.func @transform_1(%arg0: i32, %arg1: i32) -> (i32, i32, i32) {
    %c0_i32 = arith.constant 0 : i32
    %c0_i32_0 = arith.constant 0 : i32
    %c0_i32_1 = arith.constant 0 : i32
    return %arg0, %c0_i32, %c0_i32_0 : i32, i32, i32
  }
  func.func @transform_2(%arg0: i32, %arg1: i32) -> (i32, i32, i32) {
    %c0_i32 = arith.constant 0 : i32
    %c0_i32_0 = arith.constant 0 : i32
    return %arg0, %arg1, %c0_i32 : i32, i32, i32
  }
  func.func @transform_3(%arg0: i32, %arg1: i32) -> (i32, i32) {
    %c0_i32 = arith.constant 0 : i32
    %c0_i32_0 = arith.constant 0 : i32
    %c0_i32_1 = arith.constant 0 : i32
    return %c0_i32, %c0_i32_0 : i32, i32
  }
  func.func @transform_4(%arg0: i32, %arg1: i32) -> (i32, i32) {
    %c0_i32 = arith.constant 0 : i32
    %c0_i32_0 = arith.constant 0 : i32
    %c0_i32_1 = arith.constant 0 : i32
    return %c0_i32, %c0_i32_0 : i32, i32
  }
}

module attributes {stable_mosaic.version = 11 : i64} {
  func.func @_scale_act_kernel(%arg0: i32, %arg1: i32, %arg2: memref<1x512x128xf32, #tpu.memory_space<vmem>>, %arg3: memref<1x128xf32, #tpu.memory_space<vmem>>, %arg4: memref<1x128xf32, #tpu.memory_space<vmem>>, %arg5: memref<1x512x128xbf16, #tpu.memory_space<vmem>>) attributes {dimension_semantics = [#tpu.dimension_semantics<parallel>, #tpu.dimension_semantics<parallel>], iteration_bounds = array<i64: 4, 1>, scalar_prefetch = 0 : i64, scratch_operands = 0 : i64, tpu.core_type = #tpu.core_type<tc>, window_params = [{transform_indices = @transform_0, window_bounds = array<i64: 1, 512, 128>}, {pipeline_mode = #tpu.pipeline_mode<synchronous>, transform_indices = @transform_1, window_bounds = array<i64: 1, 128>}, {pipeline_mode = #tpu.pipeline_mode<synchronous>, transform_indices = @transform_2, window_bounds = array<i64: 1, 128>}, {transform_indices = @transform_3, window_bounds = array<i64: 1, 512, 128>}]} {
    %c0 = arith.constant 0 : index
    %c0_0 = arith.constant 0 : index
    %c0_1 = arith.constant 0 : index
    %0 = vector.load %arg2[%c0, %c0_0, %c0_1] : memref<1x512x128xf32, #tpu.memory_space<vmem>>, vector<1x512x128xf32>
    %1 = vector.shape_cast %0 : vector<1x512x128xf32> to vector<512x128xf32>
    %c0_2 = arith.constant 0 : index
    %c0_3 = arith.constant 0 : index
    %2 = vector.load %arg3[%c0_2, %c0_3] : memref<1x128xf32, #tpu.memory_space<vmem>>, vector<1x128xf32>
    %3 = vector.broadcast %2 : vector<1x128xf32> to vector<512x128xf32>
    %4 = arith.mulf %1, %3 : vector<512x128xf32>
    %c0_4 = arith.constant 0 : index
    %c0_5 = arith.constant 0 : index
    %5 = vector.load %arg4[%c0_4, %c0_5] : memref<1x128xf32, #tpu.memory_space<vmem>>, vector<1x128xf32>
    %6 = vector.broadcast %5 : vector<1x128xf32> to vector<512x128xf32>
    %7 = arith.addf %4, %6 : vector<512x128xf32>
    %cst = arith.constant 0.000000e+00 : f32
    %8 = vector.broadcast %cst : f32 to vector<512x128xf32>
    %9 = arith.maximumf %7, %8 : vector<512x128xf32>
    %10 = arith.truncf %9 : vector<512x128xf32> to vector<512x128xbf16>
    %c0_6 = arith.constant 0 : index
    %c0_7 = arith.constant 0 : index
    %c0_8 = arith.constant 0 : index
    %11 = vector.load %arg5[%c0_6, %c0_7, %c0_8] : memref<1x512x128xbf16, #tpu.memory_space<vmem>>, vector<1x512x128xbf16>
    %12 = vector.shape_cast %11 : vector<1x512x128xbf16> to vector<512x128xbf16>
    %13 = vector.shape_cast %10 : vector<512x128xbf16> to vector<1x512x128xbf16>
    tpu.vector_store %arg5[%c0_6, %c0_7, %c0_8], %13 {strides = array<i32>} : memref<1x512x128xbf16, #tpu.memory_space<vmem>>, vector<1x512x128xbf16>,
    return
  }
  func.func @transform_0(%arg0: i32, %arg1: i32) -> (i32, i32, i32) {
    %c0_i32 = arith.constant 0 : i32
    %c0_i32_0 = arith.constant 0 : i32
    return %arg0, %arg1, %c0_i32 : i32, i32, i32
  }
  func.func @transform_1(%arg0: i32, %arg1: i32) -> (i32, i32) {
    %c0_i32 = arith.constant 0 : i32
    %c0_i32_0 = arith.constant 0 : i32
    %c0_i32_1 = arith.constant 0 : i32
    return %c0_i32, %c0_i32_0 : i32, i32
  }
  func.func @transform_2(%arg0: i32, %arg1: i32) -> (i32, i32) {
    %c0_i32 = arith.constant 0 : i32
    %c0_i32_0 = arith.constant 0 : i32
    %c0_i32_1 = arith.constant 0 : i32
    return %c0_i32, %c0_i32_0 : i32, i32
  }
  func.func @transform_3(%arg0: i32, %arg1: i32) -> (i32, i32, i32) {
    %c0_i32 = arith.constant 0 : i32
    %c0_i32_0 = arith.constant 0 : i32
    return %arg0, %arg1, %c0_i32 : i32, i32, i32
  }
}

module attributes {stable_mosaic.version = 11 : i64} {
  func.func @_matmul_stats_kernel(%arg0: i32, %arg1: i32, %arg2: memref<1x512x64xbf16, #tpu.memory_space<vmem>>, %arg3: memref<1x64x128xbf16, #tpu.memory_space<vmem>>, %arg4: memref<1x512x128xf32, #tpu.memory_space<vmem>>, %arg5: memref<1x128xf32, #tpu.memory_space<vmem>>, %arg6: memref<1x128xf32, #tpu.memory_space<vmem>>) attributes {dimension_semantics = [#tpu.dimension_semantics<arbitrary>, #tpu.dimension_semantics<arbitrary>], iteration_bounds = array<i64: 4, 4>, scalar_prefetch = 0 : i64, scratch_operands = 0 : i64, tpu.core_type = #tpu.core_type<tc>, window_params = [{transform_indices = @transform_0, window_bounds = array<i64: 1, 512, 64>}, {transform_indices = @transform_1, window_bounds = array<i64: 1, 64, 128>}, {transform_indices = @transform_2, window_bounds = array<i64: 1, 512, 128>}, {pipeline_mode = #tpu.pipeline_mode<synchronous>, transform_indices = @transform_3, window_bounds = array<i64: 1, 128>}, {pipeline_mode = #tpu.pipeline_mode<synchronous>, transform_indices = @transform_4, window_bounds = array<i64: 1, 128>}]} {
    %c0_i32 = arith.constant 0 : i32
    %0 = arith.cmpi eq, %arg0, %c0_i32 : i32
    %c0_i32_0 = arith.constant 0 : i32
    %1 = arith.cmpi eq, %arg1, %c0_i32_0 : i32
    %2 = arith.andi %0, %1 : i1
    %3 = arith.extui %2 : i1 to i32
    %c0_i32_1 = arith.constant 0 : i32
    %4 = arith.cmpi ne, %3, %c0_i32_1 : i32
    scf.if %4 {
      %cst_20 = arith.constant 0.000000e+00 : f32
      %24 = vector.broadcast %cst_20 : f32 to vector<1x128xf32>
      %c0_21 = arith.constant 0 : index
      %c0_22 = arith.constant 0 : index
      %25 = vector.load %arg5[%c0_21, %c0_22] : memref<1x128xf32, #tpu.memory_space<vmem>>, vector<1x128xf32>
      tpu.vector_store %arg5[%c0_21, %c0_22], %24 {strides = array<i32>} : memref<1x128xf32, #tpu.memory_space<vmem>>, vector<1x128xf32>,
      %cst_23 = arith.constant 0.000000e+00 : f32
      %26 = vector.broadcast %cst_23 : f32 to vector<1x128xf32>
      %c0_24 = arith.constant 0 : index
      %c0_25 = arith.constant 0 : index
      %27 = vector.load %arg6[%c0_24, %c0_25] : memref<1x128xf32, #tpu.memory_space<vmem>>, vector<1x128xf32>
      tpu.vector_store %arg6[%c0_24, %c0_25], %26 {strides = array<i32>} : memref<1x128xf32, #tpu.memory_space<vmem>>, vector<1x128xf32>,
    } else {
    }
    %c0 = arith.constant 0 : index
    %c0_2 = arith.constant 0 : index
    %c0_3 = arith.constant 0 : index
    %5 = vector.load %arg2[%c0, %c0_2, %c0_3] : memref<1x512x64xbf16, #tpu.memory_space<vmem>>, vector<1x512x64xbf16>
    %6 = vector.shape_cast %5 : vector<1x512x64xbf16> to vector<512x64xbf16>
    %c0_4 = arith.constant 0 : index
    %c0_5 = arith.constant 0 : index
    %c0_6 = arith.constant 0 : index
    %7 = vector.load %arg3[%c0_4, %c0_5, %c0_6] : memref<1x64x128xbf16, #tpu.memory_space<vmem>>, vector<1x64x128xbf16>
    %8 = vector.shape_cast %7 : vector<1x64x128xbf16> to vector<64x128xbf16>
    %cst = arith.constant dense<0.000000e+00> : vector<512x128xf32>
    %9 = tpu.matmul %6, %8, %cst {dimension_numbers = #tpu.dot_dimension_numbers<[1], [0], [0], [1], [0, 0, 1, 1], [], []>} : vector<512x64xbf16>, vector<64x128xbf16>, vector<512x128xf32> -> vector<512x128xf32>
    %c0_7 = arith.constant 0 : index
    %c0_8 = arith.constant 0 : index
    %c0_9 = arith.constant 0 : index
    %10 = vector.load %arg4[%c0_7, %c0_8, %c0_9] : memref<1x512x128xf32, #tpu.memory_space<vmem>>, vector<1x512x128xf32>
    %11 = vector.shape_cast %10 : vector<1x512x128xf32> to vector<512x128xf32>
    %12 = vector.shape_cast %9 : vector<512x128xf32> to vector<1x512x128xf32>
    tpu.vector_store %arg4[%c0_7, %c0_8, %c0_9], %12 {strides = array<i32>} : memref<1x512x128xf32, #tpu.memory_space<vmem>>, vector<1x512x128xf32>,
    %c0_10 = arith.constant 0 : index
    %c0_11 = arith.constant 0 : index
    %13 = vector.load %arg5[%c0_10, %c0_11] : memref<1x128xf32, #tpu.memory_space<vmem>>, vector<1x128xf32>
    %cst_12 = arith.constant dense<0.000000e+00> : vector<128xf32>
    %14 = vector.multi_reduction <add>, %9, %cst_12 [0] : vector<512x128xf32> to vector<128xf32>
    %15 = vector.shape_cast %14 : vector<128xf32> to vector<1x128xf32>
    %16 = arith.addf %13, %15 : vector<1x128xf32>
    %c0_13 = arith.constant 0 : index
    %c0_14 = arith.constant 0 : index
    %17 = vector.load %arg5[%c0_13, %c0_14] : memref<1x128xf32, #tpu.memory_space<vmem>>, vector<1x128xf32>
    tpu.vector_store %arg5[%c0_13, %c0_14], %16 {strides = array<i32>} : memref<1x128xf32, #tpu.memory_space<vmem>>, vector<1x128xf32>,
    %c0_15 = arith.constant 0 : index
    %c0_16 = arith.constant 0 : index
    %18 = vector.load %arg6[%c0_15, %c0_16] : memref<1x128xf32, #tpu.memory_space<vmem>>, vector<1x128xf32>
    %19 = arith.mulf %9, %9 : vector<512x128xf32>
    %cst_17 = arith.constant dense<0.000000e+00> : vector<128xf32>
    %20 = vector.multi_reduction <add>, %19, %cst_17 [0] : vector<512x128xf32> to vector<128xf32>
    %21 = vector.shape_cast %20 : vector<128xf32> to vector<1x128xf32>
    %22 = arith.addf %18, %21 : vector<1x128xf32>
    %c0_18 = arith.constant 0 : index
    %c0_19 = arith.constant 0 : index
    %23 = vector.load %arg6[%c0_18, %c0_19] : memref<1x128xf32, #tpu.memory_space<vmem>>, vector<1x128xf32>
    tpu.vector_store %arg6[%c0_18, %c0_19], %22 {strides = array<i32>} : memref<1x128xf32, #tpu.memory_space<vmem>>, vector<1x128xf32>,
    return
  }
  func.func @transform_0(%arg0: i32, %arg1: i32) -> (i32, i32, i32) {
    %c0_i32 = arith.constant 0 : i32
    %c0_i32_0 = arith.constant 0 : i32
    return %arg0, %arg1, %c0_i32 : i32, i32, i32
  }
  func.func @transform_1(%arg0: i32, %arg1: i32) -> (i32, i32, i32) {
    %c0_i32 = arith.constant 0 : i32
    %c0_i32_0 = arith.constant 0 : i32
    %c0_i32_1 = arith.constant 0 : i32
    return %arg0, %c0_i32, %c0_i32_0 : i32, i32, i32
  }
  func.func @transform_2(%arg0: i32, %arg1: i32) -> (i32, i32, i32) {
    %c0_i32 = arith.constant 0 : i32
    %c0_i32_0 = arith.constant 0 : i32
    return %arg0, %arg1, %c0_i32 : i32, i32, i32
  }
  func.func @transform_3(%arg0: i32, %arg1: i32) -> (i32, i32) {
    %c0_i32 = arith.constant 0 : i32
    %c0_i32_0 = arith.constant 0 : i32
    %c0_i32_1 = arith.constant 0 : i32
    return %c0_i32, %c0_i32_0 : i32, i32
  }
  func.func @transform_4(%arg0: i32, %arg1: i32) -> (i32, i32) {
    %c0_i32 = arith.constant 0 : i32
    %c0_i32_0 = arith.constant 0 : i32
    %c0_i32_1 = arith.constant 0 : i32
    return %c0_i32, %c0_i32_0 : i32, i32
  }
}

module attributes {stable_mosaic.version = 11 : i64} {
  func.func @_scale_act_kernel(%arg0: i32, %arg1: i32, %arg2: memref<1x512x128xf32, #tpu.memory_space<vmem>>, %arg3: memref<1x128xf32, #tpu.memory_space<vmem>>, %arg4: memref<1x128xf32, #tpu.memory_space<vmem>>, %arg5: memref<1x512x128xbf16, #tpu.memory_space<vmem>>) attributes {dimension_semantics = [#tpu.dimension_semantics<parallel>, #tpu.dimension_semantics<parallel>], iteration_bounds = array<i64: 4, 4>, scalar_prefetch = 0 : i64, scratch_operands = 0 : i64, tpu.core_type = #tpu.core_type<tc>, window_params = [{transform_indices = @transform_0, window_bounds = array<i64: 1, 512, 128>}, {pipeline_mode = #tpu.pipeline_mode<synchronous>, transform_indices = @transform_1, window_bounds = array<i64: 1, 128>}, {pipeline_mode = #tpu.pipeline_mode<synchronous>, transform_indices = @transform_2, window_bounds = array<i64: 1, 128>}, {transform_indices = @transform_3, window_bounds = array<i64: 1, 512, 128>}]} {
    %c0 = arith.constant 0 : index
    %c0_0 = arith.constant 0 : index
    %c0_1 = arith.constant 0 : index
    %0 = vector.load %arg2[%c0, %c0_0, %c0_1] : memref<1x512x128xf32, #tpu.memory_space<vmem>>, vector<1x512x128xf32>
    %1 = vector.shape_cast %0 : vector<1x512x128xf32> to vector<512x128xf32>
    %c0_2 = arith.constant 0 : index
    %c0_3 = arith.constant 0 : index
    %2 = vector.load %arg3[%c0_2, %c0_3] : memref<1x128xf32, #tpu.memory_space<vmem>>, vector<1x128xf32>
    %3 = vector.broadcast %2 : vector<1x128xf32> to vector<512x128xf32>
    %4 = arith.mulf %1, %3 : vector<512x128xf32>
    %c0_4 = arith.constant 0 : index
    %c0_5 = arith.constant 0 : index
    %5 = vector.load %arg4[%c0_4, %c0_5] : memref<1x128xf32, #tpu.memory_space<vmem>>, vector<1x128xf32>
    %6 = vector.broadcast %5 : vector<1x128xf32> to vector<512x128xf32>
    %7 = arith.addf %4, %6 : vector<512x128xf32>
    %cst = arith.constant 0.000000e+00 : f32
    %8 = vector.broadcast %cst : f32 to vector<512x128xf32>
    %9 = arith.maximumf %7, %8 : vector<512x128xf32>
    %10 = arith.truncf %9 : vector<512x128xf32> to vector<512x128xbf16>
    %c0_6 = arith.constant 0 : index
    %c0_7 = arith.constant 0 : index
    %c0_8 = arith.constant 0 : index
    %11 = vector.load %arg5[%c0_6, %c0_7, %c0_8] : memref<1x512x128xbf16, #tpu.memory_space<vmem>>, vector<1x512x128xbf16>
    %12 = vector.shape_cast %11 : vector<1x512x128xbf16> to vector<512x128xbf16>
    %13 = vector.shape_cast %10 : vector<512x128xbf16> to vector<1x512x128xbf16>
    tpu.vector_store %arg5[%c0_6, %c0_7, %c0_8], %13 {strides = array<i32>} : memref<1x512x128xbf16, #tpu.memory_space<vmem>>, vector<1x512x128xbf16>,
    return
  }
  func.func @transform_0(%arg0: i32, %arg1: i32) -> (i32, i32, i32) {
    %c0_i32 = arith.constant 0 : i32
    %c0_i32_0 = arith.constant 0 : i32
    return %arg0, %arg1, %c0_i32 : i32, i32, i32
  }
  func.func @transform_1(%arg0: i32, %arg1: i32) -> (i32, i32) {
    %c0_i32 = arith.constant 0 : i32
    %c0_i32_0 = arith.constant 0 : i32
    %c0_i32_1 = arith.constant 0 : i32
    return %c0_i32, %c0_i32_0 : i32, i32
  }
  func.func @transform_2(%arg0: i32, %arg1: i32) -> (i32, i32) {
    %c0_i32 = arith.constant 0 : i32
    %c0_i32_0 = arith.constant 0 : i32
    %c0_i32_1 = arith.constant 0 : i32
    return %c0_i32, %c0_i32_0 : i32, i32
  }
  func.func @transform_3(%arg0: i32, %arg1: i32) -> (i32, i32, i32) {
    %c0_i32 = arith.constant 0 : i32
    %c0_i32_0 = arith.constant 0 : i32
    return %arg0, %arg1, %c0_i32 : i32, i32, i32
  }
}

module attributes {stable_mosaic.version = 11 : i64} {
  func.func @_matmul_stats_kernel(%arg0: i32, %arg1: i32, %arg2: memref<1x512x32xbf16, #tpu.memory_space<vmem>>, %arg3: memref<1x32x128xbf16, #tpu.memory_space<vmem>>, %arg4: memref<1x512x128xf32, #tpu.memory_space<vmem>>, %arg5: memref<1x128xf32, #tpu.memory_space<vmem>>, %arg6: memref<1x128xf32, #tpu.memory_space<vmem>>) attributes {dimension_semantics = [#tpu.dimension_semantics<arbitrary>, #tpu.dimension_semantics<arbitrary>], iteration_bounds = array<i64: 4, 16>, scalar_prefetch = 0 : i64, scratch_operands = 0 : i64, tpu.core_type = #tpu.core_type<tc>, window_params = [{transform_indices = @transform_0, window_bounds = array<i64: 1, 512, 32>}, {transform_indices = @transform_1, window_bounds = array<i64: 1, 32, 128>}, {transform_indices = @transform_2, window_bounds = array<i64: 1, 512, 128>}, {pipeline_mode = #tpu.pipeline_mode<synchronous>, transform_indices = @transform_3, window_bounds = array<i64: 1, 128>}, {pipeline_mode = #tpu.pipeline_mode<synchronous>, transform_indices = @transform_4, window_bounds = array<i64: 1, 128>}]} {
    %c0_i32 = arith.constant 0 : i32
    %0 = arith.cmpi eq, %arg0, %c0_i32 : i32
    %c0_i32_0 = arith.constant 0 : i32
    %1 = arith.cmpi eq, %arg1, %c0_i32_0 : i32
    %2 = arith.andi %0, %1 : i1
    %3 = arith.extui %2 : i1 to i32
    %c0_i32_1 = arith.constant 0 : i32
    %4 = arith.cmpi ne, %3, %c0_i32_1 : i32
    scf.if %4 {
      %cst_20 = arith.constant 0.000000e+00 : f32
      %24 = vector.broadcast %cst_20 : f32 to vector<1x128xf32>
      %c0_21 = arith.constant 0 : index
      %c0_22 = arith.constant 0 : index
      %25 = vector.load %arg5[%c0_21, %c0_22] : memref<1x128xf32, #tpu.memory_space<vmem>>, vector<1x128xf32>
      tpu.vector_store %arg5[%c0_21, %c0_22], %24 {strides = array<i32>} : memref<1x128xf32, #tpu.memory_space<vmem>>, vector<1x128xf32>,
      %cst_23 = arith.constant 0.000000e+00 : f32
      %26 = vector.broadcast %cst_23 : f32 to vector<1x128xf32>
      %c0_24 = arith.constant 0 : index
      %c0_25 = arith.constant 0 : index
      %27 = vector.load %arg6[%c0_24, %c0_25] : memref<1x128xf32, #tpu.memory_space<vmem>>, vector<1x128xf32>
      tpu.vector_store %arg6[%c0_24, %c0_25], %26 {strides = array<i32>} : memref<1x128xf32, #tpu.memory_space<vmem>>, vector<1x128xf32>,
    } else {
    }
    %c0 = arith.constant 0 : index
    %c0_2 = arith.constant 0 : index
    %c0_3 = arith.constant 0 : index
    %5 = vector.load %arg2[%c0, %c0_2, %c0_3] : memref<1x512x32xbf16, #tpu.memory_space<vmem>>, vector<1x512x32xbf16>
    %6 = vector.shape_cast %5 : vector<1x512x32xbf16> to vector<512x32xbf16>
    %c0_4 = arith.constant 0 : index
    %c0_5 = arith.constant 0 : index
    %c0_6 = arith.constant 0 : index
    %7 = vector.load %arg3[%c0_4, %c0_5, %c0_6] : memref<1x32x128xbf16, #tpu.memory_space<vmem>>, vector<1x32x128xbf16>
    %8 = vector.shape_cast %7 : vector<1x32x128xbf16> to vector<32x128xbf16>
    %cst = arith.constant dense<0.000000e+00> : vector<512x128xf32>
    %9 = tpu.matmul %6, %8, %cst {dimension_numbers = #tpu.dot_dimension_numbers<[1], [0], [0], [1], [0, 0, 1, 1], [], []>} : vector<512x32xbf16>, vector<32x128xbf16>, vector<512x128xf32> -> vector<512x128xf32>
    %c0_7 = arith.constant 0 : index
    %c0_8 = arith.constant 0 : index
    %c0_9 = arith.constant 0 : index
    %10 = vector.load %arg4[%c0_7, %c0_8, %c0_9] : memref<1x512x128xf32, #tpu.memory_space<vmem>>, vector<1x512x128xf32>
    %11 = vector.shape_cast %10 : vector<1x512x128xf32> to vector<512x128xf32>
    %12 = vector.shape_cast %9 : vector<512x128xf32> to vector<1x512x128xf32>
    tpu.vector_store %arg4[%c0_7, %c0_8, %c0_9], %12 {strides = array<i32>} : memref<1x512x128xf32, #tpu.memory_space<vmem>>, vector<1x512x128xf32>,
    %c0_10 = arith.constant 0 : index
    %c0_11 = arith.constant 0 : index
    %13 = vector.load %arg5[%c0_10, %c0_11] : memref<1x128xf32, #tpu.memory_space<vmem>>, vector<1x128xf32>
    %cst_12 = arith.constant dense<0.000000e+00> : vector<128xf32>
    %14 = vector.multi_reduction <add>, %9, %cst_12 [0] : vector<512x128xf32> to vector<128xf32>
    %15 = vector.shape_cast %14 : vector<128xf32> to vector<1x128xf32>
    %16 = arith.addf %13, %15 : vector<1x128xf32>
    %c0_13 = arith.constant 0 : index
    %c0_14 = arith.constant 0 : index
    %17 = vector.load %arg5[%c0_13, %c0_14] : memref<1x128xf32, #tpu.memory_space<vmem>>, vector<1x128xf32>
    tpu.vector_store %arg5[%c0_13, %c0_14], %16 {strides = array<i32>} : memref<1x128xf32, #tpu.memory_space<vmem>>, vector<1x128xf32>,
    %c0_15 = arith.constant 0 : index
    %c0_16 = arith.constant 0 : index
    %18 = vector.load %arg6[%c0_15, %c0_16] : memref<1x128xf32, #tpu.memory_space<vmem>>, vector<1x128xf32>
    %19 = arith.mulf %9, %9 : vector<512x128xf32>
    %cst_17 = arith.constant dense<0.000000e+00> : vector<128xf32>
    %20 = vector.multi_reduction <add>, %19, %cst_17 [0] : vector<512x128xf32> to vector<128xf32>
    %21 = vector.shape_cast %20 : vector<128xf32> to vector<1x128xf32>
    %22 = arith.addf %18, %21 : vector<1x128xf32>
    %c0_18 = arith.constant 0 : index
    %c0_19 = arith.constant 0 : index
    %23 = vector.load %arg6[%c0_18, %c0_19] : memref<1x128xf32, #tpu.memory_space<vmem>>, vector<1x128xf32>
    tpu.vector_store %arg6[%c0_18, %c0_19], %22 {strides = array<i32>} : memref<1x128xf32, #tpu.memory_space<vmem>>, vector<1x128xf32>,
    return
  }
  func.func @transform_0(%arg0: i32, %arg1: i32) -> (i32, i32, i32) {
    %c0_i32 = arith.constant 0 : i32
    %c0_i32_0 = arith.constant 0 : i32
    return %arg0, %arg1, %c0_i32 : i32, i32, i32
  }
  func.func @transform_1(%arg0: i32, %arg1: i32) -> (i32, i32, i32) {
    %c0_i32 = arith.constant 0 : i32
    %c0_i32_0 = arith.constant 0 : i32
    %c0_i32_1 = arith.constant 0 : i32
    return %arg0, %c0_i32, %c0_i32_0 : i32, i32, i32
  }
  func.func @transform_2(%arg0: i32, %arg1: i32) -> (i32, i32, i32) {
    %c0_i32 = arith.constant 0 : i32
    %c0_i32_0 = arith.constant 0 : i32
    return %arg0, %arg1, %c0_i32 : i32, i32, i32
  }
  func.func @transform_3(%arg0: i32, %arg1: i32) -> (i32, i32) {
    %c0_i32 = arith.constant 0 : i32
    %c0_i32_0 = arith.constant 0 : i32
    %c0_i32_1 = arith.constant 0 : i32
    return %c0_i32, %c0_i32_0 : i32, i32
  }
  func.func @transform_4(%arg0: i32, %arg1: i32) -> (i32, i32) {
    %c0_i32 = arith.constant 0 : i32
    %c0_i32_0 = arith.constant 0 : i32
    %c0_i32_1 = arith.constant 0 : i32
    return %c0_i32, %c0_i32_0 : i32, i32
  }
}

module attributes {stable_mosaic.version = 11 : i64} {
  func.func @_scale_act_kernel(%arg0: i32, %arg1: i32, %arg2: memref<1x512x128xf32, #tpu.memory_space<vmem>>, %arg3: memref<1x128xf32, #tpu.memory_space<vmem>>, %arg4: memref<1x128xf32, #tpu.memory_space<vmem>>, %arg5: memref<1x512x128xbf16, #tpu.memory_space<vmem>>) attributes {dimension_semantics = [#tpu.dimension_semantics<parallel>, #tpu.dimension_semantics<parallel>], iteration_bounds = array<i64: 4, 16>, scalar_prefetch = 0 : i64, scratch_operands = 0 : i64, tpu.core_type = #tpu.core_type<tc>, window_params = [{transform_indices = @transform_0, window_bounds = array<i64: 1, 512, 128>}, {pipeline_mode = #tpu.pipeline_mode<synchronous>, transform_indices = @transform_1, window_bounds = array<i64: 1, 128>}, {pipeline_mode = #tpu.pipeline_mode<synchronous>, transform_indices = @transform_2, window_bounds = array<i64: 1, 128>}, {transform_indices = @transform_3, window_bounds = array<i64: 1, 512, 128>}]} {
    %c0 = arith.constant 0 : index
    %c0_0 = arith.constant 0 : index
    %c0_1 = arith.constant 0 : index
    %0 = vector.load %arg2[%c0, %c0_0, %c0_1] : memref<1x512x128xf32, #tpu.memory_space<vmem>>, vector<1x512x128xf32>
    %1 = vector.shape_cast %0 : vector<1x512x128xf32> to vector<512x128xf32>
    %c0_2 = arith.constant 0 : index
    %c0_3 = arith.constant 0 : index
    %2 = vector.load %arg3[%c0_2, %c0_3] : memref<1x128xf32, #tpu.memory_space<vmem>>, vector<1x128xf32>
    %3 = vector.broadcast %2 : vector<1x128xf32> to vector<512x128xf32>
    %4 = arith.mulf %1, %3 : vector<512x128xf32>
    %c0_4 = arith.constant 0 : index
    %c0_5 = arith.constant 0 : index
    %5 = vector.load %arg4[%c0_4, %c0_5] : memref<1x128xf32, #tpu.memory_space<vmem>>, vector<1x128xf32>
    %6 = vector.broadcast %5 : vector<1x128xf32> to vector<512x128xf32>
    %7 = arith.addf %4, %6 : vector<512x128xf32>
    %cst = arith.constant 0.000000e+00 : f32
    %8 = vector.broadcast %cst : f32 to vector<512x128xf32>
    %9 = arith.maximumf %7, %8 : vector<512x128xf32>
    %10 = arith.truncf %9 : vector<512x128xf32> to vector<512x128xbf16>
    %c0_6 = arith.constant 0 : index
    %c0_7 = arith.constant 0 : index
    %c0_8 = arith.constant 0 : index
    %11 = vector.load %arg5[%c0_6, %c0_7, %c0_8] : memref<1x512x128xbf16, #tpu.memory_space<vmem>>, vector<1x512x128xbf16>
    %12 = vector.shape_cast %11 : vector<1x512x128xbf16> to vector<512x128xbf16>
    %13 = vector.shape_cast %10 : vector<512x128xbf16> to vector<1x512x128xbf16>
    tpu.vector_store %arg5[%c0_6, %c0_7, %c0_8], %13 {strides = array<i32>} : memref<1x512x128xbf16, #tpu.memory_space<vmem>>, vector<1x512x128xbf16>,
    return
  }
  func.func @transform_0(%arg0: i32, %arg1: i32) -> (i32, i32, i32) {
    %c0_i32 = arith.constant 0 : i32
    %c0_i32_0 = arith.constant 0 : i32
    return %arg0, %arg1, %c0_i32 : i32, i32, i32
  }
  func.func @transform_1(%arg0: i32, %arg1: i32) -> (i32, i32) {
    %c0_i32 = arith.constant 0 : i32
    %c0_i32_0 = arith.constant 0 : i32
    %c0_i32_1 = arith.constant 0 : i32
    return %c0_i32, %c0_i32_0 : i32, i32
  }
  func.func @transform_2(%arg0: i32, %arg1: i32) -> (i32, i32) {
    %c0_i32 = arith.constant 0 : i32
    %c0_i32_0 = arith.constant 0 : i32
    %c0_i32_1 = arith.constant 0 : i32
    return %c0_i32, %c0_i32_0 : i32, i32
  }
  func.func @transform_3(%arg0: i32, %arg1: i32) -> (i32, i32, i32) {
    %c0_i32 = arith.constant 0 : i32
    %c0_i32_0 = arith.constant 0 : i32
    return %arg0, %arg1, %c0_i32 : i32, i32, i32
  }
}

module attributes {stable_mosaic.version = 11 : i64} {
  func.func @_matmul_tanh_kernel(%arg0: i32, %arg1: memref<512x36xbf16, #tpu.memory_space<vmem>>, %arg2: memref<36x128xbf16, #tpu.memory_space<vmem>>, %arg3: memref<512x128xf32, #tpu.memory_space<vmem>>) attributes {dimension_semantics = [#tpu.dimension_semantics<parallel>], iteration_bounds = array<i64: 64>, scalar_prefetch = 0 : i64, scratch_operands = 0 : i64, tpu.core_type = #tpu.core_type<tc>, window_params = [{transform_indices = @transform_0, window_bounds = array<i64: 512, 36>}, {pipeline_mode = #tpu.pipeline_mode<synchronous>, transform_indices = @transform_1, window_bounds = array<i64: 36, 128>}, {transform_indices = @transform_2, window_bounds = array<i64: 512, 128>}]} {
    %c0 = arith.constant 0 : index
    %c0_0 = arith.constant 0 : index
    %0 = vector.load %arg1[%c0, %c0_0] : memref<512x36xbf16, #tpu.memory_space<vmem>>, vector<512x36xbf16>
    %c0_1 = arith.constant 0 : index
    %c0_2 = arith.constant 0 : index
    %1 = vector.load %arg2[%c0_1, %c0_2] : memref<36x128xbf16, #tpu.memory_space<vmem>>, vector<36x128xbf16>
    %cst = arith.constant dense<0.000000e+00> : vector<512x128xf32>
    %2 = tpu.matmul %0, %1, %cst {dimension_numbers = #tpu.dot_dimension_numbers<[1], [0], [0], [1], [0, 0, 1, 1], [], []>} : vector<512x36xbf16>, vector<36x128xbf16>, vector<512x128xf32> -> vector<512x128xf32>
    %3 = math.tanh %2 : vector<512x128xf32>
    %c0_3 = arith.constant 0 : index
    %c0_4 = arith.constant 0 : index
    %4 = vector.load %arg3[%c0_3, %c0_4] : memref<512x128xf32, #tpu.memory_space<vmem>>, vector<512x128xf32>
    tpu.vector_store %arg3[%c0_3, %c0_4], %3 {strides = array<i32>} : memref<512x128xf32, #tpu.memory_space<vmem>>, vector<512x128xf32>,
    return
  }
  func.func @transform_0(%arg0: i32) -> (i32, i32) {
    %c0_i32 = arith.constant 0 : i32
    %c0_i32_0 = arith.constant 0 : i32
    return %arg0, %c0_i32 : i32, i32
  }
  func.func @transform_1(%arg0: i32) -> (i32, i32) {
    %c0_i32 = arith.constant 0 : i32
    %c0_i32_0 = arith.constant 0 : i32
    %c0_i32_1 = arith.constant 0 : i32
    return %c0_i32, %c0_i32_0 : i32, i32
  }
  func.func @transform_2(%arg0: i32) -> (i32, i32) {
    %c0_i32 = arith.constant 0 : i32
    %c0_i32_0 = arith.constant 0 : i32
    return %arg0, %c0_i32 : i32, i32
  }
}

</mosaic_0001>

<bundles_post_ra>
// kernel: generator128_forward.10
= control target key start
LH: loop header
LB: loop body
LE: loop exit
PB: predicated region body
PF: predicated region fallthrough
CT: control target
= control target key end

     0   :  { %s889_s12 = smov 0   ;;  %s891_s13 = smov 0   ;;  %s1055_s0 = inlined_call_operand.vmem [shape: bf16[2,16], index: 0, kind: input, shape index: {}]   ;;  %s1056_s1 = inlined_call_operand.vmem [shape: bf16[16,4096], index: 1, kind: input, shape index: {}]   ;;  %s1057_s2 = inlined_call_operand.vmem [shape: f32[1,4096], index: 2, kind: input, shape index: {}]   ;;  %s1058_s3 = inlined_call_operand.vmem [shape: f32[2,4096], index: 3, kind: output, shape index: {}]  }
   0x1   :  { %s893_s14 = smov 0  }
   0x2 LB: > { %s710_s15 = sadd.s32 4294967295, %s867_s14   ;;  %s906_s16 = sadd.s32 1, %s867_s14   ;;  %s867_s14 = sphi %s893_s14, %s1061_s14   ;;  %s863_s13 = sphi %s891_s13, %s1060_s13   ;;  %s859_s12 = sphi %s889_s12, %s1059_s12  }
   0x3   : > { %s38_s17 = ssub.s32 %s867_s14, %s906_s16  ;;  %s41_s18 = sadd.s32 1, %s863_s13 }
   0x4   : > { %p39_p0 = scmp.eq.s32.totalorder %s38_s17, 0  ;;  %p48_p1 = scmp.ne.s32.totalorder %s863_s13, %s859_s12 }
   0x5   : > { %p49_p2 = scmp.eq.s32.totalorder %s867_s14, 0  ;;  %p713_p4 = scmp.ge.s32.totalorder %s867_s14, 2 }
   0x6   : > { %s915_s19 = scalar_select %p39_p0, %s863_s13, %s41_s18  }
   0x7   : > { %p50_p3 = por %p49_p2, %p48_p1  ;;  %129 = sbr.rel (%p713_p4) target bundleno = 32 (0x20), region = 20 }
   0xc   : > { %132 = sbr.rel (!%p50_p3) target bundleno = 32 (0x20), region = 24  ;;  %s134_s20 = sand.u32 (%p50_p3), 1, %s863_s13  }
   0xd   : > { %s804_s21 = sshll.u32 (%p50_p3), %s867_s14, 6  ;;  %s714_s22 = sshll.u32 (%p50_p3), %s134_s20, 7 }
   0xe   : > { %s923_s25 = scalar_lea.vmem (%p50_p3), %s1056_s1, %s804_s21  ;;  %s136_s26 = scalar_lea.vmem (%p50_p3), [#allocation2], %s714_s22 }
   0xf   : > { %v152_v0 = vld [vmem:[%s923_s25] sm:$0xff] (%p50_p3)  ;;  %v154_v1 = vld [vmem:[%s923_s25 + $0x8] sm:$0xff] (%p50_p3)  ;;  %v156_v2 = vld [vmem:[%s923_s25 + $0x10] sm:$0xff] (%p50_p3) }
  0x10   : > { %153 = vst [vmem:[%s136_s26] sm:$0xff] (%p50_p3), %v152_v0  ;;  %v158_v3 = vld [vmem:[%s923_s25 + $0x18] sm:$0xff] (%p50_p3)  ;;  %v160_v4 = vld [vmem:[%s923_s25 + $0x20] sm:$0xff] (%p50_p3)  ;;  %v162_v5 = vld [vmem:[%s923_s25 + $0x28] sm:$0xff] (%p50_p3) }
  0x11   : > { %155 = vst [vmem:[%s136_s26 + $0x8] sm:$0xff] %v154_v1  ;;  %v164_v6 = vld [vmem:[%s923_s25 + $0x30] sm:$0xff]  ;;  %v166_v7 = vld [vmem:[%s923_s25 + $0x38] sm:$0xff]  ;;  %v168_v8 = vld [vmem:[%s923_s25 + $0x80] sm:$0xff] }
  0x12   : > { %157 = vst [vmem:[%s136_s26 + $0x10] sm:$0xff] %v156_v2  ;;  %v170_v9 = vld [vmem:[%s923_s25 + $0x88] sm:$0xff]  ;;  %v172_v10 = vld [vmem:[%s923_s25 + $0x90] sm:$0xff]  ;;  %v174_v11 = vld [vmem:[%s923_s25 + $0x98] sm:$0xff] }
  0x13   : > { %159 = vst [vmem:[%s136_s26 + $0x18] sm:$0xff] %v158_v3  ;;  %v176_v12 = vld [vmem:[%s923_s25 + $0xa0] sm:$0xff]  ;;  %v178_v13 = vld [vmem:[%s923_s25 + $0xa8] sm:$0xff]  ;;  %v180_v14 = vld [vmem:[%s923_s25 + $0xb0] sm:$0xff] }
  0x14   : > { %161 = vst [vmem:[%s136_s26 + $0x20] sm:$0xff] %v160_v4  ;;  %v182_v15 = vld [vmem:[%s923_s25 + $0xb8] sm:$0xff] }
  0x15   : > { %163 = vst [vmem:[%s136_s26 + $0x28] sm:$0xff] %v162_v5 }
  0x16   : > { %165 = vst [vmem:[%s136_s26 + $0x30] sm:$0xff] %v164_v6 }
  0x17   : > { %167 = vst [vmem:[%s136_s26 + $0x38] sm:$0xff] %v166_v7 }
  0x18   : > { %169 = vst [vmem:[%s136_s26 + $0x40] sm:$0xff] %v168_v8 }
  0x19   : > { %171 = vst [vmem:[%s136_s26 + $0x48] sm:$0xff] %v170_v9 }
  0x1a   : > { %173 = vst [vmem:[%s136_s26 + $0x50] sm:$0xff] %v172_v10 }
  0x1b   : > { %175 = vst [vmem:[%s136_s26 + $0x58] sm:$0xff] %v174_v11 }
  0x1c   : > { %177 = vst [vmem:[%s136_s26 + $0x60] sm:$0xff] %v176_v12 }
  0x1d   : > { %179 = vst [vmem:[%s136_s26 + $0x68] sm:$0xff] %v178_v13 }
  0x1e   : > { %181 = vst [vmem:[%s136_s26 + $0x70] sm:$0xff] %v180_v14 }
  0x1f   : > { %183 = vst [vmem:[%s136_s26 + $0x78] sm:$0xff] %v182_v15 }
  0x20 PF: > { %p717_p5 = scmp.ge.s32.totalorder %s867_s14, 1  ;;  %p196_p6 = scmp.lt.s32.totalorder %s867_s14, 3 }
  0x22   : > { %p197_p7 = pnand %p717_p5, %p196_p6 }
  0x23   : > { %s203_s27 = sand.u32 (!%p197_p7), 1, %s859_s12   ;;  %s719_s5 = sshll.u32 (!%p197_p7), %s710_s15, 4 }
  0x24   : > { %200 = sbr.rel (%p197_p7) target bundleno = 238 (0xee), region = 51  ;;  %s718_s28 = sshll.u32 (!%p197_p7), %s203_s27, 7 }
  0x25   : > { %s944_s29 = scalar_lea.vmem (!%p197_p7), [#allocation2], %s718_s28  ;;  %p232_p8 = scmp.lt.s32.totalorder (!%p197_p7), %s719_s5, 31 }
  0x29   : > { %vm376_vm0 = vcmask 130048   ;;  %v724_v16 = vld [vmem:[%s944_s29] sm:$0xf]  ;;  %v805_v18 = vld [vmem:[%s944_s29 + $0x4] sm:$0xf]  ;;  %s1063_s5 = smov (!%p232_p8, %s719_s5), 31 }
  0x2a   : > { %v813_v17 = vld [vmem:[%s944_s29 + $0x3c] sm:$0xf0]  ;;  %v726_v20 = vld [vmem:[%s944_s29 + $0x40] sm:$0xf0]  ;;  %v732_v21 = vld [vmem:[%s944_s29 + $0x8] sm:$0xf]  ;;  %s1020_s8 = scalar_lea.vmem %s1057_s2, %s1063_s5 }
  0x2b   : > { %v725_v19 = vor.u32 %v813_v17, %v724_v16  ;;  %v814_v22 = vld [vmem:[%s944_s29 + $0x44] sm:$0xf0]  ;;  %v955_v23 = vld [vmem:[%s1055_s0] sm:$0x1]  ;;  %v729_v24 = vor.u32 %v805_v18, %v726_v20  ;;  %v806_v26 = vld [vmem:[%s944_s29 + $0xc] sm:$0xf] }
  0x2c   : > { %v733_v25 = vor.u32 %v814_v22, %v732_v21  ;;  %v734_v27 = vld [vmem:[%s944_s29 + $0x48] sm:$0xf0]  ;;  %v748_v28 = vld [vmem:[%s944_s29 + $0x18] sm:$0xf]  ;;  %v808_v31 = vld [vmem:[%s944_s29 + $0x1c] sm:$0xf] }
  0x2d   : > { %387 = vmatpush.bf16.msra.mxu0 %v725_v19  ;;  %v737_v29 = vor.u32 %v806_v26, %v734_v27  ;;  %v816_v30 = vld [vmem:[%s944_s29 + $0x54] sm:$0xf0]  ;;  %v750_v32 = vld [vmem:[%s944_s29 + $0x58] sm:$0xf0]  ;;  %400 = vmatpush.bf16.msra.mxu1 %v729_v24  ;;  %v740_v34 = vld [vmem:[%s944_s29 + $0x10] sm:$0xf] }
  0x2e   : > { %413 = vmatpush.bf16.msra.mxu2 %v733_v25  ;;  %v749_v33 = vor.u32 %v816_v30, %v748_v28  ;;  %v815_v35 = vld [vmem:[%s944_s29 + $0x4c] sm:$0xf0]  ;;  %v807_v36 = vld [vmem:[%s944_s29 + $0x14] sm:$0xf]  ;;  %v753_v37 = vor.u32 %v808_v31, %v750_v32  ;;  %v764_v40 = vld [vmem:[%s944_s29 + $0x28] sm:$0xf] }
  0x2f   : > { %426 = vmatpush.bf16.msra.mxu3 %v737_v29  ;;  %v741_v38 = vor.u32 %v815_v35, %v740_v34  ;;  %v742_v39 = vld [vmem:[%s944_s29 + $0x50] sm:$0xf0]  ;;  %v818_v41 = vld [vmem:[%s944_s29 + $0x64] sm:$0xf0]  ;;  %v810_v44 = vld [vmem:[%s944_s29 + $0x2c] sm:$0xf] }
  0x30   : > { %786 = vmatmul.msk.bf16.vlgmr.msra.gmra.mxu0 %vm376_vm0, %v955_v23  ;;  %v745_v42 = vor.u32 %v807_v36, %v742_v39  ;;  %v765_v43 = vor.u32 %v818_v41, %v764_v40  ;;  %v766_v45 = vld [vmem:[%s944_s29 + $0x68] sm:$0xf0]  ;;  %v756_v46 = vld [vmem:[%s944_s29 + $0x20] sm:$0xf]  ;;  %787 = vmatmul.msk.bf16.vlgmr.msra.gmra.mxu1 %vm376_vm0, %v955_v23  ;;  %v809_v49 = vld [vmem:[%s944_s29 + $0x24] sm:$0xf] }
  0x31   : > { %788 = vmatmul.msk.bf16.vlgmr.msra.gmra.mxu2 %vm376_vm0, %v955_v23  ;;  %v769_v47 = vor.u32 %v810_v44, %v766_v45  ;;  %v817_v48 = vld [vmem:[%s944_s29 + $0x5c] sm:$0xf0]  ;;  %v758_v50 = vld [vmem:[%s944_s29 + $0x60] sm:$0xf0]  ;;  %439 = vmatpush.bf16.msrb.mxu0 %v741_v38  ;;  %v780_v53 = vld [vmem:[%s944_s29 + $0x38] sm:$0xf] }
  0x32   : > { %465 = vmatpush.bf16.msrb.mxu2 %v749_v33  ;;  %789 = vmatmul.msk.bf16.vlgmr.msra.gmra.mxu3 %vm376_vm0, %v955_v23  ;;  %v757_v51 = vor.u32 %v817_v48, %v756_v46  ;;  %v761_v52 = vor.u32 %v809_v49, %v758_v50  ;;  %v820_v54 = vld [vmem:[%s944_s29 + $0x74] sm:$0xf0]  ;;  %v812_v55 = vld [vmem:[%s944_s29 + $0x3c] sm:$0xf]  ;;  %v772_v57 = vld [vmem:[%s944_s29 + $0x30] sm:$0xf] }
  0x33   : > { %478 = vmatpush.bf16.msrb.mxu3 %v753_v37  ;;  %452 = vmatpush.bf16.msrb.mxu1 %v745_v42  ;;  %v782_v56 = vld [vmem:[%s944_s29 + $0x78] sm:$0xf0]  ;;  %v819_v58 = vld [vmem:[%s944_s29 + $0x6c] sm:$0xf0]  ;;  %v811_v59 = vld [vmem:[%s944_s29 + $0x34] sm:$0xf]  ;;  %v781_v61 = vor.u32 %v820_v54, %v780_v53 }
  0x34   : > { %v774_v60 = vld [vmem:[%s944_s29 + $0x70] sm:$0xf0]  ;;  %v785_v62 = vor.u32 %v812_v55, %v782_v56  ;;  %v773_v63 = vor.u32 %v819_v58, %v772_v57  ;;  %v260_v1 = vld [vmem:[%s1020_s8] sm:$0xff]  ;;  %s721_s9 = sshll.u32 %s1063_s5, 1  ;;  %vm616_vm1 = vcmask 1041408   ;;  %vm618_vm2 = vcmask 1045508  }
  0x35   : > { %491 = vmatpush.bf16.msra.mxu0 %v757_v51  ;;  %v777_v0 = vor.u32 %v811_v59, %v774_v60  ;;  %v265_v3 = vperm.slane %v260_v1, 1  ;;  %v266_v5 = vperm.slane %v260_v1, 2  ;;  %v264_v6 = vperm.slane %v260_v1, 0  ;;  %s1026_s12 = scalar_lea.vmem %s1058_s3, %s721_s9  ;;  %v261_v44 = vld [vmem:[%s1020_s8 + $0x8] sm:$0xff] }
  0x36   : > { %517 = vmatpush.bf16.msra.mxu2 %v765_v43  ;;  %v267_v8 = vperm.slane %v260_v1, 3  ;;  %vm620_vm3 = vcmask 1043456   ;;  %v269_v25 = vperm.slane %v260_v1, 5  ;;  %v270_v27 = vperm.slane %v260_v1, 6 }
  0x37   : > { %530 = vmatpush.bf16.msra.mxu3 %v769_v47  ;;  %504 = vmatpush.bf16.msra.mxu1 %v761_v52  ;;  %v268_v28 = vperm.slane %v260_v1, 4  ;;  %v271_v30 = vperm.slane %v260_v1, 7  ;;  %v273_v48 = vperm.slane %v261_v44, 1  ;;  %v274_v50 = vperm.slane %v261_v44, 2 }
  0x38   : > { %v272_v51 = vperm.slane %v261_v44, 0  ;;  %v275_v53 = vperm.slane %v261_v44, 3 }
  0x40   : > { %790 = vmatmul.msk.bf16.vlgmr.msrb.gmra.mxu0 %vm376_vm0, %v955_v23  ;;  %791 = vmatmul.msk.bf16.vlgmr.msrb.gmra.mxu1 %vm376_vm0, %v955_v23 }
  0x41   : > { %792 = vmatmul.msk.bf16.vlgmr.msrb.gmra.mxu2 %vm376_vm0, %v955_v23  ;;  %543 = vmatpush.bf16.msrb.mxu0 %v773_v63 }
  0x42   : > { %793 = vmatmul.msk.bf16.vlgmr.msrb.gmra.mxu3 %vm376_vm0, %v955_v23  ;;  %569 = vmatpush.bf16.msrb.mxu2 %v781_v61 }
  0x43   : > { %582 = vmatpush.bf16.msrb.mxu3 %v785_v62  ;;  %556 = vmatpush.bf16.msrb.mxu1 %v777_v0 }
  0x50   : > { %794 = vmatmul.msk.bf16.vlgmr.msra.gmra.mxu0 %vm376_vm0, %v955_v23  ;;  %795 = vmatmul.msk.bf16.vlgmr.msra.gmra.mxu1 %vm376_vm0, %v955_v23 }
  0x51   : > { %796 = vmatmul.msk.bf16.vlgmr.msra.gmra.mxu2 %vm376_vm0, %v955_v23 }
  0x52   : > { %797 = vmatmul.msk.bf16.vlgmr.msra.gmra.mxu3 %vm376_vm0, %v955_v23 }
  0x60   : > { %798 = vmatmul.msk.bf16.vlgmr.msrb.gmra.mxu0 %vm376_vm0, %v955_v23  ;;  %799 = vmatmul.msk.bf16.vlgmr.msrb.gmra.mxu1 %vm376_vm0, %v955_v23 }
  0x61   : > { %800 = vmatmul.msk.bf16.vlgmr.msrb.gmra.mxu2 %vm376_vm0, %v955_v23 }
  0x62   : > { %801 = vmatmul.msk.bf16.vlgmr.msrb.gmra.mxu3 %vm376_vm0, %v955_v23 }
  0xad   : > { %v389_v2 = vpop.f32.mrf.mxu0  ;;  %v402_v4 = vpop.f32.mrf.mxu1 }
  0xae   : > { %v403_v7 = vadd.f32 %v402_v4, %v265_v3  ;;  %v390_v13 = vadd.f32 %v389_v2, %v264_v6  ;;  %v277_v6 = vperm.slane %v261_v44, 5 }
  0xb0   : > { %v604_v14 = vrot.slane %v403_v7, 6 }
  0xb2   : > { %v617_v19 = vsel %vm616_vm1, %v390_v13, %v604_v14 }
  0xb4   : > { %v415_v9 = vpop.f32.mrf.mxu2 }
  0xb5   : > { %v416_v10 = vadd.f32 %v415_v9, %v266_v5  ;;  %v428_v11 = vpop.f32.mrf.mxu3  ;;  %v391_v12 = vpop.f32.mrf.mxu0  ;;  %v276_v9 = vperm.slane %v261_v44, 4 }
  0xb6   : > { %v429_v15 = vadd.f32 %v428_v11, %v267_v8  ;;  %v404_v16 = vpop.f32.mrf.mxu1  ;;  %v278_v8 = vperm.slane %v261_v44, 6  ;;  %v279_v11 = vperm.slane %v261_v44, 7 }
  0xb7   : > { %v605_v17 = vrot.slane %v416_v10, 4 }
  0xb8   : > { %v606_v18 = vrot.slane %v429_v15, 2 }
  0xba   : > { %v619_v20 = vsel %vm618_vm2, %v605_v17, %v606_v18 }
  0xbb   : > { %v621_v21 = vsel %vm620_vm3, %v617_v19, %v619_v20 }
  0xbc   : > { %635 = vst [vmem:[%s1026_s12] sm:$0xff] %v621_v21  ;;  %v417_v22 = vpop.f32.mrf.mxu2 }
  0xbd   : > { %v430_v23 = vpop.f32.mrf.mxu3  ;;  %v441_v24 = vpop.f32.mrf.mxu0 }
  0xbe   : > { %v454_v26 = vpop.f32.mrf.mxu1  ;;  %v442_v35 = vadd.f32 %v441_v24, %v268_v28 }
  0xbf   : > { %v455_v29 = vadd.f32 %v454_v26, %v269_v25 }
  0xc1   : > { %v607_v36 = vrot.slane %v455_v29, 6 }
  0xc3   : > { %v622_v41 = vsel %vm616_vm1, %v442_v35, %v607_v36 }
  0xc4   : > { %v467_v31 = vpop.f32.mrf.mxu2 }
  0xc5   : > { %v468_v32 = vadd.f32 %v467_v31, %v270_v27  ;;  %v480_v33 = vpop.f32.mrf.mxu3  ;;  %v443_v34 = vpop.f32.mrf.mxu0 }
  0xc6   : > { %v481_v37 = vadd.f32 %v480_v33, %v271_v30  ;;  %v456_v38 = vpop.f32.mrf.mxu1 }
  0xc7   : > { %v608_v39 = vrot.slane %v468_v32, 4 }
  0xc8   : > { %v609_v40 = vrot.slane %v481_v37, 2 }
  0xca   : > { %v623_v42 = vsel %vm618_vm2, %v608_v39, %v609_v40 }
  0xcb   : > { %v624_v43 = vsel %vm620_vm3, %v622_v41, %v623_v42 }
  0xcc   : > { %636 = vst [vmem:[%s1026_s12 + $0x8] sm:$0xff] %v624_v43  ;;  %v469_v45 = vpop.f32.mrf.mxu2 }
  0xcd   : > { %v482_v46 = vpop.f32.mrf.mxu3  ;;  %v493_v47 = vpop.f32.mrf.mxu0 }
  0xce   : > { %v506_v49 = vpop.f32.mrf.mxu1  ;;  %v494_v58 = vadd.f32 %v493_v47, %v272_v51 }
  0xcf   : > { %v507_v52 = vadd.f32 %v506_v49, %v273_v48 }
  0xd1   : > { %v610_v59 = vrot.slane %v507_v52, 6 }
  0xd3   : > { %v625_v0 = vsel %vm616_vm1, %v494_v58, %v610_v59 }
  0xd4   : > { %v519_v54 = vpop.f32.mrf.mxu2 }
  0xd5   : > { %v520_v55 = vadd.f32 %v519_v54, %v274_v50  ;;  %v532_v56 = vpop.f32.mrf.mxu3  ;;  %v495_v57 = vpop.f32.mrf.mxu0 }
  0xd6   : > { %v533_v60 = vadd.f32 %v532_v56, %v275_v53  ;;  %v508_v61 = vpop.f32.mrf.mxu1 }
  0xd7   : > { %v611_v62 = vrot.slane %v520_v55, 4 }
  0xd8   : > { %v612_v63 = vrot.slane %v533_v60, 2 }
  0xda   : > { %v626_v1 = vsel %vm618_vm2, %v611_v62, %v612_v63 }
  0xdb   : > { %v627_v2 = vsel %vm620_vm3, %v625_v0, %v626_v1 }
  0xdc   : > { %637 = vst [vmem:[%s1026_s12 + $0x10] sm:$0xff] %v627_v2  ;;  %v521_v3 = vpop.f32.mrf.mxu2 }
  0xdd   : > { %v534_v4 = vpop.f32.mrf.mxu3  ;;  %v545_v5 = vpop.f32.mrf.mxu0 }
  0xde   : > { %v558_v7 = vpop.f32.mrf.mxu1  ;;  %v546_v16 = vadd.f32 %v545_v5, %v276_v9 }
  0xdf   : > { %v559_v10 = vadd.f32 %v558_v7, %v277_v6 }
  0xe1   : > { %v613_v17 = vrot.slane %v559_v10, 6 }
  0xe3   : > { %v628_v22 = vsel %vm616_vm1, %v546_v16, %v613_v17 }
  0xe4   : > { %v571_v12 = vpop.f32.mrf.mxu2 }
  0xe5   : > { %v572_v13 = vadd.f32 %v571_v12, %v278_v8  ;;  %v584_v14 = vpop.f32.mrf.mxu3  ;;  %v547_v15 = vpop.f32.mrf.mxu0 }
  0xe6   : > { %v585_v18 = vadd.f32 %v584_v14, %v279_v11  ;;  %v560_v19 = vpop.f32.mrf.mxu1 }
  0xe7   : > { %v614_v20 = vrot.slane %v572_v13, 4 }
  0xe8   : > { %v615_v21 = vrot.slane %v585_v18, 2 }
  0xea   : > { %v629_v23 = vsel %vm618_vm2, %v614_v20, %v615_v21 }
  0xeb   : > { %v630_v24 = vsel %vm620_vm3, %v628_v22, %v629_v23 }
  0xec   : > { %638 = vst [vmem:[%s1026_s12 + $0x18] sm:$0xff] %v630_v24  ;;  %v573_v25 = vpop.f32.mrf.mxu2 }
  0xed   : > { %v586_v26 = vpop.f32.mrf.mxu3 }
  0xee PF: > { %p10_p9 = scmp.ge.s32.totalorder %s906_s16, 4   ;;  %s1059_s12 = smov %s863_s13 }
  0xef   : > { %s1060_s13 = smov %s915_s19  ;;  %s1061_s14 = smov %s906_s16 }
  0xf0   :  { %12 = sbr.rel (!%p10_p9) target bundleno = 2 (0x2), region = 93 }

// kernel: generator128_forward.11
= control target key start
LH: loop header
LB: loop body
LE: loop exit
PB: predicated region body
PF: predicated region fallthrough
CT: control target
= control target key end

     0   :  { %s1048_s15 = smov 0   ;;  %s1050_s16 = smov 0   ;;  %s1196_s0 = inlined_call_operand.vmem [shape: bf16[4,128,256], index: 0, kind: input, shape index: {}]   ;;  %s1197_s1 = inlined_call_operand.vmem [shape: bf16[4,256,128], index: 1, kind: input, shape index: {}]   ;;  %s1198_s2 = inlined_call_operand.vmem [shape: f32[4,128,128], index: 2, kind: output, shape index: {0}]   ;;  %s1199_s3 = inlined_call_operand.vmem [shape: f32[1,128], index: 3, kind: output, shape index: {1}]   ;;  %s1200_s4 = inlined_call_operand.vmem [shape: f32[1,128], index: 4, kind: output, shape index: {2}]  }
   0x1   :  { %s1052_s17 = smov 0  }
   0x2 LB: > { %s27_s18 = sadd.s32 1, %s1016_s16  ;;  %p783_p0 = scmp.ge.s32.totalorder %s1020_s17, 1  ;;  %s1020_s17 = sphi %s1052_s17, %s15_s17   ;;  %s1016_s16 = sphi %s1050_s16, %s1202_s16   ;;  %s1012_s15 = sphi %s1048_s15, %s1201_s15  }
   0x3   : > { %p29_p1 = scmp.ge.s32.totalorder %s27_s18, 4  ;;  %p189_p2 = scmp.lt.s32.totalorder %s1020_s17, 5 }
   0x5   : > { %s1204_s18 = smov (%p29_p1, %s27_s18), 0  ;;  %p190_p3 = pnand %p783_p0, %p189_p2 }
   0x6   : > { %p230_p4 = scmp.lt.s32.totalorder (!%p190_p3), %s1012_s15, 3  ;;  %p255_p5 = scmp.eq.s32.totalorder (!%p190_p3), %s1012_s15, 0 }
   0x7   : > { %193 = sbr.rel (%p190_p3) target bundleno = 269 (0x10d), region = 28 }
   0xc   : > { %s1206_s15 = smov (!%p230_p4, %s1012_s15), 3  ;;  %260 = sbr.rel (!%p255_p5) target bundleno = 17 (0x11), region = 32  ;;  %v1022_v0 = vmov (%p255_p5), 0.0  }
   0xd   : > { %s921_s19 = sshll.u32 %s1206_s15, 7  ;;  %261 = vst [vmem:[%s1199_s3] sm:$0x1] (%p255_p5), %v1022_v0 }
   0xe   : > { %s1069_s22 = scalar_lea.vmem %s1196_s0, %s921_s19  ;;  %s1074_s25 = scalar_lea.vmem %s1197_s1, %s921_s19  ;;  %262 = vst [vmem:[%s1200_s4] sm:$0x1] (%p255_p5), %v1022_v0 }
   0xf   : > { %s1079_s28 = scalar_lea.vmem %s1198_s2, %s921_s19 }
  0x11 PF: > { %v948_v1 = vld [vmem:[%s1074_s25 + $0x38] sm:$0xff]  ;;  %v947_v3 = vld [vmem:[%s1074_s25 + $0x30] sm:$0xff]  ;;  %v946_v5 = vld [vmem:[%s1074_s25 + $0x28] sm:$0xff] }
  0x12   : > { %v956_v2 = vld [vmem:[%s1074_s25 + $0x78] sm:$0xff]  ;;  %487 = vmatpush.bf16.msra.mxu0 %v948_v1  ;;  %v955_v4 = vld [vmem:[%s1074_s25 + $0x70] sm:$0xff]  ;;  %957 = vmatpush.bf16.msra.mxu2 %v948_v1  ;;  %v954_v6 = vld [vmem:[%s1074_s25 + $0x68] sm:$0xff] }
  0x13   : > { %536 = vmatpush.bf16.msra.mxu1 %v956_v2  ;;  %965 = vmatpush.bf16.msra.mxu3 %v956_v2  ;;  %v945_v7 = vld [vmem:[%s1074_s25 + $0x20] sm:$0xff]  ;;  %v944_v9 = vld [vmem:[%s1074_s25 + $0x18] sm:$0xff]  ;;  %v943_v11 = vld [vmem:[%s1074_s25 + $0x10] sm:$0xff] }
  0x14   : > { %v953_v8 = vld [vmem:[%s1074_s25 + $0x60] sm:$0xff]  ;;  %v952_v10 = vld [vmem:[%s1074_s25 + $0x58] sm:$0xff]  ;;  %v951_v12 = vld [vmem:[%s1074_s25 + $0x50] sm:$0xff] }
  0x15   : > { %v942_v13 = vld [vmem:[%s1074_s25 + $0x8] sm:$0xff]  ;;  %v941_v15 = vld [vmem:[%s1074_s25] sm:$0xff]  ;;  %v801_v29 = vld [vmem:[%s1069_s22 + $0x10] sm:$0xf] }
  0x16   : > { %488 = vmatpush.bf16.msra.mxu0 %v947_v3  ;;  %958 = vmatpush.bf16.msra.mxu2 %v947_v3  ;;  %v950_v14 = vld [vmem:[%s1074_s25 + $0x48] sm:$0xff]  ;;  %v949_v16 = vld [vmem:[%s1074_s25 + $0x40] sm:$0xff]  ;;  %v928_v30 = vld [vmem:[%s1069_s22 + $0x14] sm:$0xf0] }
  0x17   : > { %537 = vmatpush.bf16.msra.mxu1 %v955_v4  ;;  %966 = vmatpush.bf16.msra.mxu3 %v955_v4  ;;  %v793_v17 = vld [vmem:[%s1069_s22] sm:$0xf]  ;;  %v926_v18 = vld [vmem:[%s1069_s22 + $0x4] sm:$0xf0]  ;;  %v925_v19 = vld [vmem:[%s1069_s22 + $0x4] sm:$0xf]  ;;  %v802_v37 = vor.u32 %v928_v30, %v801_v29 }
  0x18   : > { %v795_v20 = vld [vmem:[%s1069_s22 + $0x8] sm:$0xf0]  ;;  %v825_v21 = vld [vmem:[%s1069_s22 + $0x40] sm:$0xf]  ;;  %v934_v22 = vld [vmem:[%s1069_s22 + $0x44] sm:$0xf0]  ;;  %v794_v25 = vor.u32 %v926_v18, %v793_v17 }
  0x19   : > { %v933_v23 = vld [vmem:[%s1069_s22 + $0x44] sm:$0xf]  ;;  %v827_v24 = vld [vmem:[%s1069_s22 + $0x48] sm:$0xf0]  ;;  %v798_v26 = vor.u32 %v925_v19, %v795_v20  ;;  %v826_v27 = vor.u32 %v934_v22, %v825_v21  ;;  %v927_v31 = vld [vmem:[%s1069_s22 + $0x14] sm:$0xf] }
  0x1a   : > { %489 = vmatpush.bf16.msra.mxu0 %v946_v5  ;;  %959 = vmatpush.bf16.msra.mxu2 %v946_v5  ;;  %v830_v28 = vor.u32 %v933_v23, %v827_v24  ;;  %v803_v32 = vld [vmem:[%s1069_s22 + $0x18] sm:$0xf0]  ;;  %v833_v33 = vld [vmem:[%s1069_s22 + $0x50] sm:$0xf]  ;;  %v936_v34 = vld [vmem:[%s1069_s22 + $0x54] sm:$0xf0] }
  0x1b   : > { %538 = vmatpush.bf16.msra.mxu1 %v954_v6  ;;  %967 = vmatpush.bf16.msra.mxu3 %v954_v6  ;;  %v935_v35 = vld [vmem:[%s1069_s22 + $0x54] sm:$0xf]  ;;  %v835_v36 = vld [vmem:[%s1069_s22 + $0x58] sm:$0xf0]  ;;  %v806_v38 = vor.u32 %v927_v31, %v803_v32  ;;  %v834_v39 = vor.u32 %v936_v34, %v833_v33  ;;  %v809_v41 = vld [vmem:[%s1069_s22 + $0x20] sm:$0xf] }
  0x1c   : > { %v838_v40 = vor.u32 %v935_v35, %v835_v36  ;;  %v930_v42 = vld [vmem:[%s1069_s22 + $0x24] sm:$0xf0]  ;;  %v929_v43 = vld [vmem:[%s1069_s22 + $0x24] sm:$0xf]  ;;  %v811_v44 = vld [vmem:[%s1069_s22 + $0x28] sm:$0xf0] }
  0x1d   : > { %v841_v45 = vld [vmem:[%s1069_s22 + $0x60] sm:$0xf]  ;;  %v938_v46 = vld [vmem:[%s1069_s22 + $0x64] sm:$0xf0]  ;;  %v937_v47 = vld [vmem:[%s1069_s22 + $0x64] sm:$0xf]  ;;  %v810_v49 = vor.u32 %v930_v42, %v809_v41  ;;  %v814_v50 = vor.u32 %v929_v43, %v811_v44 }
  0x1e   : > { %490 = vmatpush.bf16.msra.mxu0 %v945_v7  ;;  %960 = vmatpush.bf16.msra.mxu2 %v945_v7  ;;  %v843_v48 = vld [vmem:[%s1069_s22 + $0x68] sm:$0xf0]  ;;  %v842_v51 = vor.u32 %v938_v46, %v841_v45  ;;  %v817_v53 = vld [vmem:[%s1069_s22 + $0x30] sm:$0xf]  ;;  %v932_v54 = vld [vmem:[%s1069_s22 + $0x34] sm:$0xf0] }
  0x1f   : > { %539 = vmatpush.bf16.msra.mxu1 %v953_v8  ;;  %968 = vmatpush.bf16.msra.mxu3 %v953_v8  ;;  %v846_v52 = vor.u32 %v937_v47, %v843_v48  ;;  %v931_v55 = vld [vmem:[%s1069_s22 + $0x34] sm:$0xf]  ;;  %v819_v56 = vld [vmem:[%s1069_s22 + $0x38] sm:$0xf0]  ;;  %v849_v57 = vld [vmem:[%s1069_s22 + $0x70] sm:$0xf]  ;;  %v818_v61 = vor.u32 %v932_v54, %v817_v53 }
  0x20   : > { %v940_v58 = vld [vmem:[%s1069_s22 + $0x74] sm:$0xf0]  ;;  %v939_v59 = vld [vmem:[%s1069_s22 + $0x74] sm:$0xf]  ;;  %v851_v60 = vld [vmem:[%s1069_s22 + $0x78] sm:$0xf0]  ;;  %v822_v62 = vor.u32 %v931_v55, %v819_v56 }
  0x21   : > { %v850_v63 = vor.u32 %v940_v58, %v849_v57  ;;  %v854_v0 = vor.u32 %v939_v59, %v851_v60 }
  0x22   : > { %491 = vmatpush.bf16.msra.mxu0 %v944_v9  ;;  %961 = vmatpush.bf16.msra.mxu2 %v944_v9 }
  0x23   : > { %540 = vmatpush.bf16.msra.mxu1 %v952_v10  ;;  %969 = vmatpush.bf16.msra.mxu3 %v952_v10 }
  0x26   : > { %492 = vmatpush.bf16.msra.mxu0 %v943_v11  ;;  %962 = vmatpush.bf16.msra.mxu2 %v943_v11 }
  0x27   : > { %541 = vmatpush.bf16.msra.mxu1 %v951_v12  ;;  %970 = vmatpush.bf16.msra.mxu3 %v951_v12 }
  0x2a   : > { %493 = vmatpush.bf16.msra.mxu0 %v942_v13  ;;  %963 = vmatpush.bf16.msra.mxu2 %v942_v13 }
  0x2b   : > { %542 = vmatpush.bf16.msra.mxu1 %v950_v14  ;;  %971 = vmatpush.bf16.msra.mxu3 %v950_v14 }
  0x2e   : > { %494 = vmatpush.bf16.msra.mxu0 %v941_v15  ;;  %964 = vmatpush.bf16.msra.mxu2 %v941_v15 }
  0x2f   : > { %543 = vmatpush.bf16.msra.mxu1 %v949_v16  ;;  %972 = vmatpush.bf16.msra.mxu3 %v949_v16 }
  0x31   : > { %495 = vmatmul.bf16.vlgmr.msra.gmra.mxu0 %v794_v25  ;;  %515 = vmatmul.bf16.vlgmr.msra.gmra.mxu2 %v826_v27 }
  0x32   : > { %544 = vmatmul.bf16.vlgmr.msra.gmra.mxu1 %v798_v26  ;;  %564 = vmatmul.bf16.vlgmr.msra.gmra.mxu3 %v830_v28 }
  0x41   : > { %500 = vmatmul.bf16.gmra.mxu0 %v802_v37  ;;  %520 = vmatmul.bf16.gmra.mxu2 %v834_v39 }
  0x42   : > { %549 = vmatmul.bf16.gmra.mxu1 %v806_v38  ;;  %569 = vmatmul.bf16.gmra.mxu3 %v838_v40 }
  0x51   : > { %505 = vmatmul.bf16.gmra.mxu0 %v810_v49  ;;  %525 = vmatmul.bf16.gmra.mxu2 %v842_v51 }
  0x52   : > { %554 = vmatmul.bf16.gmra.mxu1 %v814_v50  ;;  %574 = vmatmul.bf16.gmra.mxu3 %v846_v52 }
  0x61   : > { %510 = vmatmul.bf16.gmra.mxu0 %v818_v61  ;;  %530 = vmatmul.bf16.gmra.mxu2 %v850_v63 }
  0x62   : > { %559 = vmatmul.bf16.gmra.mxu1 %v822_v62  ;;  %579 = vmatmul.bf16.gmra.mxu3 %v854_v0 }
  0xae   : > { %v496_v1 = vpop.f32.mrf.mxu0 }
  0xaf   : > { %v545_v2 = vpop.f32.mrf.mxu1 }
  0xb0   : > { %v546_v3 = vadd.f32 %v545_v2, %v496_v1 }
  0xb2   : > { %585 = vst [vmem:[%s1079_s28] sm:$0xff] %v546_v3  ;;  %v626_v35 = vmul.f32 %v546_v3, %v546_v3 }
  0xb4   : > { %v516_v4 = vpop.f32.mrf.mxu2 }
  0xb5   : > { %v565_v5 = vpop.f32.mrf.mxu3 }
  0xb6   : > { %v498_v6 = vpop.f32.mrf.mxu0  ;;  %v1136_v8 = vadd.f32 %v565_v5, %v516_v4 }
  0xb7   : > { %v547_v7 = vpop.f32.mrf.mxu1 }
  0xb8   : > { %v548_v9 = vadd.f32 %v547_v7, %v498_v6  ;;  %593 = vst [vmem:[%s1079_s28 + $0x40] sm:$0xff] %v1136_v8 }
  0xba   : > { %586 = vst [vmem:[%s1079_s28 + $0x8] sm:$0xff] %v548_v9  ;;  %v627_v34 = vmul.f32 %v548_v9, %v548_v9  ;;  %v602_v36 = vadd.f32 %v548_v9, %v546_v3  ;;  %v634_v3 = vmul.f32 %v1136_v8, %v1136_v8 }
  0xbc   : > { %v518_v10 = vpop.f32.mrf.mxu2  ;;  %v642_v43 = vadd.f32 %v627_v34, %v626_v35 }
  0xbd   : > { %v567_v11 = vpop.f32.mrf.mxu3 }
  0xbe   : > { %v501_v12 = vpop.f32.mrf.mxu0  ;;  %v1141_v14 = vadd.f32 %v567_v11, %v518_v10 }
  0xbf   : > { %v550_v13 = vpop.f32.mrf.mxu1 }
  0xc0   : > { %v551_v15 = vadd.f32 %v550_v13, %v501_v12  ;;  %594 = vst [vmem:[%s1079_s28 + $0x48] sm:$0xff] %v1141_v14  ;;  %v635_v6 = vmul.f32 %v1141_v14, %v1141_v14 }
  0xc2   : > { %587 = vst [vmem:[%s1079_s28 + $0x10] sm:$0xff] %v551_v15  ;;  %v628_v37 = vmul.f32 %v551_v15, %v551_v15  ;;  %v603_v44 = vadd.f32 %v602_v36, %v551_v15 }
  0xc4   : > { %v521_v16 = vpop.f32.mrf.mxu2  ;;  %v643_v47 = vadd.f32 %v642_v43, %v628_v37  ;;  %v625_v43 = vld [vmem:[%s1200_s4] sm:$0x1] }
  0xc5   : > { %v570_v17 = vpop.f32.mrf.mxu3 }
  0xc6   : > { %v503_v18 = vpop.f32.mrf.mxu0  ;;  %v1146_v20 = vadd.f32 %v570_v17, %v521_v16 }
  0xc7   : > { %v552_v19 = vpop.f32.mrf.mxu1 }
  0xc8   : > { %v553_v21 = vadd.f32 %v552_v19, %v503_v18  ;;  %595 = vst [vmem:[%s1079_s28 + $0x50] sm:$0xff] %v1146_v20  ;;  %v636_v13 = vmul.f32 %v1146_v20, %v1146_v20 }
  0xca   : > { %588 = vst [vmem:[%s1079_s28 + $0x18] sm:$0xff] %v553_v21  ;;  %v629_v45 = vmul.f32 %v553_v21, %v553_v21  ;;  %v604_v48 = vadd.f32 %v603_v44, %v553_v21 }
  0xcc   : > { %v523_v22 = vpop.f32.mrf.mxu2  ;;  %v644_v50 = vadd.f32 %v643_v47, %v629_v45 }
  0xcd   : > { %v572_v23 = vpop.f32.mrf.mxu3 }
  0xce   : > { %v506_v24 = vpop.f32.mrf.mxu0  ;;  %v1151_v26 = vadd.f32 %v572_v23, %v523_v22 }
  0xcf   : > { %v555_v25 = vpop.f32.mrf.mxu1 }
  0xd0   : > { %v556_v27 = vadd.f32 %v555_v25, %v506_v24  ;;  %596 = vst [vmem:[%s1079_s28 + $0x58] sm:$0xff] %v1151_v26 }
  0xd2   : > { %589 = vst [vmem:[%s1079_s28 + $0x20] sm:$0xff] %v556_v27  ;;  %v630_v49 = vmul.f32 %v556_v27, %v556_v27  ;;  %v605_v51 = vadd.f32 %v604_v48, %v556_v27 }
  0xd4   : > { %v526_v28 = vpop.f32.mrf.mxu2  ;;  %v645_v53 = vadd.f32 %v644_v50, %v630_v49 }
  0xd5   : > { %v575_v29 = vpop.f32.mrf.mxu3 }
  0xd6   : > { %v508_v30 = vpop.f32.mrf.mxu0  ;;  %v576_v32 = vadd.f32 %v575_v29, %v526_v28 }
  0xd7   : > { %v557_v31 = vpop.f32.mrf.mxu1 }
  0xd8   : > { %v558_v33 = vadd.f32 %v557_v31, %v508_v30  ;;  %597 = vst [vmem:[%s1079_s28 + $0x60] sm:$0xff] %v576_v32  ;;  %v638_v19 = vmul.f32 %v576_v32, %v576_v32 }
  0xda   : > { %590 = vst [vmem:[%s1079_s28 + $0x28] sm:$0xff] %v558_v33  ;;  %v631_v52 = vmul.f32 %v558_v33, %v558_v33  ;;  %v606_v54 = vadd.f32 %v605_v51, %v558_v33 }
  0xdc   : > { %v528_v38 = vpop.f32.mrf.mxu2  ;;  %v646_v61 = vadd.f32 %v645_v53, %v631_v52 }
  0xdd   : > { %v577_v39 = vpop.f32.mrf.mxu3 }
  0xde   : > { %v511_v40 = vpop.f32.mrf.mxu0  ;;  %v578_v42 = vadd.f32 %v577_v39, %v528_v38 }
  0xdf   : > { %v560_v41 = vpop.f32.mrf.mxu1 }
  0xe0   : > { %v561_v46 = vadd.f32 %v560_v41, %v511_v40  ;;  %598 = vst [vmem:[%s1079_s28 + $0x68] sm:$0xff] %v578_v42  ;;  %v639_v22 = vmul.f32 %v578_v42, %v578_v42  ;;  %v601_v40 = vld [vmem:[%s1199_s3] sm:$0x1] }
  0xe2   : > { %591 = vst [vmem:[%s1079_s28 + $0x30] sm:$0xff] %v561_v46  ;;  %v632_v55 = vmul.f32 %v561_v46, %v561_v46  ;;  %v607_v62 = vadd.f32 %v606_v54, %v561_v46 }
  0xe4   : > { %v531_v56 = vpop.f32.mrf.mxu2  ;;  %v647_v0 = vadd.f32 %v646_v61, %v632_v55 }
  0xe5   : > { %v580_v57 = vpop.f32.mrf.mxu3 }
  0xe6   : > { %v513_v58 = vpop.f32.mrf.mxu0  ;;  %v581_v60 = vadd.f32 %v580_v57, %v531_v56 }
  0xe7   : > { %v562_v59 = vpop.f32.mrf.mxu1 }
  0xe8   : > { %v563_v63 = vadd.f32 %v562_v59, %v513_v58  ;;  %599 = vst [vmem:[%s1079_s28 + $0x70] sm:$0xff] %v581_v60  ;;  %v640_v27 = vmul.f32 %v581_v60, %v581_v60 }
  0xea   : > { %592 = vst [vmem:[%s1079_s28 + $0x38] sm:$0xff] %v563_v63  ;;  %v608_v1 = vadd.f32 %v607_v62, %v563_v63  ;;  %v633_v2 = vmul.f32 %v563_v63, %v563_v63 }
  0xec   : > { %v609_v4 = vadd.f32 %v608_v1, %v1136_v8  ;;  %v648_v5 = vadd.f32 %v647_v0, %v633_v2  ;;  %v533_v10 = vpop.f32.mrf.mxu2  ;;  %v637_v8 = vmul.f32 %v1151_v26, %v1151_v26 }
  0xed   : > { %v582_v11 = vpop.f32.mrf.mxu3 }
  0xee   : > { %v610_v7 = vadd.f32 %v609_v4, %v1141_v14  ;;  %v649_v9 = vadd.f32 %v648_v5, %v634_v3  ;;  %v583_v12 = vadd.f32 %v582_v11, %v533_v10 }
  0xf0   : > { %v611_v15 = vadd.f32 %v610_v7, %v1146_v20  ;;  %v650_v16 = vadd.f32 %v649_v9, %v635_v6  ;;  %600 = vst [vmem:[%s1079_s28 + $0x78] sm:$0xff] %v583_v12  ;;  %v641_v20 = vmul.f32 %v583_v12, %v583_v12 }
  0xf2   : > { %v651_v17 = vadd.f32 %v650_v16, %v636_v13  ;;  %v612_v18 = vadd.f32 %v611_v15, %v1151_v26 }
  0xf4   : > { %v613_v21 = vadd.f32 %v612_v18, %v576_v32  ;;  %v652_v14 = vadd.f32 %v651_v17, %v637_v8 }
  0xf6   : > { %v614_v23 = vadd.f32 %v613_v21, %v578_v42  ;;  %v653_v24 = vadd.f32 %v652_v14, %v638_v19 }
  0xf8   : > { %v615_v25 = vadd.f32 %v614_v23, %v581_v60  ;;  %v654_v28 = vadd.f32 %v653_v24, %v639_v22 }
  0xfa   : > { %v655_v29 = vadd.f32 %v654_v28, %v640_v27  ;;  %v616_v30 = vadd.f32 %v615_v25, %v583_v12 }
  0xfc   : > { %v617_v31 = vrot.slane %v616_v30, 4  ;;  %v656_v33 = vadd.f32 %v655_v29, %v641_v20 }
  0xfe   : > { %v618_v34 = vadd.f32 %v617_v31, %v616_v30  ;;  %v657_v35 = vrot.slane %v656_v33, 4 }
 0x100   : > { %v619_v36 = vrot.slane %v618_v34, 2  ;;  %v658_v37 = vadd.f32 %v657_v35, %v656_v33 }
 0x102   : > { %v620_v38 = vadd.f32 %v619_v36, %v618_v34  ;;  %v659_v26 = vrot.slane %v658_v37, 2 }
 0x104   : > { %v621_v39 = vrot.slane %v620_v38, 1  ;;  %v660_v32 = vadd.f32 %v659_v26, %v658_v37 }
 0x106   : > { %v622_v41 = vadd.f32 %v621_v39, %v620_v38  ;;  %v661_v42 = vrot.slane %v660_v32, 1 }
 0x108   : > { %v623_v44 = vadd.f32 %v622_v41, %v601_v40  ;;  %v662_v45 = vadd.f32 %v661_v42, %v660_v32 }
 0x10a   : > { %624 = vst [vmem:[%s1199_s3] sm:$0x1] %v623_v44  ;;  %v663_v46 = vadd.f32 %v662_v45, %v625_v43 }
 0x10c   : > { %664 = vst [vmem:[%s1200_s4] sm:$0x1] %v663_v46 }
 0x10d PF: > { %s15_s17 = sadd.s32 1, %s1020_s17   ;;  %s1201_s15 = smov %s1016_s16 }
 0x10e   : > { %p12_p6 = scmp.ge.s32.totalorder %s15_s17, 6   ;;  %s1202_s16 = smov %s1204_s18 }
 0x110   :  { %14 = sbr.rel (!%p12_p6) target bundleno = 2 (0x2), region = 81 }

// kernel: generator128_forward.12
= control target key start
LH: loop header
LB: loop body
LE: loop exit
PB: predicated region body
PF: predicated region fallthrough
CT: control target
= control target key end

     0   :  { %s531_s12 = smov 0   ;;  %s533_s13 = smov 0   ;;  %s638_s0 = inlined_call_operand.vmem [shape: f32[4,128,128], index: 0, kind: input, shape index: {}]   ;;  %s639_s1 = inlined_call_operand.vmem [shape: f32[1,128], index: 1, kind: input, shape index: {}]   ;;  %s640_s2 = inlined_call_operand.vmem [shape: f32[1,128], index: 2, kind: input, shape index: {}]   ;;  %s641_s3 = inlined_call_operand.vmem [shape: bf16[4,128,128], index: 3, kind: output, shape index: {}]  }
   0x1   :  { %s535_s14 = smov 0  }
   0x2 LB: > { %s25_s15 = sadd.s32 1, %s505_s13  ;;  %p405_p0 = scmp.ge.s32.totalorder %s509_s14, 1  ;;  %s509_s14 = sphi %s535_s14, %s13_s14   ;;  %s505_s13 = sphi %s533_s13, %s643_s13   ;;  %s501_s12 = sphi %s531_s12, %s642_s12  }
   0x3   : > { %p27_p1 = scmp.ge.s32.totalorder %s25_s15, 4  ;;  %p158_p2 = scmp.lt.s32.totalorder %s509_s14, 5 }
   0x5   : > { %s645_s15 = smov (%p27_p1, %s25_s15), 0  ;;  %p159_p3 = pnand %p405_p0, %p158_p2 }
   0x6   : > { %p191_p4 = scmp.lt.s32.totalorder (!%p159_p3), %s501_s12, 3 }
   0x7   : > { %162 = sbr.rel (%p159_p3) target bundleno = 36 (0x24), region = 32 }
   0xc   : > { %s647_s12 = smov (!%p191_p4, %s501_s12), 3  ;;  %v554_v0 = vld [vmem:[%s639_s1] ss:$0 sm:$0xff] }
   0xd   : > { %s412_s18 = sshll.u32 %s647_s12, 7  ;;  %v565_v1 = vld [vmem:[%s640_s2] ss:$0 sm:$0xff]  ;;  %s413_s24 = sshll.u32 %s647_s12, 6 }
   0xe   : > { %s560_s21 = scalar_lea.vmem %s638_s0, %s412_s18  ;;  %s597_s27 = scalar_lea.vmem %s641_s3, %s413_s24 }
   0xf   : > { %v210_v2 = vld [vmem:[%s560_s21] sm:$0xff]  ;;  %v211_v3 = vld [vmem:[%s560_s21 + $0x8] sm:$0xff]  ;;  %v212_v4 = vld [vmem:[%s560_s21 + $0x10] sm:$0xff] }
  0x10   : > { %v230_v5 = vmul.f32 %v554_v0, %v210_v2  ;;  %v231_v6 = vmul.f32 %v554_v0, %v211_v3  ;;  %v213_v7 = vld [vmem:[%s560_s21 + $0x18] sm:$0xff]  ;;  %v232_v8 = vmul.f32 %v554_v0, %v212_v4  ;;  %v214_v9 = vld [vmem:[%s560_s21 + $0x20] sm:$0xff]  ;;  %v215_v10 = vld [vmem:[%s560_s21 + $0x28] sm:$0xff] }
  0x11   : > { %v233_v11 = vmul.f32 %v554_v0, %v213_v7  ;;  %v234_v12 = vmul.f32 %v554_v0, %v214_v9  ;;  %v235_v13 = vmul.f32 %v554_v0, %v215_v10  ;;  %v216_v14 = vld [vmem:[%s560_s21 + $0x30] sm:$0xff]  ;;  %v217_v15 = vld [vmem:[%s560_s21 + $0x38] sm:$0xff]  ;;  %v218_v24 = vld [vmem:[%s560_s21 + $0x40] sm:$0xff] }
  0x12   : > { %v250_v16 = vadd.f32 %v565_v1, %v230_v5  ;;  %v251_v17 = vadd.f32 %v565_v1, %v231_v6  ;;  %v252_v18 = vadd.f32 %v565_v1, %v232_v8  ;;  %v236_v19 = vmul.f32 %v554_v0, %v216_v14  ;;  %v219_v25 = vld [vmem:[%s560_s21 + $0x48] sm:$0xff]  ;;  %v220_v30 = vld [vmem:[%s560_s21 + $0x50] sm:$0xff]  ;;  %v221_v35 = vld [vmem:[%s560_s21 + $0x58] sm:$0xff] }
  0x13   : > { %v253_v20 = vadd.f32 %v565_v1, %v233_v11  ;;  %v254_v21 = vadd.f32 %v565_v1, %v234_v12  ;;  %v255_v22 = vadd.f32 %v565_v1, %v235_v13  ;;  %v237_v23 = vmul.f32 %v554_v0, %v217_v15  ;;  %v222_v36 = vld [vmem:[%s560_s21 + $0x60] sm:$0xff]  ;;  %v223_v41 = vld [vmem:[%s560_s21 + $0x68] sm:$0xff]  ;;  %v224_v42 = vld [vmem:[%s560_s21 + $0x70] sm:$0xff] }
  0x14   : > { %v266_v26 = vmax.f32 %v250_v16, 0.0  ;;  %v267_v27 = vmax.f32 %v251_v17, 0.0  ;;  %v268_v28 = vmax.f32 %v252_v18, 0.0  ;;  %v256_v29 = vadd.f32 %v565_v1, %v236_v19  ;;  %v225_v51 = vld [vmem:[%s560_s21 + $0x78] sm:$0xff] }
  0x15   : > { %v269_v31 = vmax.f32 %v253_v20, 0.0  ;;  %v270_v32 = vmax.f32 %v254_v21, 0.0  ;;  %v271_v33 = vmax.f32 %v255_v22, 0.0  ;;  %v257_v34 = vadd.f32 %v565_v1, %v237_v23 }
  0x16   : > { %v417_v37 = vpack.c.bf16 %v267_v27, %v266_v26  ;;  %v272_v38 = vmax.f32 %v256_v29, 0.0  ;;  %v238_v39 = vmul.f32 %v554_v0, %v218_v24  ;;  %v239_v40 = vmul.f32 %v554_v0, %v219_v25 }
  0x17   : > { %v422_v43 = vpack.c.bf16 %v269_v31, %v268_v28  ;;  %v427_v44 = vpack.c.bf16 %v271_v33, %v270_v32  ;;  %v273_v45 = vmax.f32 %v257_v34, 0.0  ;;  %v240_v46 = vmul.f32 %v554_v0, %v220_v30 }
  0x18   : > { %418 = vst [vmem:[%s597_s27] sm:$0xff] %v417_v37   ;;  %v258_v47 = vadd.f32 %v565_v1, %v238_v39  ;;  %v259_v48 = vadd.f32 %v565_v1, %v239_v40  ;;  %v241_v49 = vmul.f32 %v554_v0, %v221_v35  ;;  %v242_v50 = vmul.f32 %v554_v0, %v222_v36 }
  0x19   : > { %454 = vst [vmem:[%s597_s27 + $0x8] sm:$0xff] %v422_v43   ;;  %v432_v52 = vpack.c.bf16 %v273_v45, %v272_v38  ;;  %v260_v53 = vadd.f32 %v565_v1, %v240_v46  ;;  %v243_v54 = vmul.f32 %v554_v0, %v223_v41  ;;  %v244_v55 = vmul.f32 %v554_v0, %v224_v42 }
  0x1a   : > { %455 = vst [vmem:[%s597_s27 + $0x10] sm:$0xff] %v427_v44   ;;  %v274_v56 = vmax.f32 %v258_v47, 0.0  ;;  %v275_v57 = vmax.f32 %v259_v48, 0.0  ;;  %v261_v58 = vadd.f32 %v565_v1, %v241_v49  ;;  %v262_v59 = vadd.f32 %v565_v1, %v242_v50 }
  0x1b   : > { %456 = vst [vmem:[%s597_s27 + $0x18] sm:$0xff] %v432_v52   ;;  %v276_v60 = vmax.f32 %v260_v53, 0.0  ;;  %v263_v61 = vadd.f32 %v565_v1, %v243_v54  ;;  %v245_v62 = vmul.f32 %v554_v0, %v225_v51  ;;  %v264_v63 = vadd.f32 %v565_v1, %v244_v55 }
  0x1c   : > { %v437_v2 = vpack.c.bf16 %v275_v57, %v274_v56  ;;  %v277_v3 = vmax.f32 %v261_v58, 0.0  ;;  %v278_v4 = vmax.f32 %v262_v59, 0.0 }
  0x1d   : > { %v279_v5 = vmax.f32 %v263_v61, 0.0  ;;  %v265_v6 = vadd.f32 %v565_v1, %v245_v62  ;;  %v280_v7 = vmax.f32 %v264_v63, 0.0 }
  0x1e   : > { %457 = vst [vmem:[%s597_s27 + $0x20] sm:$0xff] %v437_v2   ;;  %v442_v8 = vpack.c.bf16 %v277_v3, %v276_v60 }
  0x1f   : > { %v447_v9 = vpack.c.bf16 %v279_v5, %v278_v4  ;;  %v281_v10 = vmax.f32 %v265_v6, 0.0 }
  0x20   : > { %458 = vst [vmem:[%s597_s27 + $0x28] sm:$0xff] %v442_v8  }
  0x21   : > { %459 = vst [vmem:[%s597_s27 + $0x30] sm:$0xff] %v447_v9   ;;  %v452_v11 = vpack.c.bf16 %v281_v10, %v280_v7 }
  0x23   : > { %460 = vst [vmem:[%s597_s27 + $0x38] sm:$0xff] %v452_v11  }
  0x24 PF: > { %s13_s14 = sadd.s32 1, %s509_s14   ;;  %s642_s12 = smov %s505_s13 }
  0x25   : > { %p10_p5 = scmp.ge.s32.totalorder %s13_s14, 6   ;;  %s643_s13 = smov %s645_s15 }
  0x27   :  { %12 = sbr.rel (!%p10_p5) target bundleno = 2 (0x2), region = 62 }

// kernel: generator128_forward.14
= control target key start
LH: loop header
LB: loop body
LE: loop exit
PB: predicated region body
PF: predicated region fallthrough
CT: control target
= control target key end

     0   :  { %s963_s12 = smov 0   ;;  %s965_s13 = smov 0   ;;  %s1238_s0 = inlined_call_operand.vmem [shape: f32[4,512,128], index: 0, kind: input, shape index: {}]   ;;  %s1239_s1 = inlined_call_operand.vmem [shape: f32[1,128], index: 1, kind: input, shape index: {}]   ;;  %s1240_s2 = inlined_call_operand.vmem [shape: f32[1,128], index: 2, kind: input, shape index: {}]   ;;  %s1241_s3 = inlined_call_operand.vmem [shape: bf16[4,512,128], index: 3, kind: output, shape index: {}]  }
   0x1   :  { %s967_s14 = smov 0  }
   0x2 LB: > { %s25_s15 = sadd.s32 1, %s937_s13  ;;  %p693_p0 = scmp.ge.s32.totalorder %s941_s14, 1  ;;  %s941_s14 = sphi %s967_s14, %s13_s14   ;;  %s937_s13 = sphi %s965_s13, %s1243_s13   ;;  %s933_s12 = sphi %s963_s12, %s1242_s12  }
   0x3   : > { %p27_p1 = scmp.ge.s32.totalorder %s25_s15, 4  ;;  %p158_p2 = scmp.lt.s32.totalorder %s941_s14, 5 }
   0x5   : > { %s1245_s15 = smov (%p27_p1, %s25_s15), 0  ;;  %p159_p3 = pnand %p693_p0, %p158_p2 }
   0x6   : > { %p191_p4 = scmp.lt.s32.totalorder (!%p159_p3), %s933_s12, 3 }
   0x7   : > { %162 = sbr.rel (%p159_p3) target bundleno = 78 (0x4e), region = 32 }
   0xc   : > { %s1247_s12 = smov (!%p191_p4, %s933_s12), 3  ;;  %v986_v0 = vld [vmem:[%s1239_s1] ss:$0 sm:$0xff] }
   0xd   : > { %s700_s18 = sshll.u32 %s1247_s12, 9  ;;  %v997_v1 = vld [vmem:[%s1240_s2] ss:$0 sm:$0xff]  ;;  %s701_s24 = sshll.u32 %s1247_s12, 8 }
   0xe   : > { %s992_s21 = scalar_lea.vmem %s1238_s0, %s700_s18  ;;  %s1029_s27 = scalar_lea.vmem %s1241_s3, %s701_s24 }
   0xf   : > { %v210_v2 = vld [vmem:[%s992_s21] sm:$0xff]  ;;  %v211_v3 = vld [vmem:[%s992_s21 + $0x8] sm:$0xff]  ;;  %v212_v4 = vld [vmem:[%s992_s21 + $0x10] sm:$0xff] }
  0x10   : > { %v278_v5 = vmul.f32 %v986_v0, %v210_v2  ;;  %v279_v6 = vmul.f32 %v986_v0, %v211_v3  ;;  %v213_v7 = vld [vmem:[%s992_s21 + $0x18] sm:$0xff]  ;;  %v280_v8 = vmul.f32 %v986_v0, %v212_v4  ;;  %v214_v9 = vld [vmem:[%s992_s21 + $0x20] sm:$0xff]  ;;  %v215_v10 = vld [vmem:[%s992_s21 + $0x28] sm:$0xff] }
  0x11   : > { %v281_v11 = vmul.f32 %v986_v0, %v213_v7  ;;  %v282_v12 = vmul.f32 %v986_v0, %v214_v9  ;;  %v283_v13 = vmul.f32 %v986_v0, %v215_v10  ;;  %v216_v14 = vld [vmem:[%s992_s21 + $0x30] sm:$0xff]  ;;  %v217_v15 = vld [vmem:[%s992_s21 + $0x38] sm:$0xff]  ;;  %v218_v24 = vld [vmem:[%s992_s21 + $0x40] sm:$0xff] }
  0x12   : > { %v346_v16 = vadd.f32 %v997_v1, %v278_v5  ;;  %v347_v17 = vadd.f32 %v997_v1, %v279_v6  ;;  %v348_v18 = vadd.f32 %v997_v1, %v280_v8  ;;  %v284_v19 = vmul.f32 %v986_v0, %v216_v14  ;;  %v219_v25 = vld [vmem:[%s992_s21 + $0x48] sm:$0xff]  ;;  %v220_v30 = vld [vmem:[%s992_s21 + $0x50] sm:$0xff]  ;;  %v221_v35 = vld [vmem:[%s992_s21 + $0x58] sm:$0xff] }
  0x13   : > { %v349_v20 = vadd.f32 %v997_v1, %v281_v11  ;;  %v350_v21 = vadd.f32 %v997_v1, %v282_v12  ;;  %v351_v22 = vadd.f32 %v997_v1, %v283_v13  ;;  %v285_v23 = vmul.f32 %v986_v0, %v217_v15  ;;  %v222_v36 = vld [vmem:[%s992_s21 + $0x60] sm:$0xff]  ;;  %v223_v41 = vld [vmem:[%s992_s21 + $0x68] sm:$0xff]  ;;  %v224_v42 = vld [vmem:[%s992_s21 + $0x70] sm:$0xff] }
  0x14   : > { %v410_v26 = vmax.f32 %v346_v16, 0.0  ;;  %v411_v27 = vmax.f32 %v347_v17, 0.0  ;;  %v412_v28 = vmax.f32 %v348_v18, 0.0  ;;  %v352_v29 = vadd.f32 %v997_v1, %v284_v19  ;;  %v225_v51 = vld [vmem:[%s992_s21 + $0x78] sm:$0xff]  ;;  %v226_v56 = vld [vmem:[%s992_s21 + $0x80] sm:$0xff]  ;;  %v227_v61 = vld [vmem:[%s992_s21 + $0x88] sm:$0xff] }
  0x15   : > { %v413_v31 = vmax.f32 %v349_v20, 0.0  ;;  %v414_v32 = vmax.f32 %v350_v21, 0.0  ;;  %v415_v33 = vmax.f32 %v351_v22, 0.0  ;;  %v353_v34 = vadd.f32 %v997_v1, %v285_v23  ;;  %v228_v4 = vld [vmem:[%s992_s21 + $0x90] sm:$0xff]  ;;  %v229_v5 = vld [vmem:[%s992_s21 + $0x98] sm:$0xff]  ;;  %v230_v10 = vld [vmem:[%s992_s21 + $0xa0] sm:$0xff] }
  0x16   : > { %v705_v37 = vpack.c.bf16 %v411_v27, %v410_v26  ;;  %v416_v38 = vmax.f32 %v352_v29, 0.0  ;;  %v286_v39 = vmul.f32 %v986_v0, %v218_v24  ;;  %v287_v40 = vmul.f32 %v986_v0, %v219_v25  ;;  %v231_v15 = vld [vmem:[%s992_s21 + $0xa8] sm:$0xff]  ;;  %v232_v20 = vld [vmem:[%s992_s21 + $0xb0] sm:$0xff]  ;;  %v233_v25 = vld [vmem:[%s992_s21 + $0xb8] sm:$0xff] }
  0x17   : > { %v710_v43 = vpack.c.bf16 %v413_v31, %v412_v28  ;;  %v715_v44 = vpack.c.bf16 %v415_v33, %v414_v32  ;;  %v417_v45 = vmax.f32 %v353_v34, 0.0  ;;  %v288_v46 = vmul.f32 %v986_v0, %v220_v30  ;;  %v234_v30 = vld [vmem:[%s992_s21 + $0xc0] sm:$0xff] }
  0x18   : > { %706 = vst [vmem:[%s1029_s27] sm:$0xff] %v705_v37   ;;  %v354_v47 = vadd.f32 %v997_v1, %v286_v39  ;;  %v355_v48 = vadd.f32 %v997_v1, %v287_v40  ;;  %v289_v49 = vmul.f32 %v986_v0, %v221_v35  ;;  %v290_v50 = vmul.f32 %v986_v0, %v222_v36  ;;  %v235_v35 = vld [vmem:[%s992_s21 + $0xc8] sm:$0xff]  ;;  %v236_v40 = vld [vmem:[%s992_s21 + $0xd0] sm:$0xff] }
  0x19   : > { %862 = vst [vmem:[%s1029_s27 + $0x8] sm:$0xff] %v710_v43   ;;  %v720_v52 = vpack.c.bf16 %v417_v45, %v416_v38  ;;  %v356_v53 = vadd.f32 %v997_v1, %v288_v46  ;;  %v291_v54 = vmul.f32 %v986_v0, %v223_v41  ;;  %v292_v55 = vmul.f32 %v986_v0, %v224_v42  ;;  %v237_v41 = vld [vmem:[%s992_s21 + $0xd8] sm:$0xff]  ;;  %v238_v46 = vld [vmem:[%s992_s21 + $0xe0] sm:$0xff] }
  0x1a   : > { %863 = vst [vmem:[%s1029_s27 + $0x10] sm:$0xff] %v715_v44   ;;  %v418_v57 = vmax.f32 %v354_v47, 0.0  ;;  %v419_v58 = vmax.f32 %v355_v48, 0.0  ;;  %v357_v59 = vadd.f32 %v997_v1, %v289_v49  ;;  %v358_v60 = vadd.f32 %v997_v1, %v290_v50 }
  0x1b   : > { %864 = vst [vmem:[%s1029_s27 + $0x18] sm:$0xff] %v720_v52   ;;  %v420_v62 = vmax.f32 %v356_v53, 0.0  ;;  %v359_v63 = vadd.f32 %v997_v1, %v291_v54  ;;  %v293_v2 = vmul.f32 %v986_v0, %v225_v51  ;;  %v360_v3 = vadd.f32 %v997_v1, %v292_v55  ;;  %v239_v51 = vld [vmem:[%s992_s21 + $0xe8] sm:$0xff] }
  0x1c   : > { %v725_v6 = vpack.c.bf16 %v419_v58, %v418_v57  ;;  %v421_v7 = vmax.f32 %v357_v59, 0.0  ;;  %v422_v8 = vmax.f32 %v358_v60, 0.0  ;;  %v294_v9 = vmul.f32 %v986_v0, %v226_v56  ;;  %v240_v56 = vld [vmem:[%s992_s21 + $0xf0] sm:$0xff] }
  0x1d   : > { %v423_v11 = vmax.f32 %v359_v63, 0.0  ;;  %v361_v12 = vadd.f32 %v997_v1, %v293_v2  ;;  %v424_v13 = vmax.f32 %v360_v3, 0.0  ;;  %v295_v14 = vmul.f32 %v986_v0, %v227_v61  ;;  %v241_v61 = vld [vmem:[%s992_s21 + $0xf8] sm:$0xff] }
  0x1e   : > { %865 = vst [vmem:[%s1029_s27 + $0x20] sm:$0xff] %v725_v6   ;;  %v730_v16 = vpack.c.bf16 %v421_v7, %v420_v62  ;;  %v362_v17 = vadd.f32 %v997_v1, %v294_v9  ;;  %v296_v18 = vmul.f32 %v986_v0, %v228_v4  ;;  %v297_v19 = vmul.f32 %v986_v0, %v229_v5  ;;  %v242_v4 = vld [vmem:[%s992_s21 + $0x100] sm:$0xff]  ;;  %v243_v9 = vld [vmem:[%s992_s21 + $0x108] sm:$0xff] }
  0x1f   : > { %v735_v21 = vpack.c.bf16 %v423_v11, %v422_v8  ;;  %v425_v22 = vmax.f32 %v361_v12, 0.0  ;;  %v363_v23 = vadd.f32 %v997_v1, %v295_v14  ;;  %v298_v24 = vmul.f32 %v986_v0, %v230_v10  ;;  %v244_v14 = vld [vmem:[%s992_s21 + $0x110] sm:$0xff] }
  0x20   : > { %866 = vst [vmem:[%s1029_s27 + $0x28] sm:$0xff] %v730_v16   ;;  %v426_v26 = vmax.f32 %v362_v17, 0.0  ;;  %v364_v27 = vadd.f32 %v997_v1, %v296_v18  ;;  %v365_v28 = vadd.f32 %v997_v1, %v297_v19  ;;  %v299_v29 = vmul.f32 %v986_v0, %v231_v15  ;;  %v245_v15 = vld [vmem:[%s992_s21 + $0x118] sm:$0xff] }
  0x21   : > { %867 = vst [vmem:[%s1029_s27 + $0x30] sm:$0xff] %v735_v21   ;;  %v740_v31 = vpack.c.bf16 %v425_v22, %v424_v13  ;;  %v427_v32 = vmax.f32 %v363_v23, 0.0  ;;  %v366_v33 = vadd.f32 %v997_v1, %v298_v24  ;;  %v300_v34 = vmul.f32 %v986_v0, %v232_v20  ;;  %v246_v20 = vld [vmem:[%s992_s21 + $0x120] sm:$0xff] }
  0x22   : > { %v428_v36 = vmax.f32 %v364_v27, 0.0  ;;  %v429_v37 = vmax.f32 %v365_v28, 0.0  ;;  %v367_v38 = vadd.f32 %v997_v1, %v299_v29  ;;  %v301_v39 = vmul.f32 %v986_v0, %v233_v25  ;;  %v247_v25 = vld [vmem:[%s992_s21 + $0x128] sm:$0xff] }
  0x23   : > { %868 = vst [vmem:[%s1029_s27 + $0x38] sm:$0xff] %v740_v31   ;;  %v745_v42 = vpack.c.bf16 %v427_v32, %v426_v26  ;;  %v430_v43 = vmax.f32 %v366_v33, 0.0  ;;  %v368_v44 = vadd.f32 %v997_v1, %v300_v34  ;;  %v302_v45 = vmul.f32 %v986_v0, %v234_v30  ;;  %v248_v30 = vld [vmem:[%s992_s21 + $0x130] sm:$0xff] }
  0x24   : > { %v750_v47 = vpack.c.bf16 %v429_v37, %v428_v36  ;;  %v431_v48 = vmax.f32 %v367_v38, 0.0  ;;  %v369_v49 = vadd.f32 %v997_v1, %v301_v39  ;;  %v303_v50 = vmul.f32 %v986_v0, %v235_v35  ;;  %v249_v35 = vld [vmem:[%s992_s21 + $0x138] sm:$0xff] }
  0x25   : > { %869 = vst [vmem:[%s1029_s27 + $0x40] sm:$0xff] %v745_v42   ;;  %v432_v52 = vmax.f32 %v368_v44, 0.0  ;;  %v370_v53 = vadd.f32 %v997_v1, %v302_v45  ;;  %v304_v54 = vmul.f32 %v986_v0, %v236_v40  ;;  %v305_v55 = vmul.f32 %v986_v0, %v237_v41  ;;  %v250_v40 = vld [vmem:[%s992_s21 + $0x140] sm:$0xff]  ;;  %v251_v45 = vld [vmem:[%s992_s21 + $0x148] sm:$0xff] }
  0x26   : > { %870 = vst [vmem:[%s1029_s27 + $0x48] sm:$0xff] %v750_v47   ;;  %v755_v57 = vpack.c.bf16 %v431_v48, %v430_v43  ;;  %v433_v58 = vmax.f32 %v369_v49, 0.0  ;;  %v371_v59 = vadd.f32 %v997_v1, %v303_v50  ;;  %v306_v60 = vmul.f32 %v986_v0, %v238_v46  ;;  %v252_v50 = vld [vmem:[%s992_s21 + $0x150] sm:$0xff] }
  0x27   : > { %v434_v62 = vmax.f32 %v370_v53, 0.0  ;;  %v372_v63 = vadd.f32 %v997_v1, %v304_v54  ;;  %v373_v2 = vadd.f32 %v997_v1, %v305_v55  ;;  %v307_v3 = vmul.f32 %v986_v0, %v239_v51  ;;  %v253_v51 = vld [vmem:[%s992_s21 + $0x158] sm:$0xff] }
  0x28   : > { %871 = vst [vmem:[%s1029_s27 + $0x50] sm:$0xff] %v755_v57   ;;  %v760_v5 = vpack.c.bf16 %v433_v58, %v432_v52  ;;  %v435_v6 = vmax.f32 %v371_v59, 0.0  ;;  %v374_v7 = vadd.f32 %v997_v1, %v306_v60  ;;  %v308_v8 = vmul.f32 %v986_v0, %v240_v56  ;;  %v254_v56 = vld [vmem:[%s992_s21 + $0x160] sm:$0xff] }
  0x29   : > { %v436_v10 = vmax.f32 %v372_v63, 0.0  ;;  %v437_v11 = vmax.f32 %v373_v2, 0.0  ;;  %v375_v12 = vadd.f32 %v997_v1, %v307_v3  ;;  %v309_v13 = vmul.f32 %v986_v0, %v241_v61  ;;  %v255_v61 = vld [vmem:[%s992_s21 + $0x168] sm:$0xff] }
  0x2a   : > { %872 = vst [vmem:[%s1029_s27 + $0x58] sm:$0xff] %v760_v5   ;;  %v765_v16 = vpack.c.bf16 %v435_v6, %v434_v62  ;;  %v438_v17 = vmax.f32 %v374_v7, 0.0  ;;  %v376_v18 = vadd.f32 %v997_v1, %v308_v8  ;;  %v310_v19 = vmul.f32 %v986_v0, %v242_v4  ;;  %v256_v4 = vld [vmem:[%s992_s21 + $0x170] sm:$0xff] }
  0x2b   : > { %v770_v21 = vpack.c.bf16 %v437_v11, %v436_v10  ;;  %v439_v22 = vmax.f32 %v375_v12, 0.0  ;;  %v377_v23 = vadd.f32 %v997_v1, %v309_v13  ;;  %v311_v24 = vmul.f32 %v986_v0, %v243_v9  ;;  %v257_v9 = vld [vmem:[%s992_s21 + $0x178] sm:$0xff] }
  0x2c   : > { %873 = vst [vmem:[%s1029_s27 + $0x60] sm:$0xff] %v765_v16   ;;  %v440_v26 = vmax.f32 %v376_v18, 0.0  ;;  %v378_v27 = vadd.f32 %v997_v1, %v310_v19  ;;  %v312_v28 = vmul.f32 %v986_v0, %v244_v14  ;;  %v313_v29 = vmul.f32 %v986_v0, %v245_v15  ;;  %v258_v14 = vld [vmem:[%s992_s21 + $0x180] sm:$0xff]  ;;  %v259_v19 = vld [vmem:[%s992_s21 + $0x188] sm:$0xff] }
  0x2d   : > { %874 = vst [vmem:[%s1029_s27 + $0x68] sm:$0xff] %v770_v21   ;;  %v775_v31 = vpack.c.bf16 %v439_v22, %v438_v17  ;;  %v441_v32 = vmax.f32 %v377_v23, 0.0  ;;  %v379_v33 = vadd.f32 %v997_v1, %v311_v24  ;;  %v314_v34 = vmul.f32 %v986_v0, %v246_v20  ;;  %v260_v24 = vld [vmem:[%s992_s21 + $0x190] sm:$0xff] }
  0x2e   : > { %v442_v36 = vmax.f32 %v378_v27, 0.0  ;;  %v380_v37 = vadd.f32 %v997_v1, %v312_v28  ;;  %v381_v38 = vadd.f32 %v997_v1, %v313_v29  ;;  %v315_v39 = vmul.f32 %v986_v0, %v247_v25  ;;  %v261_v25 = vld [vmem:[%s992_s21 + $0x198] sm:$0xff] }
  0x2f   : > { %875 = vst [vmem:[%s1029_s27 + $0x70] sm:$0xff] %v775_v31   ;;  %v780_v41 = vpack.c.bf16 %v441_v32, %v440_v26  ;;  %v443_v42 = vmax.f32 %v379_v33, 0.0  ;;  %v382_v43 = vadd.f32 %v997_v1, %v314_v34  ;;  %v316_v44 = vmul.f32 %v986_v0, %v248_v30  ;;  %v262_v30 = vld [vmem:[%s992_s21 + $0x1a0] sm:$0xff] }
  0x30   : > { %v444_v46 = vmax.f32 %v380_v37, 0.0  ;;  %v445_v47 = vmax.f32 %v381_v38, 0.0  ;;  %v383_v48 = vadd.f32 %v997_v1, %v315_v39  ;;  %v317_v49 = vmul.f32 %v986_v0, %v249_v35  ;;  %v263_v35 = vld [vmem:[%s992_s21 + $0x1a8] sm:$0xff] }
  0x31   : > { %876 = vst [vmem:[%s1029_s27 + $0x78] sm:$0xff] %v780_v41   ;;  %v785_v52 = vpack.c.bf16 %v443_v42, %v442_v36  ;;  %v446_v53 = vmax.f32 %v382_v43, 0.0  ;;  %v384_v54 = vadd.f32 %v997_v1, %v316_v44  ;;  %v318_v55 = vmul.f32 %v986_v0, %v250_v40  ;;  %v264_v40 = vld [vmem:[%s992_s21 + $0x1b0] sm:$0xff] }
  0x32   : > { %v790_v57 = vpack.c.bf16 %v445_v47, %v444_v46  ;;  %v447_v58 = vmax.f32 %v383_v48, 0.0  ;;  %v385_v59 = vadd.f32 %v997_v1, %v317_v49  ;;  %v319_v60 = vmul.f32 %v986_v0, %v251_v45  ;;  %v265_v45 = vld [vmem:[%s992_s21 + $0x1b8] sm:$0xff] }
  0x33   : > { %877 = vst [vmem:[%s1029_s27 + $0x80] sm:$0xff] %v785_v52   ;;  %v448_v62 = vmax.f32 %v384_v54, 0.0  ;;  %v386_v63 = vadd.f32 %v997_v1, %v318_v55  ;;  %v320_v2 = vmul.f32 %v986_v0, %v252_v50  ;;  %v321_v3 = vmul.f32 %v986_v0, %v253_v51  ;;  %v266_v50 = vld [vmem:[%s992_s21 + $0x1c0] sm:$0xff]  ;;  %v267_v55 = vld [vmem:[%s992_s21 + $0x1c8] sm:$0xff] }
  0x34   : > { %878 = vst [vmem:[%s1029_s27 + $0x88] sm:$0xff] %v790_v57   ;;  %v795_v5 = vpack.c.bf16 %v447_v58, %v446_v53  ;;  %v449_v6 = vmax.f32 %v385_v59, 0.0  ;;  %v387_v7 = vadd.f32 %v997_v1, %v319_v60  ;;  %v322_v8 = vmul.f32 %v986_v0, %v254_v56  ;;  %v268_v60 = vld [vmem:[%s992_s21 + $0x1d0] sm:$0xff] }
  0x35   : > { %v450_v10 = vmax.f32 %v386_v63, 0.0  ;;  %v388_v11 = vadd.f32 %v997_v1, %v320_v2  ;;  %v389_v12 = vadd.f32 %v997_v1, %v321_v3  ;;  %v323_v13 = vmul.f32 %v986_v0, %v255_v61  ;;  %v269_v61 = vld [vmem:[%s992_s21 + $0x1d8] sm:$0xff] }
  0x36   : > { %879 = vst [vmem:[%s1029_s27 + $0x90] sm:$0xff] %v795_v5   ;;  %v800_v15 = vpack.c.bf16 %v449_v6, %v448_v62  ;;  %v451_v16 = vmax.f32 %v387_v7, 0.0  ;;  %v390_v17 = vadd.f32 %v997_v1, %v322_v8  ;;  %v324_v18 = vmul.f32 %v986_v0, %v256_v4  ;;  %v270_v4 = vld [vmem:[%s992_s21 + $0x1e0] sm:$0xff] }
  0x37   : > { %v452_v20 = vmax.f32 %v388_v11, 0.0  ;;  %v453_v21 = vmax.f32 %v389_v12, 0.0  ;;  %v391_v22 = vadd.f32 %v997_v1, %v323_v13  ;;  %v325_v23 = vmul.f32 %v986_v0, %v257_v9  ;;  %v271_v9 = vld [vmem:[%s992_s21 + $0x1e8] sm:$0xff] }
  0x38   : > { %880 = vst [vmem:[%s1029_s27 + $0x98] sm:$0xff] %v800_v15   ;;  %v805_v26 = vpack.c.bf16 %v451_v16, %v450_v10  ;;  %v454_v27 = vmax.f32 %v390_v17, 0.0  ;;  %v392_v28 = vadd.f32 %v997_v1, %v324_v18  ;;  %v326_v29 = vmul.f32 %v986_v0, %v258_v14  ;;  %v272_v14 = vld [vmem:[%s992_s21 + $0x1f0] sm:$0xff] }
  0x39   : > { %v810_v31 = vpack.c.bf16 %v453_v21, %v452_v20  ;;  %v455_v32 = vmax.f32 %v391_v22, 0.0  ;;  %v393_v33 = vadd.f32 %v997_v1, %v325_v23  ;;  %v327_v34 = vmul.f32 %v986_v0, %v259_v19  ;;  %v273_v19 = vld [vmem:[%s992_s21 + $0x1f8] sm:$0xff] }
  0x3a   : > { %881 = vst [vmem:[%s1029_s27 + $0xa0] sm:$0xff] %v805_v26   ;;  %v456_v36 = vmax.f32 %v392_v28, 0.0  ;;  %v394_v37 = vadd.f32 %v997_v1, %v326_v29  ;;  %v328_v38 = vmul.f32 %v986_v0, %v260_v24  ;;  %v329_v39 = vmul.f32 %v986_v0, %v261_v25 }
  0x3b   : > { %882 = vst [vmem:[%s1029_s27 + $0xa8] sm:$0xff] %v810_v31   ;;  %v815_v41 = vpack.c.bf16 %v455_v32, %v454_v27  ;;  %v457_v42 = vmax.f32 %v393_v33, 0.0  ;;  %v395_v43 = vadd.f32 %v997_v1, %v327_v34  ;;  %v330_v44 = vmul.f32 %v986_v0, %v262_v30 }
  0x3c   : > { %v458_v46 = vmax.f32 %v394_v37, 0.0  ;;  %v396_v47 = vadd.f32 %v997_v1, %v328_v38  ;;  %v397_v48 = vadd.f32 %v997_v1, %v329_v39  ;;  %v331_v49 = vmul.f32 %v986_v0, %v263_v35 }
  0x3d   : > { %883 = vst [vmem:[%s1029_s27 + $0xb0] sm:$0xff] %v815_v41   ;;  %v820_v51 = vpack.c.bf16 %v457_v42, %v456_v36  ;;  %v459_v52 = vmax.f32 %v395_v43, 0.0  ;;  %v398_v53 = vadd.f32 %v997_v1, %v330_v44  ;;  %v332_v54 = vmul.f32 %v986_v0, %v264_v40 }
  0x3e   : > { %v460_v56 = vmax.f32 %v396_v47, 0.0  ;;  %v461_v57 = vmax.f32 %v397_v48, 0.0  ;;  %v399_v58 = vadd.f32 %v997_v1, %v331_v49  ;;  %v333_v59 = vmul.f32 %v986_v0, %v265_v45 }
  0x3f   : > { %884 = vst [vmem:[%s1029_s27 + $0xb8] sm:$0xff] %v820_v51   ;;  %v825_v62 = vpack.c.bf16 %v459_v52, %v458_v46  ;;  %v462_v63 = vmax.f32 %v398_v53, 0.0  ;;  %v400_v2 = vadd.f32 %v997_v1, %v332_v54  ;;  %v334_v3 = vmul.f32 %v986_v0, %v266_v50 }
  0x40   : > { %v830_v5 = vpack.c.bf16 %v461_v57, %v460_v56  ;;  %v463_v6 = vmax.f32 %v399_v58, 0.0  ;;  %v401_v7 = vadd.f32 %v997_v1, %v333_v59  ;;  %v335_v8 = vmul.f32 %v986_v0, %v267_v55 }
  0x41   : > { %885 = vst [vmem:[%s1029_s27 + $0xc0] sm:$0xff] %v825_v62   ;;  %v464_v10 = vmax.f32 %v400_v2, 0.0  ;;  %v402_v11 = vadd.f32 %v997_v1, %v334_v3  ;;  %v336_v12 = vmul.f32 %v986_v0, %v268_v60  ;;  %v337_v13 = vmul.f32 %v986_v0, %v269_v61 }
  0x42   : > { %886 = vst [vmem:[%s1029_s27 + $0xc8] sm:$0xff] %v830_v5   ;;  %v835_v15 = vpack.c.bf16 %v463_v6, %v462_v63  ;;  %v465_v16 = vmax.f32 %v401_v7, 0.0  ;;  %v403_v17 = vadd.f32 %v997_v1, %v335_v8  ;;  %v338_v18 = vmul.f32 %v986_v0, %v270_v4 }
  0x43   : > { %v466_v20 = vmax.f32 %v402_v11, 0.0  ;;  %v404_v21 = vadd.f32 %v997_v1, %v336_v12  ;;  %v405_v22 = vadd.f32 %v997_v1, %v337_v13  ;;  %v339_v23 = vmul.f32 %v986_v0, %v271_v9 }
  0x44   : > { %887 = vst [vmem:[%s1029_s27 + $0xd0] sm:$0xff] %v835_v15   ;;  %v840_v24 = vpack.c.bf16 %v465_v16, %v464_v10  ;;  %v467_v25 = vmax.f32 %v403_v17, 0.0  ;;  %v406_v26 = vadd.f32 %v997_v1, %v338_v18  ;;  %v340_v27 = vmul.f32 %v986_v0, %v272_v14 }
  0x45   : > { %v468_v28 = vmax.f32 %v404_v21, 0.0  ;;  %v469_v29 = vmax.f32 %v405_v22, 0.0  ;;  %v407_v30 = vadd.f32 %v997_v1, %v339_v23  ;;  %v341_v31 = vmul.f32 %v986_v0, %v273_v19 }
  0x46   : > { %888 = vst [vmem:[%s1029_s27 + $0xd8] sm:$0xff] %v840_v24   ;;  %v845_v32 = vpack.c.bf16 %v467_v25, %v466_v20  ;;  %v470_v33 = vmax.f32 %v406_v26, 0.0  ;;  %v408_v34 = vadd.f32 %v997_v1, %v340_v27 }
  0x47   : > { %v850_v35 = vpack.c.bf16 %v469_v29, %v468_v28  ;;  %v471_v36 = vmax.f32 %v407_v30, 0.0  ;;  %v409_v37 = vadd.f32 %v997_v1, %v341_v31 }
  0x48   : > { %889 = vst [vmem:[%s1029_s27 + $0xe0] sm:$0xff] %v845_v32   ;;  %v472_v38 = vmax.f32 %v408_v34, 0.0 }
  0x49   : > { %890 = vst [vmem:[%s1029_s27 + $0xe8] sm:$0xff] %v850_v35   ;;  %v855_v39 = vpack.c.bf16 %v471_v36, %v470_v33  ;;  %v473_v40 = vmax.f32 %v409_v37, 0.0 }
  0x4b   : > { %891 = vst [vmem:[%s1029_s27 + $0xf0] sm:$0xff] %v855_v39   ;;  %v860_v41 = vpack.c.bf16 %v473_v40, %v472_v38 }
  0x4d   : > { %892 = vst [vmem:[%s1029_s27 + $0xf8] sm:$0xff] %v860_v41  }
  0x4e PF: > { %s13_s14 = sadd.s32 1, %s941_s14   ;;  %s1242_s12 = smov %s937_s13 }
  0x4f   : > { %p10_p5 = scmp.ge.s32.totalorder %s13_s14, 6   ;;  %s1243_s13 = smov %s1245_s15 }
  0x51   :  { %12 = sbr.rel (!%p10_p5) target bundleno = 2 (0x2), region = 62 }

// kernel: generator128_forward.13
= control target key start
LH: loop header
LB: loop body
LE: loop exit
PB: predicated region body
PF: predicated region fallthrough
CT: control target
= control target key end

     0   :  { %s1449_s15 = smov 0   ;;  %s1451_s16 = smov 0   ;;  %s1901_s0 = inlined_call_operand.vmem [shape: bf16[4,512,128], index: 0, kind: input, shape index: {}]   ;;  %s1902_s1 = inlined_call_operand.vmem [shape: bf16[4,128,128], index: 1, kind: input, shape index: {}]   ;;  %s1903_s2 = inlined_call_operand.vmem [shape: f32[4,512,128], index: 2, kind: output, shape index: {0}]   ;;  %s1904_s3 = inlined_call_operand.vmem [shape: f32[1,128], index: 3, kind: output, shape index: {1}]   ;;  %s1905_s4 = inlined_call_operand.vmem [shape: f32[1,128], index: 4, kind: output, shape index: {2}]  }
   0x1   :  { %s1453_s17 = smov 0  }
   0x2 LB: > { %s27_s18 = sadd.s32 1, %s1417_s16  ;;  %p1136_p0 = scmp.ge.s32.totalorder %s1421_s17, 1  ;;  %s1421_s17 = sphi %s1453_s17, %s15_s17   ;;  %s1417_s16 = sphi %s1451_s16, %s1907_s16   ;;  %s1413_s15 = sphi %s1449_s15, %s1906_s15  }
   0x3   : > { %p29_p1 = scmp.ge.s32.totalorder %s27_s18, 4  ;;  %p188_p2 = scmp.lt.s32.totalorder %s1421_s17, 5 }
   0x5   : > { %s1909_s18 = smov (%p29_p1, %s27_s18), 0  ;;  %p189_p3 = pnand %p1136_p0, %p188_p2 }
   0x6   : > { %p228_p4 = scmp.lt.s32.totalorder (!%p189_p3), %s1413_s15, 3  ;;  %p252_p5 = scmp.eq.s32.totalorder (!%p189_p3), %s1413_s15, 0 }
   0x7   : > { %192 = sbr.rel (%p189_p3) target bundleno = 410 (0x19a), region = 28 }
   0xc   : > { %s1911_s15 = smov (!%p228_p4, %s1413_s15), 3  ;;  %257 = sbr.rel (!%p252_p5) target bundleno = 17 (0x11), region = 32  ;;  %v1423_v0 = vmov (%p252_p5), 0.0  }
   0xd   : > { %s1306_s19 = sshll.u32 %s1911_s15, 8  ;;  %s1307_s20 = sshll.u32 %s1911_s15, 6  ;;  %258 = vst [vmem:[%s1904_s3] sm:$0x1] (%p252_p5), %v1423_v0 }
   0xe   : > { %s1470_s23 = scalar_lea.vmem %s1901_s0, %s1306_s19  ;;  %s1475_s26 = scalar_lea.vmem %s1902_s1, %s1307_s20  ;;  %259 = vst [vmem:[%s1905_s4] sm:$0x1] (%p252_p5), %v1423_v0 }
   0xf   : > { %s1308_s27 = sshll.u32 %s1911_s15, 9 }
  0x10   : > { %s1480_s30 = scalar_lea.vmem %s1903_s2, %s1308_s27 }
  0x11 PF: > { %v1349_v1 = vld [vmem:[%s1475_s26 + $0x38] sm:$0xff]  ;;  %v1348_v2 = vld [vmem:[%s1475_s26 + $0x30] sm:$0xff]  ;;  %v1347_v3 = vld [vmem:[%s1475_s26 + $0x28] sm:$0xff] }
  0x12   : > { %580 = vmatpush.bf16.msra.mxu0 %v1349_v1  ;;  %1350 = vmatpush.bf16.msra.mxu1 %v1349_v1  ;;  %v1346_v4 = vld [vmem:[%s1475_s26 + $0x20] sm:$0xff]  ;;  %v1345_v5 = vld [vmem:[%s1475_s26 + $0x18] sm:$0xff]  ;;  %v1344_v6 = vld [vmem:[%s1475_s26 + $0x10] sm:$0xff] }
  0x13   : > { %1351 = vmatpush.bf16.msra.mxu2 %v1349_v1  ;;  %1352 = vmatpush.bf16.msra.mxu3 %v1349_v1  ;;  %v1343_v7 = vld [vmem:[%s1475_s26 + $0x8] sm:$0xff]  ;;  %v1342_v8 = vld [vmem:[%s1475_s26] sm:$0xff]  ;;  %v1312_v14 = vld [vmem:[%s1470_s23 + $0x10] sm:$0xff] }
  0x14   : > { %v1310_v9 = vld [vmem:[%s1470_s23] sm:$0xff]  ;;  %v1311_v11 = vld [vmem:[%s1470_s23 + $0x8] sm:$0xff]  ;;  %v1320_v15 = vld [vmem:[%s1470_s23 + $0x50] sm:$0xff] }
  0x15   : > { %v1318_v10 = vld [vmem:[%s1470_s23 + $0x40] sm:$0xff]  ;;  %v1319_v12 = vld [vmem:[%s1470_s23 + $0x48] sm:$0xff]  ;;  %v1313_v17 = vld [vmem:[%s1470_s23 + $0x18] sm:$0xff] }
  0x16   : > { %581 = vmatpush.bf16.msra.mxu0 %v1348_v2  ;;  %1353 = vmatpush.bf16.msra.mxu1 %v1348_v2  ;;  %v1326_v13 = vld [vmem:[%s1470_s23 + $0x80] sm:$0xff]  ;;  %v1327_v16 = vld [vmem:[%s1470_s23 + $0x88] sm:$0xff]  ;;  %v1321_v18 = vld [vmem:[%s1470_s23 + $0x58] sm:$0xff] }
  0x17   : > { %1354 = vmatpush.bf16.msra.mxu2 %v1348_v2  ;;  %1355 = vmatpush.bf16.msra.mxu3 %v1348_v2  ;;  %v1328_v19 = vld [vmem:[%s1470_s23 + $0x90] sm:$0xff]  ;;  %v1334_v20 = vld [vmem:[%s1470_s23 + $0xc0] sm:$0xff]  ;;  %v1329_v23 = vld [vmem:[%s1470_s23 + $0x98] sm:$0xff] }
  0x18   : > { %v1314_v21 = vld [vmem:[%s1470_s23 + $0x20] sm:$0xff]  ;;  %v1335_v24 = vld [vmem:[%s1470_s23 + $0xc8] sm:$0xff]  ;;  %v1336_v28 = vld [vmem:[%s1470_s23 + $0xd0] sm:$0xff] }
  0x19   : > { %v1322_v22 = vld [vmem:[%s1470_s23 + $0x60] sm:$0xff]  ;;  %v1315_v25 = vld [vmem:[%s1470_s23 + $0x28] sm:$0xff]  ;;  %v1316_v29 = vld [vmem:[%s1470_s23 + $0x30] sm:$0xff] }
  0x1a   : > { %582 = vmatpush.bf16.msra.mxu0 %v1347_v3  ;;  %1356 = vmatpush.bf16.msra.mxu1 %v1347_v3  ;;  %v1323_v26 = vld [vmem:[%s1470_s23 + $0x68] sm:$0xff]  ;;  %v1330_v27 = vld [vmem:[%s1470_s23 + $0xa0] sm:$0xff]  ;;  %v1324_v30 = vld [vmem:[%s1470_s23 + $0x70] sm:$0xff] }
  0x1b   : > { %1357 = vmatpush.bf16.msra.mxu2 %v1347_v3  ;;  %1358 = vmatpush.bf16.msra.mxu3 %v1347_v3  ;;  %v1331_v31 = vld [vmem:[%s1470_s23 + $0xa8] sm:$0xff]  ;;  %v1337_v32 = vld [vmem:[%s1470_s23 + $0xd8] sm:$0xff]  ;;  %v1332_v35 = vld [vmem:[%s1470_s23 + $0xb0] sm:$0xff] }
  0x1c   : > { %v1317_v33 = vld [vmem:[%s1470_s23 + $0x38] sm:$0xff]  ;;  %v1338_v36 = vld [vmem:[%s1470_s23 + $0xe0] sm:$0xff]  ;;  %v1339_v40 = vld [vmem:[%s1470_s23 + $0xe8] sm:$0xff] }
  0x1d   : > { %v1325_v34 = vld [vmem:[%s1470_s23 + $0x78] sm:$0xff]  ;;  %v1340_v52 = vld [vmem:[%s1470_s23 + $0xf0] sm:$0xff] }
  0x1e   : > { %583 = vmatpush.bf16.msra.mxu0 %v1346_v4  ;;  %1359 = vmatpush.bf16.msra.mxu1 %v1346_v4  ;;  %v1333_v39 = vld [vmem:[%s1470_s23 + $0xb8] sm:$0xff] }
  0x1f   : > { %1360 = vmatpush.bf16.msra.mxu2 %v1346_v4  ;;  %1361 = vmatpush.bf16.msra.mxu3 %v1346_v4  ;;  %v1341_v1 = vld [vmem:[%s1470_s23 + $0xf8] sm:$0xff] }
  0x22   : > { %584 = vmatpush.bf16.msra.mxu0 %v1345_v5  ;;  %1362 = vmatpush.bf16.msra.mxu1 %v1345_v5 }
  0x23   : > { %1363 = vmatpush.bf16.msra.mxu2 %v1345_v5  ;;  %1364 = vmatpush.bf16.msra.mxu3 %v1345_v5 }
  0x26   : > { %585 = vmatpush.bf16.msra.mxu0 %v1344_v6  ;;  %1365 = vmatpush.bf16.msra.mxu1 %v1344_v6 }
  0x27   : > { %1366 = vmatpush.bf16.msra.mxu2 %v1344_v6  ;;  %1367 = vmatpush.bf16.msra.mxu3 %v1344_v6 }
  0x2a   : > { %586 = vmatpush.bf16.msra.mxu0 %v1343_v7  ;;  %1368 = vmatpush.bf16.msra.mxu1 %v1343_v7 }
  0x2b   : > { %1369 = vmatpush.bf16.msra.mxu2 %v1343_v7  ;;  %1370 = vmatpush.bf16.msra.mxu3 %v1343_v7 }
  0x2e   : > { %587 = vmatpush.bf16.msra.mxu0 %v1342_v8  ;;  %1371 = vmatpush.bf16.msra.mxu1 %v1342_v8 }
  0x2f   : > { %1372 = vmatpush.bf16.msra.mxu2 %v1342_v8  ;;  %1373 = vmatpush.bf16.msra.mxu3 %v1342_v8 }
  0x31   : > { %588 = vmatmul.bf16.vlgmr.msra.gmra.mxu0 %v1310_v9  ;;  %628 = vmatmul.bf16.vlgmr.msra.gmra.mxu1 %v1318_v10 }
  0x32   : > { %668 = vmatmul.bf16.vlgmr.msra.gmra.mxu2 %v1326_v13  ;;  %708 = vmatmul.bf16.vlgmr.msra.gmra.mxu3 %v1334_v20 }
  0x41   : > { %593 = vmatmul.bf16.gmra.mxu0 %v1311_v11  ;;  %633 = vmatmul.bf16.gmra.mxu1 %v1319_v12 }
  0x42   : > { %673 = vmatmul.bf16.gmra.mxu2 %v1327_v16  ;;  %713 = vmatmul.bf16.gmra.mxu3 %v1335_v24 }
  0x51   : > { %598 = vmatmul.bf16.gmra.mxu0 %v1312_v14  ;;  %638 = vmatmul.bf16.gmra.mxu1 %v1320_v15 }
  0x52   : > { %678 = vmatmul.bf16.gmra.mxu2 %v1328_v19  ;;  %718 = vmatmul.bf16.gmra.mxu3 %v1336_v28 }
  0x61   : > { %603 = vmatmul.bf16.gmra.mxu0 %v1313_v17  ;;  %643 = vmatmul.bf16.gmra.mxu1 %v1321_v18 }
  0x62   : > { %683 = vmatmul.bf16.gmra.mxu2 %v1329_v23  ;;  %723 = vmatmul.bf16.gmra.mxu3 %v1337_v32 }
  0x71   : > { %608 = vmatmul.bf16.gmra.mxu0 %v1314_v21  ;;  %648 = vmatmul.bf16.gmra.mxu1 %v1322_v22 }
  0x72   : > { %688 = vmatmul.bf16.gmra.mxu2 %v1330_v27  ;;  %728 = vmatmul.bf16.gmra.mxu3 %v1338_v36 }
  0x81   : > { %613 = vmatmul.bf16.gmra.mxu0 %v1315_v25  ;;  %653 = vmatmul.bf16.gmra.mxu1 %v1323_v26 }
  0x82   : > { %693 = vmatmul.bf16.gmra.mxu2 %v1331_v31  ;;  %733 = vmatmul.bf16.gmra.mxu3 %v1339_v40 }
  0x91   : > { %618 = vmatmul.bf16.gmra.mxu0 %v1316_v29  ;;  %658 = vmatmul.bf16.gmra.mxu1 %v1324_v30 }
  0x92   : > { %698 = vmatmul.bf16.gmra.mxu2 %v1332_v35  ;;  %738 = vmatmul.bf16.gmra.mxu3 %v1340_v52 }
  0xa1   : > { %623 = vmatmul.bf16.gmra.mxu0 %v1317_v33  ;;  %663 = vmatmul.bf16.gmra.mxu1 %v1325_v34 }
  0xa2   : > { %703 = vmatmul.bf16.gmra.mxu2 %v1333_v39  ;;  %743 = vmatmul.bf16.gmra.mxu3 %v1341_v1 }
  0xae   : > { %v589_v37 = vpop.f32.mrf.mxu0  ;;  %v1524_v38 = vpop.f32.mrf.mxu1 }
  0xaf   : > { %749 = vst [vmem:[%s1480_s30] sm:$0xff] %v589_v37  ;;  %v886_v43 = vmul.f32 %v589_v37, %v589_v37 }
  0xb0   : > { %765 = vst [vmem:[%s1480_s30 + $0x80] sm:$0xff] %v1524_v38 }
  0xb5   : > { %v1545_v57 = vpop.f32.mrf.mxu2  ;;  %v1588_v11 = vpop.f32.mrf.mxu3 }
  0xb6   : > { %v591_v41 = vpop.f32.mrf.mxu0  ;;  %v1531_v42 = vpop.f32.mrf.mxu1  ;;  %781 = vst [vmem:[%s1480_s30 + $0x100] sm:$0xff] %v1545_v57 }
  0xb7   : > { %750 = vst [vmem:[%s1480_s30 + $0x8] sm:$0xff] %v591_v41  ;;  %v814_v44 = vadd.f32 %v591_v41, %v589_v37  ;;  %v887_v45 = vmul.f32 %v591_v41, %v591_v41 }
  0xb8   : > { %766 = vst [vmem:[%s1480_s30 + $0x88] sm:$0xff] %v1531_v42 }
  0xb9   : > { %v950_v46 = vadd.f32 %v887_v45, %v886_v43  ;;  %797 = vst [vmem:[%s1480_s30 + $0x180] sm:$0xff] %v1588_v11 }
  0xbd   : > { %v1556_v63 = vpop.f32.mrf.mxu2  ;;  %v1601_v15 = vpop.f32.mrf.mxu3 }
  0xbe   : > { %v594_v47 = vpop.f32.mrf.mxu0  ;;  %v1536_v48 = vpop.f32.mrf.mxu1  ;;  %782 = vst [vmem:[%s1480_s30 + $0x108] sm:$0xff] %v1556_v63 }
  0xbf   : > { %751 = vst [vmem:[%s1480_s30 + $0x10] sm:$0xff] %v594_v47  ;;  %v815_v49 = vadd.f32 %v814_v44, %v594_v47  ;;  %v888_v50 = vmul.f32 %v594_v47, %v594_v47 }
  0xc0   : > { %767 = vst [vmem:[%s1480_s30 + $0x90] sm:$0xff] %v1536_v48 }
  0xc1   : > { %v951_v51 = vadd.f32 %v950_v46, %v888_v50  ;;  %798 = vst [vmem:[%s1480_s30 + $0x188] sm:$0xff] %v1601_v15 }
  0xc5   : > { %v1568_v4 = vpop.f32.mrf.mxu2  ;;  %v1614_v19 = vpop.f32.mrf.mxu3 }
  0xc6   : > { %v596_v53 = vpop.f32.mrf.mxu0  ;;  %v1542_v54 = vpop.f32.mrf.mxu1  ;;  %783 = vst [vmem:[%s1480_s30 + $0x110] sm:$0xff] %v1568_v4 }
  0xc7   : > { %752 = vst [vmem:[%s1480_s30 + $0x18] sm:$0xff] %v596_v53  ;;  %v816_v55 = vadd.f32 %v815_v49, %v596_v53  ;;  %v889_v56 = vmul.f32 %v596_v53, %v596_v53 }
  0xc8   : > { %768 = vst [vmem:[%s1480_s30 + $0x98] sm:$0xff] %v1542_v54 }
  0xc9   : > { %v952_v58 = vadd.f32 %v951_v51, %v889_v56  ;;  %799 = vst [vmem:[%s1480_s30 + $0x190] sm:$0xff] %v1614_v19 }
  0xcd   : > { %v1577_v7 = vpop.f32.mrf.mxu2  ;;  %v1627_v23 = vpop.f32.mrf.mxu3 }
  0xce   : > { %v599_v59 = vpop.f32.mrf.mxu0  ;;  %v1551_v60 = vpop.f32.mrf.mxu1  ;;  %784 = vst [vmem:[%s1480_s30 + $0x118] sm:$0xff] %v1577_v7 }
  0xcf   : > { %753 = vst [vmem:[%s1480_s30 + $0x20] sm:$0xff] %v599_v59  ;;  %v1554_v61 = vadd.f32 %v816_v55, %v599_v59  ;;  %v890_v62 = vmul.f32 %v599_v59, %v599_v59 }
  0xd0   : > { %769 = vst [vmem:[%s1480_s30 + $0xa0] sm:$0xff] %v1551_v60 }
  0xd1   : > { %v1560_v0 = vadd.f32 %v952_v58, %v890_v62  ;;  %800 = vst [vmem:[%s1480_s30 + $0x198] sm:$0xff] %v1627_v23 }
  0xd5   : > { %v1586_v10 = vpop.f32.mrf.mxu2  ;;  %v1640_v27 = vpop.f32.mrf.mxu3 }
  0xd6   : > { %v601_v2 = vpop.f32.mrf.mxu0  ;;  %v1565_v3 = vpop.f32.mrf.mxu1  ;;  %785 = vst [vmem:[%s1480_s30 + $0x120] sm:$0xff] %v1586_v10 }
  0xd7   : > { %754 = vst [vmem:[%s1480_s30 + $0x28] sm:$0xff] %v601_v2  ;;  %v891_v32 = vmul.f32 %v601_v2, %v601_v2  ;;  %v818_v33 = vadd.f32 %v1554_v61, %v601_v2 }
  0xd8   : > { %770 = vst [vmem:[%s1480_s30 + $0xa8] sm:$0xff] %v1565_v3 }
  0xd9   : > { %801 = vst [vmem:[%s1480_s30 + $0x1a0] sm:$0xff] %v1640_v27  ;;  %v954_v35 = vadd.f32 %v1560_v0, %v891_v32 }
  0xdd   : > { %v1599_v14 = vpop.f32.mrf.mxu2  ;;  %v1653_v31 = vpop.f32.mrf.mxu3 }
  0xde   : > { %v604_v5 = vpop.f32.mrf.mxu0  ;;  %v1574_v6 = vpop.f32.mrf.mxu1  ;;  %786 = vst [vmem:[%s1480_s30 + $0x128] sm:$0xff] %v1599_v14 }
  0xdf   : > { %755 = vst [vmem:[%s1480_s30 + $0x30] sm:$0xff] %v604_v5  ;;  %v892_v34 = vmul.f32 %v604_v5, %v604_v5  ;;  %v819_v36 = vadd.f32 %v818_v33, %v604_v5 }
  0xe0   : > { %771 = vst [vmem:[%s1480_s30 + $0xb0] sm:$0xff] %v1574_v6 }
  0xe1   : > { %802 = vst [vmem:[%s1480_s30 + $0x1a8] sm:$0xff] %v1653_v31  ;;  %v955_v41 = vadd.f32 %v954_v35, %v892_v34 }
  0xe5   : > { %v1612_v18 = vpop.f32.mrf.mxu2  ;;  %v1668_v46 = vpop.f32.mrf.mxu3 }
  0xe6   : > { %v606_v8 = vpop.f32.mrf.mxu0  ;;  %v1583_v9 = vpop.f32.mrf.mxu1  ;;  %787 = vst [vmem:[%s1480_s30 + $0x130] sm:$0xff] %v1612_v18 }
  0xe7   : > { %756 = vst [vmem:[%s1480_s30 + $0x38] sm:$0xff] %v606_v8  ;;  %v893_v37 = vmul.f32 %v606_v8, %v606_v8  ;;  %v820_v43 = vadd.f32 %v819_v36, %v606_v8 }
  0xe8   : > { %772 = vst [vmem:[%s1480_s30 + $0xb8] sm:$0xff] %v1583_v9 }
  0xe9   : > { %v956_v47 = vadd.f32 %v955_v41, %v893_v37  ;;  %803 = vst [vmem:[%s1480_s30 + $0x1b0] sm:$0xff] %v1668_v46 }
  0xed   : > { %v1625_v22 = vpop.f32.mrf.mxu2  ;;  %v1681_v5 = vpop.f32.mrf.mxu3 }
  0xee   : > { %v609_v12 = vpop.f32.mrf.mxu0  ;;  %v1596_v13 = vpop.f32.mrf.mxu1  ;;  %788 = vst [vmem:[%s1480_s30 + $0x138] sm:$0xff] %v1625_v22 }
  0xef   : > { %757 = vst [vmem:[%s1480_s30 + $0x40] sm:$0xff] %v609_v12  ;;  %v894_v44 = vmul.f32 %v609_v12, %v609_v12  ;;  %v821_v49 = vadd.f32 %v820_v43, %v609_v12 }
  0xf0   : > { %773 = vst [vmem:[%s1480_s30 + $0xc0] sm:$0xff] %v1596_v13 }
  0xf1   : > { %v957_v51 = vadd.f32 %v956_v47, %v894_v44  ;;  %804 = vst [vmem:[%s1480_s30 + $0x1b8] sm:$0xff] %v1681_v5 }
  0xf5   : > { %v1638_v26 = vpop.f32.mrf.mxu2  ;;  %v1694_v44 = vpop.f32.mrf.mxu3 }
  0xf6   : > { %v611_v16 = vpop.f32.mrf.mxu0  ;;  %v1609_v17 = vpop.f32.mrf.mxu1  ;;  %789 = vst [vmem:[%s1480_s30 + $0x140] sm:$0xff] %v1638_v26 }
  0xf7   : > { %758 = vst [vmem:[%s1480_s30 + $0x48] sm:$0xff] %v611_v16  ;;  %v895_v50 = vmul.f32 %v611_v16, %v611_v16  ;;  %v822_v52 = vadd.f32 %v821_v49, %v611_v16 }
  0xf8   : > { %774 = vst [vmem:[%s1480_s30 + $0xc8] sm:$0xff] %v1609_v17 }
  0xf9   : > { %v958_v55 = vadd.f32 %v957_v51, %v895_v50  ;;  %805 = vst [vmem:[%s1480_s30 + $0x1c0] sm:$0xff] %v1694_v44  ;;  %v903_v50 = vmul.f32 %v1531_v42, %v1531_v42 }
  0xfd   : > { %v1651_v30 = vpop.f32.mrf.mxu2 }
  0xfe   : > { %v614_v20 = vpop.f32.mrf.mxu0  ;;  %v1622_v21 = vpop.f32.mrf.mxu1  ;;  %790 = vst [vmem:[%s1480_s30 + $0x148] sm:$0xff] %v1651_v30 }
  0xff   : > { %759 = vst [vmem:[%s1480_s30 + $0x50] sm:$0xff] %v614_v20  ;;  %v896_v53 = vmul.f32 %v614_v20, %v614_v20  ;;  %v823_v56 = vadd.f32 %v822_v52, %v614_v20 }
 0x100   : > { %775 = vst [vmem:[%s1480_s30 + $0xd0] sm:$0xff] %v1622_v21 }
 0x101   : > { %v959_v62 = vadd.f32 %v958_v55, %v896_v53  ;;  %v904_v53 = vmul.f32 %v1536_v48, %v1536_v48 }
 0x105   : > { %v1666_v45 = vpop.f32.mrf.mxu2 }
 0x106   : > { %v616_v24 = vpop.f32.mrf.mxu0  ;;  %v1635_v25 = vpop.f32.mrf.mxu1  ;;  %791 = vst [vmem:[%s1480_s30 + $0x150] sm:$0xff] %v1666_v45 }
 0x107   : > { %760 = vst [vmem:[%s1480_s30 + $0x58] sm:$0xff] %v616_v24  ;;  %v897_v58 = vmul.f32 %v616_v24, %v616_v24  ;;  %v824_v0 = vadd.f32 %v823_v56, %v616_v24 }
 0x108   : > { %776 = vst [vmem:[%s1480_s30 + $0xd8] sm:$0xff] %v1635_v25 }
 0x109   : > { %v960_v8 = vadd.f32 %v959_v62, %v897_v58 }
 0x10d   : > { %v1679_v2 = vpop.f32.mrf.mxu2 }
 0x10e   : > { %v619_v28 = vpop.f32.mrf.mxu0  ;;  %v1648_v29 = vpop.f32.mrf.mxu1  ;;  %792 = vst [vmem:[%s1480_s30 + $0x158] sm:$0xff] %v1679_v2 }
 0x10f   : > { %761 = vst [vmem:[%s1480_s30 + $0x60] sm:$0xff] %v619_v28  ;;  %v898_v1 = vmul.f32 %v619_v28, %v619_v28  ;;  %v825_v12 = vadd.f32 %v824_v0, %v619_v28  ;;  %v1716_v0 = vpop.f32.mrf.mxu3 }
 0x110   : > { %777 = vst [vmem:[%s1480_s30 + $0xe0] sm:$0xff] %v1648_v29 }
 0x111   : > { %v961_v20 = vadd.f32 %v960_v8, %v898_v1  ;;  %806 = vst [vmem:[%s1480_s30 + $0x1c8] sm:$0xff] %v1716_v0 }
 0x115   : > { %v1692_v43 = vpop.f32.mrf.mxu2 }
 0x116   : > { %v621_v39 = vpop.f32.mrf.mxu0  ;;  %v1663_v40 = vpop.f32.mrf.mxu1  ;;  %793 = vst [vmem:[%s1480_s30 + $0x160] sm:$0xff] %v1692_v43 }
 0x117   : > { %762 = vst [vmem:[%s1480_s30 + $0x68] sm:$0xff] %v621_v39  ;;  %v899_v16 = vmul.f32 %v621_v39, %v621_v39  ;;  %v826_v32 = vadd.f32 %v825_v12, %v621_v39  ;;  %v902_v39 = vmul.f32 %v1524_v38, %v1524_v38 }
 0x118   : > { %778 = vst [vmem:[%s1480_s30 + $0xe8] sm:$0xff] %v1663_v40 }
 0x119   : > { %v962_v33 = vadd.f32 %v961_v20, %v899_v16  ;;  %v908_v16 = vmul.f32 %v1574_v6, %v1574_v6 }
 0x11d   : > { %v1714_v62 = vpop.f32.mrf.mxu2 }
 0x11e   : > { %v624_v59 = vpop.f32.mrf.mxu0  ;;  %v1676_v61 = vpop.f32.mrf.mxu1  ;;  %794 = vst [vmem:[%s1480_s30 + $0x168] sm:$0xff] %v1714_v62 }
 0x11f   : > { %763 = vst [vmem:[%s1480_s30 + $0x70] sm:$0xff] %v624_v59  ;;  %v900_v24 = vmul.f32 %v624_v59, %v624_v59  ;;  %v827_v34 = vadd.f32 %v826_v32, %v624_v59 }
 0x120   : > { %779 = vst [vmem:[%s1480_s30 + $0xf0] sm:$0xff] %v1676_v61 }
 0x121   : > { %v963_v37 = vadd.f32 %v962_v33, %v900_v24  ;;  %v909_v24 = vmul.f32 %v1583_v9, %v1583_v9 }
 0x126   : > { %v626_v35 = vpop.f32.mrf.mxu0  ;;  %v1689_v36 = vpop.f32.mrf.mxu1 }
 0x127   : > { %764 = vst [vmem:[%s1480_s30 + $0x78] sm:$0xff] %v626_v35  ;;  %v828_v41 = vadd.f32 %v827_v34, %v626_v35  ;;  %v901_v28 = vmul.f32 %v626_v35, %v626_v35  ;;  %v1734_v34 = vpop.f32.mrf.mxu2  ;;  %v1736_v35 = vpop.f32.mrf.mxu3 }
 0x128   : > { %780 = vst [vmem:[%s1480_s30 + $0xf8] sm:$0xff] %v1689_v36 }
 0x129   : > { %v829_v47 = vadd.f32 %v828_v41, %v1524_v38  ;;  %v964_v49 = vadd.f32 %v963_v37, %v901_v28  ;;  %v905_v38 = vmul.f32 %v1542_v54, %v1542_v54  ;;  %795 = vst [vmem:[%s1480_s30 + $0x170] sm:$0xff] %v1734_v34 }
 0x12a   : > { %807 = vst [vmem:[%s1480_s30 + $0x1d0] sm:$0xff] %v1736_v35 }
 0x12b   : > { %v830_v51 = vadd.f32 %v829_v47, %v1531_v42  ;;  %v965_v52 = vadd.f32 %v964_v49, %v902_v39  ;;  %v906_v42 = vmul.f32 %v1551_v60, %v1551_v60  ;;  %v912_v39 = vmul.f32 %v1622_v21, %v1622_v21 }
 0x12d   : > { %v831_v55 = vadd.f32 %v830_v51, %v1536_v48  ;;  %v966_v56 = vadd.f32 %v965_v52, %v903_v50  ;;  %v913_v50 = vmul.f32 %v1635_v25, %v1635_v25 }
 0x12f   : > { %v832_v58 = vadd.f32 %v831_v55, %v1542_v54  ;;  %v967_v59 = vadd.f32 %v966_v56, %v904_v53  ;;  %v907_v54 = vmul.f32 %v1565_v3, %v1565_v3  ;;  %v1754_v52 = vpop.f32.mrf.mxu2  ;;  %v1756_v53 = vpop.f32.mrf.mxu3  ;;  %v914_v55 = vmul.f32 %v1648_v29, %v1648_v29 }
 0x130   : > { %796 = vst [vmem:[%s1480_s30 + $0x178] sm:$0xff] %v1754_v52 }
 0x131   : > { %v833_v1 = vadd.f32 %v832_v58, %v1551_v60  ;;  %v968_v48 = vadd.f32 %v967_v59, %v905_v38  ;;  %808 = vst [vmem:[%s1480_s30 + $0x1d8] sm:$0xff] %v1756_v53 }
 0x133   : > { %v834_v8 = vadd.f32 %v833_v1, %v1565_v3  ;;  %v969_v12 = vadd.f32 %v968_v48, %v906_v42  ;;  %v910_v3 = vmul.f32 %v1596_v13, %v1596_v13  ;;  %v916_v42 = vmul.f32 %v1676_v61, %v1676_v61 }
 0x135   : > { %v970_v20 = vadd.f32 %v969_v12, %v907_v54  ;;  %v835_v32 = vadd.f32 %v834_v8, %v1574_v6  ;;  %v911_v6 = vmul.f32 %v1609_v17, %v1609_v17 }
 0x137   : > { %v836_v60 = vadd.f32 %v835_v32, %v1583_v9  ;;  %v971_v33 = vadd.f32 %v970_v20, %v908_v16  ;;  %v1774_v54 = vpop.f32.mrf.mxu3 }
 0x138   : > { %809 = vst [vmem:[%s1480_s30 + $0x1e0] sm:$0xff] %v1774_v54 }
 0x139   : > { %v837_v37 = vadd.f32 %v836_v60, %v1596_v13  ;;  %v972_v41 = vadd.f32 %v971_v33, %v909_v24  ;;  %v921_v60 = vmul.f32 %v1577_v7, %v1577_v7 }
 0x13b   : > { %v838_v9 = vadd.f32 %v837_v37, %v1609_v17  ;;  %v973_v28 = vadd.f32 %v972_v41, %v910_v3 }
 0x13d   : > { %v839_v47 = vadd.f32 %v838_v9, %v1622_v21  ;;  %v974_v49 = vadd.f32 %v973_v28, %v911_v6 }
 0x13f   : > { %v840_v13 = vadd.f32 %v839_v47, %v1635_v25  ;;  %v975_v51 = vadd.f32 %v974_v49, %v912_v39  ;;  %v915_v25 = vmul.f32 %v1663_v40, %v1663_v40  ;;  %v925_v47 = vmul.f32 %v1625_v22, %v1625_v22 }
 0x141   : > { %v841_v17 = vadd.f32 %v840_v13, %v1648_v29  ;;  %v976_v21 = vadd.f32 %v975_v51, %v913_v50  ;;  %v917_v29 = vmul.f32 %v1689_v36, %v1689_v36 }
 0x143   : > { %v977_v56 = vadd.f32 %v976_v21, %v914_v55  ;;  %v842_v38 = vadd.f32 %v841_v17, %v1663_v40  ;;  %v918_v40 = vmul.f32 %v1545_v57, %v1545_v57 }
 0x145   : > { %v978_v58 = vadd.f32 %v977_v56, %v915_v25  ;;  %v843_v59 = vadd.f32 %v842_v38, %v1676_v61  ;;  %v919_v61 = vmul.f32 %v1556_v63, %v1556_v63  ;;  %v929_v25 = vmul.f32 %v1679_v2, %v1679_v2 }
 0x147   : > { %v979_v1 = vadd.f32 %v978_v58, %v916_v42  ;;  %v844_v48 = vadd.f32 %v843_v59, %v1689_v36  ;;  %v920_v36 = vmul.f32 %v1568_v4, %v1568_v4 }
 0x149   : > { %v845_v8 = vadd.f32 %v844_v48, %v1545_v57  ;;  %v980_v12 = vadd.f32 %v979_v1, %v917_v29  ;;  %v1790_v57 = vpop.f32.mrf.mxu3 }
 0x14a   : > { %810 = vst [vmem:[%s1480_s30 + $0x1e8] sm:$0xff] %v1790_v57 }
 0x14b   : > { %v846_v16 = vadd.f32 %v845_v8, %v1556_v63  ;;  %v981_v20 = vadd.f32 %v980_v12, %v918_v40  ;;  %v922_v63 = vmul.f32 %v1586_v10, %v1586_v10 }
 0x14d   : > { %v847_v32 = vadd.f32 %v846_v16, %v1568_v4  ;;  %v982_v24 = vadd.f32 %v981_v20, %v919_v61  ;;  %v923_v4 = vmul.f32 %v1599_v14, %v1599_v14  ;;  %v933_v61 = vmul.f32 %v1754_v52, %v1754_v52 }
 0x14f   : > { %v848_v33 = vadd.f32 %v847_v32, %v1577_v7  ;;  %v983_v3 = vadd.f32 %v982_v24, %v920_v36  ;;  %v924_v7 = vmul.f32 %v1612_v18, %v1612_v18 }
 0x151   : > { %v849_v37 = vadd.f32 %v848_v33, %v1586_v10  ;;  %v984_v41 = vadd.f32 %v983_v3, %v921_v60  ;;  %v1806_v10 = vpop.f32.mrf.mxu3 }
 0x152   : > { %811 = vst [vmem:[%s1480_s30 + $0x1f0] sm:$0xff] %v1806_v10 }
 0x153   : > { %v850_v6 = vadd.f32 %v849_v37, %v1599_v14  ;;  %v985_v9 = vadd.f32 %v984_v41, %v922_v63  ;;  %v926_v14 = vmul.f32 %v1638_v26, %v1638_v26 }
 0x155   : > { %v986_v28 = vadd.f32 %v985_v9, %v923_v4  ;;  %v851_v39 = vadd.f32 %v850_v6, %v1612_v18  ;;  %v927_v18 = vmul.f32 %v1651_v30, %v1651_v30 }
 0x157   : > { %v852_v49 = vadd.f32 %v851_v39, %v1625_v22  ;;  %v987_v50 = vadd.f32 %v986_v28, %v924_v7  ;;  %v928_v22 = vmul.f32 %v1666_v45, %v1666_v45 }
 0x159   : > { %v853_v13 = vadd.f32 %v852_v49, %v1638_v26  ;;  %v988_v51 = vadd.f32 %v987_v50, %v925_v47  ;;  %v746_v26 = vpop.f32.mrf.mxu3 }
 0x15a   : > { %812 = vst [vmem:[%s1480_s30 + $0x1f8] sm:$0xff] %v746_v26 }
 0x15b   : > { %v854_v17 = vadd.f32 %v853_v13, %v1651_v30  ;;  %v989_v55 = vadd.f32 %v988_v51, %v926_v14  ;;  %v930_v30 = vmul.f32 %v1692_v43, %v1692_v43  ;;  %v945_v51 = vmul.f32 %v1756_v53, %v1756_v53 }
 0x15d   : > { %v855_v21 = vadd.f32 %v854_v17, %v1666_v45  ;;  %v990_v56 = vadd.f32 %v989_v55, %v927_v18  ;;  %v931_v45 = vmul.f32 %v1714_v62, %v1714_v62  ;;  %v946_v55 = vmul.f32 %v1774_v54, %v1774_v54 }
 0x15f   : > { %v856_v38 = vadd.f32 %v855_v21, %v1679_v2  ;;  %v991_v58 = vadd.f32 %v990_v56, %v928_v22  ;;  %v932_v2 = vmul.f32 %v1734_v34, %v1734_v34  ;;  %v947_v21 = vmul.f32 %v1790_v57, %v1790_v57 }
 0x161   : > { %v992_v59 = vadd.f32 %v991_v58, %v929_v25  ;;  %v857_v42 = vadd.f32 %v856_v38, %v1692_v43  ;;  %v934_v43 = vmul.f32 %v1588_v11, %v1588_v11  ;;  %v948_v38 = vmul.f32 %v1806_v10, %v1806_v10 }
 0x162   : > { %v949_v58 = vmul.f32 %v746_v26, %v746_v26 }
 0x163   : > { %v993_v1 = vadd.f32 %v992_v59, %v930_v30  ;;  %v858_v48 = vadd.f32 %v857_v42, %v1714_v62  ;;  %v935_v62 = vmul.f32 %v1601_v15, %v1601_v15 }
 0x165   : > { %v994_v29 = vadd.f32 %v993_v1, %v931_v45  ;;  %v859_v40 = vadd.f32 %v858_v48, %v1734_v34  ;;  %v936_v34 = vmul.f32 %v1614_v19, %v1614_v19 }
 0x167   : > { %v995_v8 = vadd.f32 %v994_v29, %v932_v2  ;;  %v860_v12 = vadd.f32 %v859_v40, %v1754_v52  ;;  %v937_v52 = vmul.f32 %v1627_v23, %v1627_v23 }
 0x169   : > { %v861_v16 = vadd.f32 %v860_v12, %v1588_v11  ;;  %v996_v20 = vadd.f32 %v995_v8, %v933_v61  ;;  %v938_v11 = vmul.f32 %v1640_v27, %v1640_v27 }
 0x16b   : > { %v862_v36 = vadd.f32 %v861_v16, %v1601_v15  ;;  %v997_v32 = vadd.f32 %v996_v20, %v934_v43  ;;  %v939_v15 = vmul.f32 %v1653_v31, %v1653_v31 }
 0x16d   : > { %v863_v24 = vadd.f32 %v862_v36, %v1614_v19  ;;  %v998_v60 = vadd.f32 %v997_v32, %v935_v62  ;;  %v940_v19 = vmul.f32 %v1668_v46, %v1668_v46 }
 0x16f   : > { %v864_v33 = vadd.f32 %v863_v24, %v1627_v23  ;;  %v999_v3 = vadd.f32 %v998_v60, %v936_v34  ;;  %v941_v23 = vmul.f32 %v1681_v5, %v1681_v5 }
 0x171   : > { %v865_v63 = vadd.f32 %v864_v33, %v1640_v27  ;;  %v1000_v37 = vadd.f32 %v999_v3, %v937_v52  ;;  %v942_v27 = vmul.f32 %v1694_v44, %v1694_v44 }
 0x173   : > { %v866_v41 = vadd.f32 %v865_v63, %v1653_v31  ;;  %v1001_v4 = vadd.f32 %v1000_v37, %v938_v11  ;;  %v943_v31 = vmul.f32 %v1716_v0, %v1716_v0 }
 0x175   : > { %v1002_v6 = vadd.f32 %v1001_v4, %v939_v15  ;;  %v867_v9 = vadd.f32 %v866_v41, %v1668_v46  ;;  %v944_v46 = vmul.f32 %v1736_v35, %v1736_v35 }
 0x177   : > { %v868_v7 = vadd.f32 %v867_v9, %v1681_v5  ;;  %v1003_v28 = vadd.f32 %v1002_v6, %v940_v19 }
 0x179   : > { %v869_v39 = vadd.f32 %v868_v7, %v1694_v44  ;;  %v1004_v47 = vadd.f32 %v1003_v28, %v941_v23 }
 0x17b   : > { %v870_v49 = vadd.f32 %v869_v39, %v1716_v0  ;;  %v1005_v50 = vadd.f32 %v1004_v47, %v942_v27 }
 0x17d   : > { %v871_v14 = vadd.f32 %v870_v49, %v1736_v35  ;;  %v1006_v13 = vadd.f32 %v1005_v50, %v943_v31 }
 0x17f   : > { %v872_v5 = vadd.f32 %v871_v14, %v1756_v53  ;;  %v1007_v18 = vadd.f32 %v1006_v13, %v944_v46 }
 0x181   : > { %v1008_v44 = vadd.f32 %v1007_v18, %v945_v51  ;;  %v873_v17 = vadd.f32 %v872_v5, %v1774_v54 }
 0x183   : > { %v1009_v0 = vadd.f32 %v1008_v44, %v946_v55  ;;  %v874_v22 = vadd.f32 %v873_v17, %v1790_v57  ;;  %v813_v57 = vld [vmem:[%s1904_s3] sm:$0x1] }
 0x185   : > { %v1010_v35 = vadd.f32 %v1009_v0, %v947_v21  ;;  %v875_v56 = vadd.f32 %v874_v22, %v1806_v10  ;;  %v885_v10 = vld [vmem:[%s1905_s4] sm:$0x1] }
 0x187   : > { %v1011_v53 = vadd.f32 %v1010_v35, %v948_v38  ;;  %v876_v25 = vadd.f32 %v875_v56, %v746_v26 }
 0x189   : > { %v877_v59 = vrot.slane %v876_v25, 4  ;;  %v1012_v42 = vadd.f32 %v1011_v53, %v949_v58 }
 0x18b   : > { %v878_v30 = vadd.f32 %v877_v59, %v876_v25  ;;  %v1013_v1 = vrot.slane %v1012_v42, 4 }
 0x18d   : > { %v879_v54 = vrot.slane %v878_v30, 2  ;;  %v1014_v48 = vadd.f32 %v1013_v1, %v1012_v42 }
 0x18f   : > { %v880_v45 = vadd.f32 %v879_v54, %v878_v30  ;;  %v1015_v29 = vrot.slane %v1014_v48, 2 }
 0x191   : > { %v881_v40 = vrot.slane %v880_v45, 1  ;;  %v1016_v2 = vadd.f32 %v1015_v29, %v1014_v48 }
 0x193   : > { %v882_v8 = vadd.f32 %v881_v40, %v880_v45  ;;  %v1017_v12 = vrot.slane %v1016_v2, 1 }
 0x195   : > { %v883_v26 = vadd.f32 %v882_v8, %v813_v57  ;;  %v1018_v61 = vadd.f32 %v1017_v12, %v1016_v2 }
 0x197   : > { %884 = vst [vmem:[%s1904_s3] sm:$0x1] %v883_v26  ;;  %v1019_v43 = vadd.f32 %v1018_v61, %v885_v10 }
 0x199   : > { %1020 = vst [vmem:[%s1905_s4] sm:$0x1] %v1019_v43 }
 0x19a PF: > { %s15_s17 = sadd.s32 1, %s1421_s17   ;;  %s1906_s15 = smov %s1417_s16 }
 0x19b   : > { %p12_p6 = scmp.ge.s32.totalorder %s15_s17, 6   ;;  %s1907_s16 = smov %s1909_s18 }
 0x19d   :  { %14 = sbr.rel (!%p12_p6) target bundleno = 2 (0x2), region = 81 }

// kernel: generator128_forward.15
= control target key start
LH: loop header
LB: loop body
LE: loop exit
PB: predicated region body
PF: predicated region fallthrough
CT: control target
= control target key end

     0   :  { %s1516_s15 = smov 0   ;;  %s1518_s16 = smov 0   ;;  %s2017_s0 = inlined_call_operand.vmem [shape: bf16[4,2048,64], index: 0, kind: input, shape index: {}]   ;;  %s2018_s1 = inlined_call_operand.vmem [shape: bf16[4,64,128], index: 1, kind: input, shape index: {}]   ;;  %s2019_s2 = inlined_call_operand.vmem [shape: f32[4,2048,128], index: 2, kind: output, shape index: {0}]   ;;  %s2020_s3 = inlined_call_operand.vmem [shape: f32[1,128], index: 3, kind: output, shape index: {1}]   ;;  %s2021_s4 = inlined_call_operand.vmem [shape: f32[1,128], index: 4, kind: output, shape index: {2}]  }
   0x1   :  { %s1520_s17 = smov 0   ;;  %s1522_s18 = smov 0  }
   0x2   :  { %s1524_s19 = smov 0  }
   0x3 LB: > { %s24_s20 = sadd.s32 1, %s1480_s17  ;;  %s27_s21 = sadd.s32 1, %s1484_s18  ;;  %s1488_s19 = sphi %s1524_s19, %s15_s19   ;;  %s1484_s18 = sphi %s1522_s18, %s2025_s18   ;;  %s1480_s17 = sphi %s1520_s17, %s2024_s17   ;;  %s1476_s16 = sphi %s1518_s16, %s2023_s16   ;;  %s1472_s15 = sphi %s1516_s15, %s2022_s15  }
   0x4   : > { %p25_p0 = scmp.ge.s32.totalorder %s24_s20, 4  ;;  %p1173_p1 = scmp.ge.s32.totalorder %s1488_s19, 1 }
   0x5   : > { %p188_p2 = scmp.lt.s32.totalorder %s1488_s19, 17 }
   0x6   : > { %s2027_s20 = smov (%p25_p0, %s24_s20), 0  ;;  %s2029_s21 = smov (!%p25_p0, %s27_s21), %s1484_s18 }
   0x7   : > { %p189_p3 = pnand %p1173_p1, %p188_p2  ;;  %p29_p4 = scmp.ge.s32.totalorder %s2029_s21, 4 }
   0x8   : > { %s1174_s22 = sshll.u32 (!%p189_p3), %s1472_s15, 6  ;;  %p228_p5 = scmp.lt.s32.totalorder (!%p189_p3), %s1476_s16, 3 }
   0x9   : > { %s2031_s21 = smov (%p29_p4, %s2029_s21), 0  ;;  %192 = sbr.rel (%p189_p3) target bundleno = 404 (0x194), region = 28 }
   0xa   : > { %p230_p6 = scmp.lt.s32.totalorder (!%p189_p3), %s1174_s22, 255  ;;  %p253_p7 = scmp.eq.s32.totalorder (!%p189_p3), %s1476_s16, 0 }
   0xb   : > { %p254_p8 = scmp.eq.s32.totalorder (!%p189_p3), %s1472_s15, 0 }
   0xd   : > { %p255_p9 = pnand (!%p189_p3), %p254_p8, %p253_p7 }
   0xe   : > { %s2033_s16 = smov (!%p228_p5, %s1476_s16), 3  ;;  %s2035_s22 = smov (!%p230_p6, %s1174_s22), 255 }
   0xf   : > { %s1175_s23 = sshll.u32 %s2033_s16, 8  ;;  %s1360_s24 = sshll.u32 %s2033_s16, 5 }
  0x10   : > { %s233_s25 = sadd.s32 %s1175_s23, %s2035_s22  ;;  %s241_s28 = scalar_lea.vmem %s2018_s1, %s1360_s24 }
  0x11   : > { %s1176_s29 = sshll.u32 %s233_s25, 2  ;;  %s1181_s30 = sshll.u32 %s233_s25, 3 }
  0x12   : > { %s1560_s7 = scalar_lea.vmem %s2017_s0, %s1176_s29  ;;  %s1565_s10 = scalar_lea.vmem %s2019_s2, %s1181_s30 }
  0x13   : > { %258 = sbr.rel (%p255_p9) target bundleno = 27 (0x1b), region = 32 }
  0x18   : > { %v1490_v0 = vmov 0.0  }
  0x19   : > { %259 = vst [vmem:[%s2020_s3] sm:$0x1] %v1490_v0 }
  0x1a   : > { %260 = vst [vmem:[%s2021_s4] sm:$0x1] %v1490_v0 }
  0x1b PF: > { %v1396_v1 = vld [vmem:[%s241_s28 + $0x18] sm:$0xff]  ;;  %v1395_v2 = vld [vmem:[%s241_s28 + $0x10] sm:$0xff]  ;;  %v1394_v3 = vld [vmem:[%s241_s28 + $0x8] sm:$0xff]  ;;  %vm517_vm0 = vcmask 523264  }
  0x1c   : > { %618 = vmatpush.bf16.msra.mxu0 %v1396_v1  ;;  %1397 = vmatpush.bf16.msra.mxu1 %v1396_v1  ;;  %v1393_v4 = vld [vmem:[%s241_s28] sm:$0xff]  ;;  %v1362_v7 = vld [vmem:[%s1560_s7 + $0x8] sm:$0xff]  ;;  %v1363_v10 = vld [vmem:[%s1560_s7 + $0x10] sm:$0xff] }
  0x1d   : > { %1398 = vmatpush.bf16.msra.mxu2 %v1396_v1  ;;  %1399 = vmatpush.bf16.msra.mxu3 %v1396_v1  ;;  %v1361_v5 = vld [vmem:[%s1560_s7] sm:$0xff]  ;;  %v1370_v8 = vld [vmem:[%s1560_s7 + $0x48] sm:$0xff]  ;;  %v1371_v11 = vld [vmem:[%s1560_s7 + $0x50] sm:$0xff] }
  0x1e   : > { %v1369_v6 = vld [vmem:[%s1560_s7 + $0x40] sm:$0xff]  ;;  %v1378_v12 = vld [vmem:[%s1560_s7 + $0x88] sm:$0xff]  ;;  %v1364_v13 = vld [vmem:[%s1560_s7 + $0x18] sm:$0xff] }
  0x1f   : > { %v1377_v9 = vld [vmem:[%s1560_s7 + $0x80] sm:$0xff]  ;;  %v1372_v14 = vld [vmem:[%s1560_s7 + $0x58] sm:$0xff]  ;;  %v1379_v15 = vld [vmem:[%s1560_s7 + $0x90] sm:$0xff] }
  0x20   : > { %619 = vmatpush.bf16.msra.mxu0 %v1395_v2  ;;  %1400 = vmatpush.bf16.msra.mxu1 %v1395_v2  ;;  %v1385_v16 = vld [vmem:[%s1560_s7 + $0xc0] sm:$0xff]  ;;  %v1380_v19 = vld [vmem:[%s1560_s7 + $0x98] sm:$0xff]  ;;  %v1386_v20 = vld [vmem:[%s1560_s7 + $0xc8] sm:$0xff] }
  0x21   : > { %1401 = vmatpush.bf16.msra.mxu2 %v1395_v2  ;;  %1402 = vmatpush.bf16.msra.mxu3 %v1395_v2  ;;  %v1365_v17 = vld [vmem:[%s1560_s7 + $0x20] sm:$0xff]  ;;  %v1366_v21 = vld [vmem:[%s1560_s7 + $0x28] sm:$0xff]  ;;  %v1387_v24 = vld [vmem:[%s1560_s7 + $0xd0] sm:$0xff] }
  0x22   : > { %v1373_v18 = vld [vmem:[%s1560_s7 + $0x60] sm:$0xff]  ;;  %v1374_v22 = vld [vmem:[%s1560_s7 + $0x68] sm:$0xff]  ;;  %v1367_v25 = vld [vmem:[%s1560_s7 + $0x30] sm:$0xff] }
  0x23   : > { %v1381_v23 = vld [vmem:[%s1560_s7 + $0xa0] sm:$0xff]  ;;  %v1375_v26 = vld [vmem:[%s1560_s7 + $0x70] sm:$0xff]  ;;  %v1382_v27 = vld [vmem:[%s1560_s7 + $0xa8] sm:$0xff] }
  0x24   : > { %620 = vmatpush.bf16.msra.mxu0 %v1394_v3  ;;  %1403 = vmatpush.bf16.msra.mxu1 %v1394_v3  ;;  %v1388_v28 = vld [vmem:[%s1560_s7 + $0xd8] sm:$0xff]  ;;  %v1383_v31 = vld [vmem:[%s1560_s7 + $0xb0] sm:$0xff]  ;;  %v1389_v32 = vld [vmem:[%s1560_s7 + $0xe0] sm:$0xff] }
  0x25   : > { %1404 = vmatpush.bf16.msra.mxu2 %v1394_v3  ;;  %1405 = vmatpush.bf16.msra.mxu3 %v1394_v3  ;;  %v1368_v29 = vld [vmem:[%s1560_s7 + $0x38] sm:$0xff]  ;;  %v1390_v36 = vld [vmem:[%s1560_s7 + $0xe8] sm:$0xff]  ;;  %v1391_v48 = vld [vmem:[%s1560_s7 + $0xf0] sm:$0xff] }
  0x26   : > { %v1376_v30 = vld [vmem:[%s1560_s7 + $0x78] sm:$0xff] }
  0x27   : > { %v1384_v35 = vld [vmem:[%s1560_s7 + $0xb8] sm:$0xff] }
  0x28   : > { %621 = vmatpush.bf16.msra.mxu0 %v1393_v4  ;;  %1406 = vmatpush.bf16.msra.mxu1 %v1393_v4  ;;  %v1392_v61 = vld [vmem:[%s1560_s7 + $0xf8] sm:$0xff] }
  0x29   : > { %1407 = vmatpush.bf16.msra.mxu2 %v1393_v4  ;;  %1408 = vmatpush.bf16.msra.mxu3 %v1393_v4 }
  0x2b   : > { %1326 = vmatmul.msk.bf16.vlgmr.msra.gmra.mxu0 %vm517_vm0, %v1361_v5  ;;  %1334 = vmatmul.msk.bf16.vlgmr.msra.gmra.mxu1 %vm517_vm0, %v1369_v6 }
  0x2c   : > { %1342 = vmatmul.msk.bf16.vlgmr.msra.gmra.mxu2 %vm517_vm0, %v1377_v9  ;;  %1350 = vmatmul.msk.bf16.vlgmr.msra.gmra.mxu3 %vm517_vm0, %v1385_v16 }
  0x3b   : > { %1327 = vmatmul.msk.bf16.gmra.mxu0 %vm517_vm0, %v1362_v7  ;;  %1335 = vmatmul.msk.bf16.gmra.mxu1 %vm517_vm0, %v1370_v8 }
  0x3c   : > { %1343 = vmatmul.msk.bf16.gmra.mxu2 %vm517_vm0, %v1378_v12  ;;  %1351 = vmatmul.msk.bf16.gmra.mxu3 %vm517_vm0, %v1386_v20 }
  0x4b   : > { %1328 = vmatmul.msk.bf16.gmra.mxu0 %vm517_vm0, %v1363_v10  ;;  %1336 = vmatmul.msk.bf16.gmra.mxu1 %vm517_vm0, %v1371_v11 }
  0x4c   : > { %1344 = vmatmul.msk.bf16.gmra.mxu2 %vm517_vm0, %v1379_v15  ;;  %1352 = vmatmul.msk.bf16.gmra.mxu3 %vm517_vm0, %v1387_v24 }
  0x5b   : > { %1329 = vmatmul.msk.bf16.gmra.mxu0 %vm517_vm0, %v1364_v13  ;;  %1337 = vmatmul.msk.bf16.gmra.mxu1 %vm517_vm0, %v1372_v14 }
  0x5c   : > { %1345 = vmatmul.msk.bf16.gmra.mxu2 %vm517_vm0, %v1380_v19  ;;  %1353 = vmatmul.msk.bf16.gmra.mxu3 %vm517_vm0, %v1388_v28 }
  0x6b   : > { %1330 = vmatmul.msk.bf16.gmra.mxu0 %vm517_vm0, %v1365_v17  ;;  %1338 = vmatmul.msk.bf16.gmra.mxu1 %vm517_vm0, %v1373_v18 }
  0x6c   : > { %1346 = vmatmul.msk.bf16.gmra.mxu2 %vm517_vm0, %v1381_v23  ;;  %1354 = vmatmul.msk.bf16.gmra.mxu3 %vm517_vm0, %v1389_v32 }
  0x7b   : > { %1331 = vmatmul.msk.bf16.gmra.mxu0 %vm517_vm0, %v1366_v21  ;;  %1339 = vmatmul.msk.bf16.gmra.mxu1 %vm517_vm0, %v1374_v22 }
  0x7c   : > { %1347 = vmatmul.msk.bf16.gmra.mxu2 %vm517_vm0, %v1382_v27  ;;  %1355 = vmatmul.msk.bf16.gmra.mxu3 %vm517_vm0, %v1390_v36 }
  0x8b   : > { %1332 = vmatmul.msk.bf16.gmra.mxu0 %vm517_vm0, %v1367_v25  ;;  %1340 = vmatmul.msk.bf16.gmra.mxu1 %vm517_vm0, %v1375_v26 }
  0x8c   : > { %1348 = vmatmul.msk.bf16.gmra.mxu2 %vm517_vm0, %v1383_v31  ;;  %1356 = vmatmul.msk.bf16.gmra.mxu3 %vm517_vm0, %v1391_v48 }
  0x9b   : > { %1333 = vmatmul.msk.bf16.gmra.mxu0 %vm517_vm0, %v1368_v29  ;;  %1341 = vmatmul.msk.bf16.gmra.mxu1 %vm517_vm0, %v1376_v30 }
  0x9c   : > { %1349 = vmatmul.msk.bf16.gmra.mxu2 %vm517_vm0, %v1384_v35  ;;  %1357 = vmatmul.msk.bf16.gmra.mxu3 %vm517_vm0, %v1392_v61 }
  0xa8   : > { %v623_v33 = vpop.f32.mrf.mxu0  ;;  %v1630_v34 = vpop.f32.mrf.mxu1 }
  0xa9   : > { %783 = vst [vmem:[%s1565_s10] sm:$0xff] %v623_v33  ;;  %v920_v39 = vmul.f32 %v623_v33, %v623_v33 }
  0xaa   : > { %799 = vst [vmem:[%s1565_s10 + $0x80] sm:$0xff] %v1630_v34 }
  0xaf   : > { %v1654_v53 = vpop.f32.mrf.mxu2  ;;  %v1698_v7 = vpop.f32.mrf.mxu3 }
  0xb0   : > { %v625_v37 = vpop.f32.mrf.mxu0  ;;  %v1639_v38 = vpop.f32.mrf.mxu1  ;;  %815 = vst [vmem:[%s1565_s10 + $0x100] sm:$0xff] %v1654_v53 }
  0xb1   : > { %784 = vst [vmem:[%s1565_s10 + $0x8] sm:$0xff] %v625_v37  ;;  %v848_v40 = vadd.f32 %v625_v37, %v623_v33  ;;  %v921_v41 = vmul.f32 %v625_v37, %v625_v37 }
  0xb2   : > { %800 = vst [vmem:[%s1565_s10 + $0x88] sm:$0xff] %v1639_v38 }
  0xb3   : > { %v984_v42 = vadd.f32 %v921_v41, %v920_v39  ;;  %831 = vst [vmem:[%s1565_s10 + $0x180] sm:$0xff] %v1698_v7 }
  0xb7   : > { %v1665_v59 = vpop.f32.mrf.mxu2  ;;  %v1711_v11 = vpop.f32.mrf.mxu3 }
  0xb8   : > { %v628_v43 = vpop.f32.mrf.mxu0  ;;  %v1644_v44 = vpop.f32.mrf.mxu1  ;;  %816 = vst [vmem:[%s1565_s10 + $0x108] sm:$0xff] %v1665_v59 }
  0xb9   : > { %785 = vst [vmem:[%s1565_s10 + $0x10] sm:$0xff] %v628_v43  ;;  %v849_v45 = vadd.f32 %v848_v40, %v628_v43  ;;  %v922_v46 = vmul.f32 %v628_v43, %v628_v43 }
  0xba   : > { %801 = vst [vmem:[%s1565_s10 + $0x90] sm:$0xff] %v1644_v44 }
  0xbb   : > { %v985_v47 = vadd.f32 %v984_v42, %v922_v46  ;;  %832 = vst [vmem:[%s1565_s10 + $0x188] sm:$0xff] %v1711_v11 }
  0xbf   : > { %v1678_v0 = vpop.f32.mrf.mxu2  ;;  %v1724_v15 = vpop.f32.mrf.mxu3 }
  0xc0   : > { %v630_v49 = vpop.f32.mrf.mxu0  ;;  %v1651_v50 = vpop.f32.mrf.mxu1  ;;  %817 = vst [vmem:[%s1565_s10 + $0x110] sm:$0xff] %v1678_v0 }
  0xc1   : > { %786 = vst [vmem:[%s1565_s10 + $0x18] sm:$0xff] %v630_v49  ;;  %v850_v51 = vadd.f32 %v849_v45, %v630_v49  ;;  %v923_v52 = vmul.f32 %v630_v49, %v630_v49 }
  0xc2   : > { %802 = vst [vmem:[%s1565_s10 + $0x98] sm:$0xff] %v1651_v50 }
  0xc3   : > { %v986_v54 = vadd.f32 %v985_v47, %v923_v52  ;;  %833 = vst [vmem:[%s1565_s10 + $0x190] sm:$0xff] %v1724_v15 }
  0xc7   : > { %v1687_v3 = vpop.f32.mrf.mxu2  ;;  %v1737_v19 = vpop.f32.mrf.mxu3 }
  0xc8   : > { %v633_v55 = vpop.f32.mrf.mxu0  ;;  %v1660_v56 = vpop.f32.mrf.mxu1  ;;  %818 = vst [vmem:[%s1565_s10 + $0x118] sm:$0xff] %v1687_v3 }
  0xc9   : > { %787 = vst [vmem:[%s1565_s10 + $0x20] sm:$0xff] %v633_v55  ;;  %v1663_v57 = vadd.f32 %v850_v51, %v633_v55  ;;  %v924_v58 = vmul.f32 %v633_v55, %v633_v55 }
  0xca   : > { %803 = vst [vmem:[%s1565_s10 + $0xa0] sm:$0xff] %v1660_v56 }
  0xcb   : > { %v1669_v60 = vadd.f32 %v986_v54, %v924_v58  ;;  %834 = vst [vmem:[%s1565_s10 + $0x198] sm:$0xff] %v1737_v19 }
  0xcf   : > { %v1696_v6 = vpop.f32.mrf.mxu2  ;;  %v1750_v23 = vpop.f32.mrf.mxu3 }
  0xd0   : > { %v635_v62 = vpop.f32.mrf.mxu0  ;;  %v1675_v63 = vpop.f32.mrf.mxu1  ;;  %819 = vst [vmem:[%s1565_s10 + $0x120] sm:$0xff] %v1696_v6 }
  0xd1   : > { %788 = vst [vmem:[%s1565_s10 + $0x28] sm:$0xff] %v635_v62  ;;  %v925_v28 = vmul.f32 %v635_v62, %v635_v62  ;;  %v852_v29 = vadd.f32 %v1663_v57, %v635_v62 }
  0xd2   : > { %804 = vst [vmem:[%s1565_s10 + $0xa8] sm:$0xff] %v1675_v63 }
  0xd3   : > { %835 = vst [vmem:[%s1565_s10 + $0x1a0] sm:$0xff] %v1750_v23  ;;  %v988_v31 = vadd.f32 %v1669_v60, %v925_v28 }
  0xd7   : > { %v1709_v10 = vpop.f32.mrf.mxu2  ;;  %v1763_v27 = vpop.f32.mrf.mxu3 }
  0xd8   : > { %v638_v1 = vpop.f32.mrf.mxu0  ;;  %v1684_v2 = vpop.f32.mrf.mxu1  ;;  %820 = vst [vmem:[%s1565_s10 + $0x128] sm:$0xff] %v1709_v10 }
  0xd9   : > { %789 = vst [vmem:[%s1565_s10 + $0x30] sm:$0xff] %v638_v1  ;;  %v926_v30 = vmul.f32 %v638_v1, %v638_v1  ;;  %v853_v32 = vadd.f32 %v852_v29, %v638_v1 }
  0xda   : > { %805 = vst [vmem:[%s1565_s10 + $0xb0] sm:$0xff] %v1684_v2 }
  0xdb   : > { %836 = vst [vmem:[%s1565_s10 + $0x1a8] sm:$0xff] %v1763_v27  ;;  %v989_v37 = vadd.f32 %v988_v31, %v926_v30 }
  0xdf   : > { %v1722_v14 = vpop.f32.mrf.mxu2  ;;  %v1778_v42 = vpop.f32.mrf.mxu3 }
  0xe0   : > { %v640_v4 = vpop.f32.mrf.mxu0  ;;  %v1693_v5 = vpop.f32.mrf.mxu1  ;;  %821 = vst [vmem:[%s1565_s10 + $0x130] sm:$0xff] %v1722_v14 }
  0xe1   : > { %790 = vst [vmem:[%s1565_s10 + $0x38] sm:$0xff] %v640_v4  ;;  %v927_v33 = vmul.f32 %v640_v4, %v640_v4  ;;  %v854_v39 = vadd.f32 %v853_v32, %v640_v4 }
  0xe2   : > { %806 = vst [vmem:[%s1565_s10 + $0xb8] sm:$0xff] %v1693_v5 }
  0xe3   : > { %v990_v43 = vadd.f32 %v989_v37, %v927_v33  ;;  %837 = vst [vmem:[%s1565_s10 + $0x1b0] sm:$0xff] %v1778_v42 }
  0xe7   : > { %v1735_v18 = vpop.f32.mrf.mxu2  ;;  %v1791_v1 = vpop.f32.mrf.mxu3 }
  0xe8   : > { %v643_v8 = vpop.f32.mrf.mxu0  ;;  %v1706_v9 = vpop.f32.mrf.mxu1  ;;  %822 = vst [vmem:[%s1565_s10 + $0x138] sm:$0xff] %v1735_v18 }
  0xe9   : > { %791 = vst [vmem:[%s1565_s10 + $0x40] sm:$0xff] %v643_v8  ;;  %v928_v40 = vmul.f32 %v643_v8, %v643_v8  ;;  %v855_v45 = vadd.f32 %v854_v39, %v643_v8 }
  0xea   : > { %807 = vst [vmem:[%s1565_s10 + $0xc0] sm:$0xff] %v1706_v9 }
  0xeb   : > { %v991_v47 = vadd.f32 %v990_v43, %v928_v40  ;;  %838 = vst [vmem:[%s1565_s10 + $0x1b8] sm:$0xff] %v1791_v1 }
  0xef   : > { %v1748_v22 = vpop.f32.mrf.mxu2  ;;  %v1804_v40 = vpop.f32.mrf.mxu3 }
  0xf0   : > { %v645_v12 = vpop.f32.mrf.mxu0  ;;  %v1719_v13 = vpop.f32.mrf.mxu1  ;;  %823 = vst [vmem:[%s1565_s10 + $0x140] sm:$0xff] %v1748_v22 }
  0xf1   : > { %792 = vst [vmem:[%s1565_s10 + $0x48] sm:$0xff] %v645_v12  ;;  %v929_v46 = vmul.f32 %v645_v12, %v645_v12  ;;  %v856_v48 = vadd.f32 %v855_v45, %v645_v12 }
  0xf2   : > { %808 = vst [vmem:[%s1565_s10 + $0xc8] sm:$0xff] %v1719_v13 }
  0xf3   : > { %v992_v51 = vadd.f32 %v991_v47, %v929_v46  ;;  %839 = vst [vmem:[%s1565_s10 + $0x1c0] sm:$0xff] %v1804_v40  ;;  %v937_v46 = vmul.f32 %v1639_v38, %v1639_v38 }
  0xf7   : > { %v1761_v26 = vpop.f32.mrf.mxu2 }
  0xf8   : > { %v648_v16 = vpop.f32.mrf.mxu0  ;;  %v1732_v17 = vpop.f32.mrf.mxu1  ;;  %824 = vst [vmem:[%s1565_s10 + $0x148] sm:$0xff] %v1761_v26 }
  0xf9   : > { %793 = vst [vmem:[%s1565_s10 + $0x50] sm:$0xff] %v648_v16  ;;  %v930_v49 = vmul.f32 %v648_v16, %v648_v16  ;;  %v857_v52 = vadd.f32 %v856_v48, %v648_v16 }
  0xfa   : > { %809 = vst [vmem:[%s1565_s10 + $0xd0] sm:$0xff] %v1732_v17 }
  0xfb   : > { %v993_v58 = vadd.f32 %v992_v51, %v930_v49  ;;  %v938_v49 = vmul.f32 %v1644_v44, %v1644_v44 }
  0xff   : > { %v1776_v41 = vpop.f32.mrf.mxu2 }
 0x100   : > { %v650_v20 = vpop.f32.mrf.mxu0  ;;  %v1745_v21 = vpop.f32.mrf.mxu1  ;;  %825 = vst [vmem:[%s1565_s10 + $0x150] sm:$0xff] %v1776_v41 }
 0x101   : > { %794 = vst [vmem:[%s1565_s10 + $0x58] sm:$0xff] %v650_v20  ;;  %v931_v54 = vmul.f32 %v650_v20, %v650_v20  ;;  %v858_v60 = vadd.f32 %v857_v52, %v650_v20 }
 0x102   : > { %810 = vst [vmem:[%s1565_s10 + $0xd8] sm:$0xff] %v1745_v21 }
 0x103   : > { %v994_v4 = vadd.f32 %v993_v58, %v931_v54 }
 0x107   : > { %v1789_v62 = vpop.f32.mrf.mxu2 }
 0x108   : > { %v653_v24 = vpop.f32.mrf.mxu0  ;;  %v1758_v25 = vpop.f32.mrf.mxu1  ;;  %826 = vst [vmem:[%s1565_s10 + $0x158] sm:$0xff] %v1789_v62 }
 0x109   : > { %795 = vst [vmem:[%s1565_s10 + $0x60] sm:$0xff] %v653_v24  ;;  %v932_v61 = vmul.f32 %v653_v24, %v653_v24  ;;  %v859_v8 = vadd.f32 %v858_v60, %v653_v24  ;;  %v1826_v60 = vpop.f32.mrf.mxu3 }
 0x10a   : > { %811 = vst [vmem:[%s1565_s10 + $0xe0] sm:$0xff] %v1758_v25 }
 0x10b   : > { %v995_v16 = vadd.f32 %v994_v4, %v932_v61  ;;  %840 = vst [vmem:[%s1565_s10 + $0x1c8] sm:$0xff] %v1826_v60 }
 0x10f   : > { %v1802_v39 = vpop.f32.mrf.mxu2 }
 0x110   : > { %v655_v35 = vpop.f32.mrf.mxu0  ;;  %v1773_v36 = vpop.f32.mrf.mxu1  ;;  %827 = vst [vmem:[%s1565_s10 + $0x160] sm:$0xff] %v1802_v39 }
 0x111   : > { %796 = vst [vmem:[%s1565_s10 + $0x68] sm:$0xff] %v655_v35  ;;  %v933_v12 = vmul.f32 %v655_v35, %v655_v35  ;;  %v860_v28 = vadd.f32 %v859_v8, %v655_v35  ;;  %v936_v35 = vmul.f32 %v1630_v34, %v1630_v34 }
 0x112   : > { %812 = vst [vmem:[%s1565_s10 + $0xe8] sm:$0xff] %v1773_v36 }
 0x113   : > { %v996_v29 = vadd.f32 %v995_v16, %v933_v12  ;;  %v942_v12 = vmul.f32 %v1684_v2, %v1684_v2 }
 0x117   : > { %v1824_v58 = vpop.f32.mrf.mxu2 }
 0x118   : > { %v658_v55 = vpop.f32.mrf.mxu0  ;;  %v1786_v57 = vpop.f32.mrf.mxu1  ;;  %828 = vst [vmem:[%s1565_s10 + $0x168] sm:$0xff] %v1824_v58 }
 0x119   : > { %797 = vst [vmem:[%s1565_s10 + $0x70] sm:$0xff] %v658_v55  ;;  %v934_v20 = vmul.f32 %v658_v55, %v658_v55  ;;  %v861_v30 = vadd.f32 %v860_v28, %v658_v55 }
 0x11a   : > { %813 = vst [vmem:[%s1565_s10 + $0xf0] sm:$0xff] %v1786_v57 }
 0x11b   : > { %v997_v33 = vadd.f32 %v996_v29, %v934_v20  ;;  %v943_v20 = vmul.f32 %v1693_v5, %v1693_v5 }
 0x120   : > { %v660_v31 = vpop.f32.mrf.mxu0  ;;  %v1799_v32 = vpop.f32.mrf.mxu1 }
 0x121   : > { %798 = vst [vmem:[%s1565_s10 + $0x78] sm:$0xff] %v660_v31  ;;  %v862_v37 = vadd.f32 %v861_v30, %v660_v31  ;;  %v935_v24 = vmul.f32 %v660_v31, %v660_v31  ;;  %v1844_v30 = vpop.f32.mrf.mxu2  ;;  %v1846_v31 = vpop.f32.mrf.mxu3 }
 0x122   : > { %814 = vst [vmem:[%s1565_s10 + $0xf8] sm:$0xff] %v1799_v32 }
 0x123   : > { %v863_v43 = vadd.f32 %v862_v37, %v1630_v34  ;;  %v998_v45 = vadd.f32 %v997_v33, %v935_v24  ;;  %v939_v34 = vmul.f32 %v1651_v50, %v1651_v50  ;;  %829 = vst [vmem:[%s1565_s10 + $0x170] sm:$0xff] %v1844_v30 }
 0x124   : > { %841 = vst [vmem:[%s1565_s10 + $0x1d0] sm:$0xff] %v1846_v31 }
 0x125   : > { %v864_v47 = vadd.f32 %v863_v43, %v1639_v38  ;;  %v999_v48 = vadd.f32 %v998_v45, %v936_v35  ;;  %v940_v38 = vmul.f32 %v1660_v56, %v1660_v56  ;;  %v946_v35 = vmul.f32 %v1732_v17, %v1732_v17 }
 0x127   : > { %v865_v51 = vadd.f32 %v864_v47, %v1644_v44  ;;  %v1000_v52 = vadd.f32 %v999_v48, %v937_v46  ;;  %v947_v46 = vmul.f32 %v1745_v21, %v1745_v21 }
 0x129   : > { %v866_v54 = vadd.f32 %v865_v51, %v1651_v50  ;;  %v1001_v55 = vadd.f32 %v1000_v52, %v938_v49  ;;  %v941_v50 = vmul.f32 %v1675_v63, %v1675_v63  ;;  %v1864_v48 = vpop.f32.mrf.mxu2  ;;  %v1866_v49 = vpop.f32.mrf.mxu3  ;;  %v948_v51 = vmul.f32 %v1758_v25, %v1758_v25 }
 0x12a   : > { %830 = vst [vmem:[%s1565_s10 + $0x178] sm:$0xff] %v1864_v48 }
 0x12b   : > { %v867_v61 = vadd.f32 %v866_v54, %v1660_v56  ;;  %v1002_v44 = vadd.f32 %v1001_v55, %v939_v34  ;;  %842 = vst [vmem:[%s1565_s10 + $0x1d8] sm:$0xff] %v1866_v49 }
 0x12d   : > { %v868_v4 = vadd.f32 %v867_v61, %v1675_v63  ;;  %v1003_v8 = vadd.f32 %v1002_v44, %v940_v38  ;;  %v944_v63 = vmul.f32 %v1706_v9, %v1706_v9  ;;  %v950_v38 = vmul.f32 %v1786_v57, %v1786_v57 }
 0x12f   : > { %v1004_v16 = vadd.f32 %v1003_v8, %v941_v50  ;;  %v869_v28 = vadd.f32 %v868_v4, %v1684_v2  ;;  %v945_v2 = vmul.f32 %v1719_v13, %v1719_v13 }
 0x131   : > { %v870_v56 = vadd.f32 %v869_v28, %v1693_v5  ;;  %v1005_v29 = vadd.f32 %v1004_v16, %v942_v12  ;;  %v1884_v50 = vpop.f32.mrf.mxu3 }
 0x132   : > { %843 = vst [vmem:[%s1565_s10 + $0x1e0] sm:$0xff] %v1884_v50 }
 0x133   : > { %v871_v33 = vadd.f32 %v870_v56, %v1706_v9  ;;  %v1006_v37 = vadd.f32 %v1005_v29, %v943_v20  ;;  %v955_v56 = vmul.f32 %v1687_v3, %v1687_v3 }
 0x135   : > { %v872_v5 = vadd.f32 %v871_v33, %v1719_v13  ;;  %v1007_v24 = vadd.f32 %v1006_v37, %v944_v63 }
 0x137   : > { %v873_v43 = vadd.f32 %v872_v5, %v1732_v17  ;;  %v1008_v45 = vadd.f32 %v1007_v24, %v945_v2 }
 0x139   : > { %v874_v9 = vadd.f32 %v873_v43, %v1745_v21  ;;  %v1009_v47 = vadd.f32 %v1008_v45, %v946_v35  ;;  %v949_v21 = vmul.f32 %v1773_v36, %v1773_v36  ;;  %v959_v43 = vmul.f32 %v1735_v18, %v1735_v18 }
 0x13b   : > { %v875_v13 = vadd.f32 %v874_v9, %v1758_v25  ;;  %v1010_v17 = vadd.f32 %v1009_v47, %v947_v46  ;;  %v951_v25 = vmul.f32 %v1799_v32, %v1799_v32 }
 0x13d   : > { %v1011_v52 = vadd.f32 %v1010_v17, %v948_v51  ;;  %v876_v34 = vadd.f32 %v875_v13, %v1773_v36  ;;  %v952_v36 = vmul.f32 %v1654_v53, %v1654_v53 }
 0x13f   : > { %v1012_v54 = vadd.f32 %v1011_v52, %v949_v21  ;;  %v877_v55 = vadd.f32 %v876_v34, %v1786_v57  ;;  %v953_v57 = vmul.f32 %v1665_v59, %v1665_v59  ;;  %v963_v21 = vmul.f32 %v1789_v62, %v1789_v62 }
 0x141   : > { %v1013_v61 = vadd.f32 %v1012_v54, %v950_v38  ;;  %v878_v44 = vadd.f32 %v877_v55, %v1799_v32  ;;  %v954_v32 = vmul.f32 %v1678_v0, %v1678_v0 }
 0x143   : > { %v879_v4 = vadd.f32 %v878_v44, %v1654_v53  ;;  %v1014_v8 = vadd.f32 %v1013_v61, %v951_v25  ;;  %v1900_v53 = vpop.f32.mrf.mxu3 }
 0x144   : > { %844 = vst [vmem:[%s1565_s10 + $0x1e8] sm:$0xff] %v1900_v53 }
 0x145   : > { %v880_v12 = vadd.f32 %v879_v4, %v1665_v59  ;;  %v1015_v16 = vadd.f32 %v1014_v8, %v952_v36  ;;  %v956_v59 = vmul.f32 %v1696_v6, %v1696_v6 }
 0x147   : > { %v881_v28 = vadd.f32 %v880_v12, %v1678_v0  ;;  %v1016_v20 = vadd.f32 %v1015_v16, %v953_v57  ;;  %v957_v0 = vmul.f32 %v1709_v10, %v1709_v10  ;;  %v967_v57 = vmul.f32 %v1864_v48, %v1864_v48 }
 0x149   : > { %v882_v29 = vadd.f32 %v881_v28, %v1687_v3  ;;  %v1017_v63 = vadd.f32 %v1016_v20, %v954_v32  ;;  %v958_v3 = vmul.f32 %v1722_v14, %v1722_v14 }
 0x14b   : > { %v883_v33 = vadd.f32 %v882_v29, %v1696_v6  ;;  %v1018_v37 = vadd.f32 %v1017_v63, %v955_v56  ;;  %v1916_v6 = vpop.f32.mrf.mxu3 }
 0x14c   : > { %845 = vst [vmem:[%s1565_s10 + $0x1f0] sm:$0xff] %v1916_v6 }
 0x14d   : > { %v884_v2 = vadd.f32 %v883_v33, %v1709_v10  ;;  %v1019_v5 = vadd.f32 %v1018_v37, %v956_v59  ;;  %v960_v10 = vmul.f32 %v1748_v22, %v1748_v22 }
 0x14f   : > { %v1020_v24 = vadd.f32 %v1019_v5, %v957_v0  ;;  %v885_v35 = vadd.f32 %v884_v2, %v1722_v14  ;;  %v961_v14 = vmul.f32 %v1761_v26, %v1761_v26 }
 0x151   : > { %v886_v45 = vadd.f32 %v885_v35, %v1735_v18  ;;  %v1021_v46 = vadd.f32 %v1020_v24, %v958_v3  ;;  %v962_v18 = vmul.f32 %v1776_v41, %v1776_v41 }
 0x153   : > { %v887_v9 = vadd.f32 %v886_v45, %v1748_v22  ;;  %v1022_v47 = vadd.f32 %v1021_v46, %v959_v43  ;;  %v780_v22 = vpop.f32.mrf.mxu3 }
 0x154   : > { %846 = vst [vmem:[%s1565_s10 + $0x1f8] sm:$0xff] %v780_v22 }
 0x155   : > { %v888_v13 = vadd.f32 %v887_v9, %v1761_v26  ;;  %v1023_v51 = vadd.f32 %v1022_v47, %v960_v10  ;;  %v964_v26 = vmul.f32 %v1802_v39, %v1802_v39  ;;  %v979_v47 = vmul.f32 %v1866_v49, %v1866_v49 }
 0x157   : > { %v889_v17 = vadd.f32 %v888_v13, %v1776_v41  ;;  %v1024_v52 = vadd.f32 %v1023_v51, %v961_v14  ;;  %v965_v41 = vmul.f32 %v1824_v58, %v1824_v58  ;;  %v980_v51 = vmul.f32 %v1884_v50, %v1884_v50 }
 0x159   : > { %v890_v34 = vadd.f32 %v889_v17, %v1789_v62  ;;  %v1025_v54 = vadd.f32 %v1024_v52, %v962_v18  ;;  %v966_v62 = vmul.f32 %v1844_v30, %v1844_v30  ;;  %v981_v17 = vmul.f32 %v1900_v53, %v1900_v53 }
 0x15b   : > { %v1026_v55 = vadd.f32 %v1025_v54, %v963_v21  ;;  %v891_v38 = vadd.f32 %v890_v34, %v1802_v39  ;;  %v968_v39 = vmul.f32 %v1698_v7, %v1698_v7  ;;  %v982_v34 = vmul.f32 %v1916_v6, %v1916_v6 }
 0x15c   : > { %v983_v54 = vmul.f32 %v780_v22, %v780_v22 }
 0x15d   : > { %v1027_v61 = vadd.f32 %v1026_v55, %v964_v26  ;;  %v892_v44 = vadd.f32 %v891_v38, %v1824_v58  ;;  %v969_v58 = vmul.f32 %v1711_v11, %v1711_v11 }
 0x15f   : > { %v1028_v25 = vadd.f32 %v1027_v61, %v965_v41  ;;  %v893_v36 = vadd.f32 %v892_v44, %v1844_v30  ;;  %v970_v30 = vmul.f32 %v1724_v15, %v1724_v15 }
 0x161   : > { %v1029_v4 = vadd.f32 %v1028_v25, %v966_v62  ;;  %v894_v8 = vadd.f32 %v893_v36, %v1864_v48  ;;  %v971_v48 = vmul.f32 %v1737_v19, %v1737_v19 }
 0x163   : > { %v895_v12 = vadd.f32 %v894_v8, %v1698_v7  ;;  %v1030_v16 = vadd.f32 %v1029_v4, %v967_v57  ;;  %v972_v7 = vmul.f32 %v1750_v23, %v1750_v23 }
 0x165   : > { %v896_v32 = vadd.f32 %v895_v12, %v1711_v11  ;;  %v1031_v28 = vadd.f32 %v1030_v16, %v968_v39  ;;  %v973_v11 = vmul.f32 %v1763_v27, %v1763_v27 }
 0x167   : > { %v897_v20 = vadd.f32 %v896_v32, %v1724_v15  ;;  %v1032_v56 = vadd.f32 %v1031_v28, %v969_v58  ;;  %v974_v15 = vmul.f32 %v1778_v42, %v1778_v42 }
 0x169   : > { %v898_v29 = vadd.f32 %v897_v20, %v1737_v19  ;;  %v1033_v63 = vadd.f32 %v1032_v56, %v970_v30  ;;  %v975_v19 = vmul.f32 %v1791_v1, %v1791_v1 }
 0x16b   : > { %v899_v59 = vadd.f32 %v898_v29, %v1750_v23  ;;  %v1034_v33 = vadd.f32 %v1033_v63, %v971_v48  ;;  %v976_v23 = vmul.f32 %v1804_v40, %v1804_v40 }
 0x16d   : > { %v900_v37 = vadd.f32 %v899_v59, %v1763_v27  ;;  %v1035_v0 = vadd.f32 %v1034_v33, %v972_v7  ;;  %v977_v27 = vmul.f32 %v1826_v60, %v1826_v60 }
 0x16f   : > { %v1036_v2 = vadd.f32 %v1035_v0, %v973_v11  ;;  %v901_v5 = vadd.f32 %v900_v37, %v1778_v42  ;;  %v978_v42 = vmul.f32 %v1846_v31, %v1846_v31 }
 0x171   : > { %v902_v3 = vadd.f32 %v901_v5, %v1791_v1  ;;  %v1037_v24 = vadd.f32 %v1036_v2, %v974_v15 }
 0x173   : > { %v903_v35 = vadd.f32 %v902_v3, %v1804_v40  ;;  %v1038_v43 = vadd.f32 %v1037_v24, %v975_v19 }
 0x175   : > { %v904_v45 = vadd.f32 %v903_v35, %v1826_v60  ;;  %v1039_v46 = vadd.f32 %v1038_v43, %v976_v23 }
 0x177   : > { %v905_v10 = vadd.f32 %v904_v45, %v1846_v31  ;;  %v1040_v9 = vadd.f32 %v1039_v46, %v977_v27 }
 0x179   : > { %v906_v1 = vadd.f32 %v905_v10, %v1866_v49  ;;  %v1041_v14 = vadd.f32 %v1040_v9, %v978_v42 }
 0x17b   : > { %v1042_v40 = vadd.f32 %v1041_v14, %v979_v47  ;;  %v907_v13 = vadd.f32 %v906_v1, %v1884_v50 }
 0x17d   : > { %v1043_v60 = vadd.f32 %v1042_v40, %v980_v51  ;;  %v908_v18 = vadd.f32 %v907_v13, %v1900_v53  ;;  %v847_v53 = vld [vmem:[%s2020_s3] sm:$0x1] }
 0x17f   : > { %v1044_v31 = vadd.f32 %v1043_v60, %v981_v17  ;;  %v909_v52 = vadd.f32 %v908_v18, %v1916_v6  ;;  %v919_v6 = vld [vmem:[%s2021_s4] sm:$0x1] }
 0x181   : > { %v1045_v49 = vadd.f32 %v1044_v31, %v982_v34  ;;  %v910_v21 = vadd.f32 %v909_v52, %v780_v22 }
 0x183   : > { %v911_v55 = vrot.slane %v910_v21, 4  ;;  %v1046_v38 = vadd.f32 %v1045_v49, %v983_v54 }
 0x185   : > { %v912_v26 = vadd.f32 %v911_v55, %v910_v21  ;;  %v1047_v61 = vrot.slane %v1046_v38, 4 }
 0x187   : > { %v913_v50 = vrot.slane %v912_v26, 2  ;;  %v1048_v44 = vadd.f32 %v1047_v61, %v1046_v38 }
 0x189   : > { %v914_v41 = vadd.f32 %v913_v50, %v912_v26  ;;  %v1049_v25 = vrot.slane %v1048_v44, 2 }
 0x18b   : > { %v915_v36 = vrot.slane %v914_v41, 1  ;;  %v1050_v62 = vadd.f32 %v1049_v25, %v1048_v44 }
 0x18d   : > { %v916_v4 = vadd.f32 %v915_v36, %v914_v41  ;;  %v1051_v8 = vrot.slane %v1050_v62, 1 }
 0x18f   : > { %v917_v22 = vadd.f32 %v916_v4, %v847_v53  ;;  %v1052_v57 = vadd.f32 %v1051_v8, %v1050_v62 }
 0x191   : > { %918 = vst [vmem:[%s2020_s3] sm:$0x1] %v917_v22  ;;  %v1053_v39 = vadd.f32 %v1052_v57, %v919_v6 }
 0x193   : > { %1054 = vst [vmem:[%s2021_s4] sm:$0x1] %v1053_v39 }
 0x194 PF: > { %s15_s19 = sadd.s32 1, %s1488_s19   ;;  %s2022_s15 = smov %s1480_s17 }
 0x195   : > { %p12_p10 = scmp.ge.s32.totalorder %s15_s19, 18   ;;  %s2023_s16 = smov %s1484_s18 }
 0x196   : > { %s2024_s17 = smov %s2027_s20  ;;  %s2025_s18 = smov %s2031_s21 }
 0x197   :  { %14 = sbr.rel (!%p12_p10) target bundleno = 3 (0x3), region = 81 }

// kernel: generator128_forward.16
= control target key start
LH: loop header
LB: loop body
LE: loop exit
PB: predicated region body
PF: predicated region fallthrough
CT: control target
= control target key end

     0   :  { %s998_s12 = smov 0   ;;  %s1000_s13 = smov 0   ;;  %s1291_s0 = inlined_call_operand.vmem [shape: f32[4,2048,128], index: 0, kind: input, shape index: {}]   ;;  %s1292_s1 = inlined_call_operand.vmem [shape: f32[1,128], index: 1, kind: input, shape index: {}]   ;;  %s1293_s2 = inlined_call_operand.vmem [shape: f32[1,128], index: 2, kind: input, shape index: {}]   ;;  %s1294_s3 = inlined_call_operand.vmem [shape: bf16[4,2048,128], index: 3, kind: output, shape index: {}]  }
   0x1   :  { %s1002_s14 = smov 0   ;;  %s1004_s15 = smov 0  }
   0x2   :  { %s1006_s16 = smov 0  }
   0x3 LB: > { %s22_s17 = sadd.s32 1, %s968_s14  ;;  %s25_s18 = sadd.s32 1, %s972_s15  ;;  %s976_s16 = sphi %s1006_s16, %s13_s16   ;;  %s972_s15 = sphi %s1004_s15, %s1298_s15   ;;  %s968_s14 = sphi %s1002_s14, %s1297_s14   ;;  %s964_s13 = sphi %s1000_s13, %s1296_s13   ;;  %s960_s12 = sphi %s998_s12, %s1295_s12  }
   0x4   : > { %p23_p0 = scmp.ge.s32.totalorder %s22_s17, 4  ;;  %p696_p1 = scmp.ge.s32.totalorder %s976_s16, 1 }
   0x5   : > { %p158_p2 = scmp.lt.s32.totalorder %s976_s16, 17 }
   0x6   : > { %s1300_s17 = smov (%p23_p0, %s22_s17), 0  ;;  %s1302_s18 = smov (!%p23_p0, %s25_s18), %s972_s15 }
   0x7   : > { %p159_p3 = pnand %p696_p1, %p158_p2  ;;  %p27_p4 = scmp.ge.s32.totalorder %s1302_s18, 4 }
   0x8   : > { %s697_s19 = sshll.u32 (!%p159_p3), %s960_s12, 6  ;;  %p191_p5 = scmp.lt.s32.totalorder (!%p159_p3), %s964_s13, 3 }
   0x9   : > { %s1304_s18 = smov (%p27_p4, %s1302_s18), 0  ;;  %162 = sbr.rel (%p159_p3) target bundleno = 82 (0x52), region = 32 }
   0xa   : > { %p193_p6 = scmp.lt.s32.totalorder (!%p159_p3), %s697_s19, 255 }
   0xe   : > { %s1306_s13 = smov (!%p191_p5, %s964_s13), 3  ;;  %s1308_s19 = smov (!%p193_p6, %s697_s19), 255  ;;  %v1033_v0 = vld [vmem:[%s1292_s1] ss:$0 sm:$0xff] }
   0xf   : > { %s698_s20 = sshll.u32 %s1306_s13, 8  ;;  %v1044_v1 = vld [vmem:[%s1293_s2] ss:$0 sm:$0xff] }
  0x10   : > { %s1028_s21 = sadd.s32 %s698_s20, %s1308_s19 }
  0x11   : > { %s699_s24 = sshll.u32 %s1028_s21, 3  ;;  %s702_s30 = sshll.u32 %s1028_s21, 2 }
  0x12   : > { %s1039_s27 = scalar_lea.vmem %s1291_s0, %s699_s24  ;;  %s1076_s6 = scalar_lea.vmem %s1294_s3, %s702_s30 }
  0x13   : > { %v210_v2 = vld [vmem:[%s1039_s27] sm:$0xff]  ;;  %v211_v3 = vld [vmem:[%s1039_s27 + $0x8] sm:$0xff]  ;;  %v212_v4 = vld [vmem:[%s1039_s27 + $0x10] sm:$0xff] }
  0x14   : > { %v278_v5 = vmul.f32 %v1033_v0, %v210_v2  ;;  %v279_v6 = vmul.f32 %v1033_v0, %v211_v3  ;;  %v213_v7 = vld [vmem:[%s1039_s27 + $0x18] sm:$0xff]  ;;  %v280_v8 = vmul.f32 %v1033_v0, %v212_v4  ;;  %v214_v9 = vld [vmem:[%s1039_s27 + $0x20] sm:$0xff]  ;;  %v215_v10 = vld [vmem:[%s1039_s27 + $0x28] sm:$0xff] }
  0x15   : > { %v281_v11 = vmul.f32 %v1033_v0, %v213_v7  ;;  %v282_v12 = vmul.f32 %v1033_v0, %v214_v9  ;;  %v283_v13 = vmul.f32 %v1033_v0, %v215_v10  ;;  %v216_v14 = vld [vmem:[%s1039_s27 + $0x30] sm:$0xff]  ;;  %v217_v15 = vld [vmem:[%s1039_s27 + $0x38] sm:$0xff]  ;;  %v218_v24 = vld [vmem:[%s1039_s27 + $0x40] sm:$0xff] }
  0x16   : > { %v346_v16 = vadd.f32 %v1044_v1, %v278_v5  ;;  %v347_v17 = vadd.f32 %v1044_v1, %v279_v6  ;;  %v348_v18 = vadd.f32 %v1044_v1, %v280_v8  ;;  %v284_v19 = vmul.f32 %v1033_v0, %v216_v14  ;;  %v219_v25 = vld [vmem:[%s1039_s27 + $0x48] sm:$0xff]  ;;  %v220_v30 = vld [vmem:[%s1039_s27 + $0x50] sm:$0xff]  ;;  %v221_v35 = vld [vmem:[%s1039_s27 + $0x58] sm:$0xff] }
  0x17   : > { %v349_v20 = vadd.f32 %v1044_v1, %v281_v11  ;;  %v350_v21 = vadd.f32 %v1044_v1, %v282_v12  ;;  %v351_v22 = vadd.f32 %v1044_v1, %v283_v13  ;;  %v285_v23 = vmul.f32 %v1033_v0, %v217_v15  ;;  %v222_v36 = vld [vmem:[%s1039_s27 + $0x60] sm:$0xff]  ;;  %v223_v41 = vld [vmem:[%s1039_s27 + $0x68] sm:$0xff]  ;;  %v224_v42 = vld [vmem:[%s1039_s27 + $0x70] sm:$0xff] }
  0x18   : > { %v410_v26 = vmax.f32 %v346_v16, 0.0  ;;  %v411_v27 = vmax.f32 %v347_v17, 0.0  ;;  %v412_v28 = vmax.f32 %v348_v18, 0.0  ;;  %v352_v29 = vadd.f32 %v1044_v1, %v284_v19  ;;  %v225_v51 = vld [vmem:[%s1039_s27 + $0x78] sm:$0xff]  ;;  %v226_v56 = vld [vmem:[%s1039_s27 + $0x80] sm:$0xff]  ;;  %v227_v61 = vld [vmem:[%s1039_s27 + $0x88] sm:$0xff] }
  0x19   : > { %v413_v31 = vmax.f32 %v349_v20, 0.0  ;;  %v414_v32 = vmax.f32 %v350_v21, 0.0  ;;  %v415_v33 = vmax.f32 %v351_v22, 0.0  ;;  %v353_v34 = vadd.f32 %v1044_v1, %v285_v23  ;;  %v228_v4 = vld [vmem:[%s1039_s27 + $0x90] sm:$0xff]  ;;  %v229_v5 = vld [vmem:[%s1039_s27 + $0x98] sm:$0xff]  ;;  %v230_v10 = vld [vmem:[%s1039_s27 + $0xa0] sm:$0xff] }
  0x1a   : > { %v708_v37 = vpack.c.bf16 %v411_v27, %v410_v26  ;;  %v416_v38 = vmax.f32 %v352_v29, 0.0  ;;  %v286_v39 = vmul.f32 %v1033_v0, %v218_v24  ;;  %v287_v40 = vmul.f32 %v1033_v0, %v219_v25  ;;  %v231_v15 = vld [vmem:[%s1039_s27 + $0xa8] sm:$0xff]  ;;  %v232_v20 = vld [vmem:[%s1039_s27 + $0xb0] sm:$0xff]  ;;  %v233_v25 = vld [vmem:[%s1039_s27 + $0xb8] sm:$0xff] }
  0x1b   : > { %v713_v43 = vpack.c.bf16 %v413_v31, %v412_v28  ;;  %v718_v44 = vpack.c.bf16 %v415_v33, %v414_v32  ;;  %v417_v45 = vmax.f32 %v353_v34, 0.0  ;;  %v288_v46 = vmul.f32 %v1033_v0, %v220_v30  ;;  %v234_v30 = vld [vmem:[%s1039_s27 + $0xc0] sm:$0xff] }
  0x1c   : > { %709 = vst [vmem:[%s1076_s6] sm:$0xff] %v708_v37   ;;  %v354_v47 = vadd.f32 %v1044_v1, %v286_v39  ;;  %v355_v48 = vadd.f32 %v1044_v1, %v287_v40  ;;  %v289_v49 = vmul.f32 %v1033_v0, %v221_v35  ;;  %v290_v50 = vmul.f32 %v1033_v0, %v222_v36  ;;  %v235_v35 = vld [vmem:[%s1039_s27 + $0xc8] sm:$0xff]  ;;  %v236_v40 = vld [vmem:[%s1039_s27 + $0xd0] sm:$0xff] }
  0x1d   : > { %865 = vst [vmem:[%s1076_s6 + $0x8] sm:$0xff] %v713_v43   ;;  %v723_v52 = vpack.c.bf16 %v417_v45, %v416_v38  ;;  %v356_v53 = vadd.f32 %v1044_v1, %v288_v46  ;;  %v291_v54 = vmul.f32 %v1033_v0, %v223_v41  ;;  %v292_v55 = vmul.f32 %v1033_v0, %v224_v42  ;;  %v237_v41 = vld [vmem:[%s1039_s27 + $0xd8] sm:$0xff]  ;;  %v238_v46 = vld [vmem:[%s1039_s27 + $0xe0] sm:$0xff] }
  0x1e   : > { %866 = vst [vmem:[%s1076_s6 + $0x10] sm:$0xff] %v718_v44   ;;  %v418_v57 = vmax.f32 %v354_v47, 0.0  ;;  %v419_v58 = vmax.f32 %v355_v48, 0.0  ;;  %v357_v59 = vadd.f32 %v1044_v1, %v289_v49  ;;  %v358_v60 = vadd.f32 %v1044_v1, %v290_v50 }
  0x1f   : > { %867 = vst [vmem:[%s1076_s6 + $0x18] sm:$0xff] %v723_v52   ;;  %v420_v62 = vmax.f32 %v356_v53, 0.0  ;;  %v359_v63 = vadd.f32 %v1044_v1, %v291_v54  ;;  %v293_v2 = vmul.f32 %v1033_v0, %v225_v51  ;;  %v360_v3 = vadd.f32 %v1044_v1, %v292_v55  ;;  %v239_v51 = vld [vmem:[%s1039_s27 + $0xe8] sm:$0xff] }
  0x20   : > { %v728_v6 = vpack.c.bf16 %v419_v58, %v418_v57  ;;  %v421_v7 = vmax.f32 %v357_v59, 0.0  ;;  %v422_v8 = vmax.f32 %v358_v60, 0.0  ;;  %v294_v9 = vmul.f32 %v1033_v0, %v226_v56  ;;  %v240_v56 = vld [vmem:[%s1039_s27 + $0xf0] sm:$0xff] }
  0x21   : > { %v423_v11 = vmax.f32 %v359_v63, 0.0  ;;  %v361_v12 = vadd.f32 %v1044_v1, %v293_v2  ;;  %v424_v13 = vmax.f32 %v360_v3, 0.0  ;;  %v295_v14 = vmul.f32 %v1033_v0, %v227_v61  ;;  %v241_v61 = vld [vmem:[%s1039_s27 + $0xf8] sm:$0xff] }
  0x22   : > { %868 = vst [vmem:[%s1076_s6 + $0x20] sm:$0xff] %v728_v6   ;;  %v733_v16 = vpack.c.bf16 %v421_v7, %v420_v62  ;;  %v362_v17 = vadd.f32 %v1044_v1, %v294_v9  ;;  %v296_v18 = vmul.f32 %v1033_v0, %v228_v4  ;;  %v297_v19 = vmul.f32 %v1033_v0, %v229_v5  ;;  %v242_v4 = vld [vmem:[%s1039_s27 + $0x100] sm:$0xff]  ;;  %v243_v9 = vld [vmem:[%s1039_s27 + $0x108] sm:$0xff] }
  0x23   : > { %v738_v21 = vpack.c.bf16 %v423_v11, %v422_v8  ;;  %v425_v22 = vmax.f32 %v361_v12, 0.0  ;;  %v363_v23 = vadd.f32 %v1044_v1, %v295_v14  ;;  %v298_v24 = vmul.f32 %v1033_v0, %v230_v10  ;;  %v244_v14 = vld [vmem:[%s1039_s27 + $0x110] sm:$0xff] }
  0x24   : > { %869 = vst [vmem:[%s1076_s6 + $0x28] sm:$0xff] %v733_v16   ;;  %v426_v26 = vmax.f32 %v362_v17, 0.0  ;;  %v364_v27 = vadd.f32 %v1044_v1, %v296_v18  ;;  %v365_v28 = vadd.f32 %v1044_v1, %v297_v19  ;;  %v299_v29 = vmul.f32 %v1033_v0, %v231_v15  ;;  %v245_v15 = vld [vmem:[%s1039_s27 + $0x118] sm:$0xff] }
  0x25   : > { %870 = vst [vmem:[%s1076_s6 + $0x30] sm:$0xff] %v738_v21   ;;  %v743_v31 = vpack.c.bf16 %v425_v22, %v424_v13  ;;  %v427_v32 = vmax.f32 %v363_v23, 0.0  ;;  %v366_v33 = vadd.f32 %v1044_v1, %v298_v24  ;;  %v300_v34 = vmul.f32 %v1033_v0, %v232_v20  ;;  %v246_v20 = vld [vmem:[%s1039_s27 + $0x120] sm:$0xff] }
  0x26   : > { %v428_v36 = vmax.f32 %v364_v27, 0.0  ;;  %v429_v37 = vmax.f32 %v365_v28, 0.0  ;;  %v367_v38 = vadd.f32 %v1044_v1, %v299_v29  ;;  %v301_v39 = vmul.f32 %v1033_v0, %v233_v25  ;;  %v247_v25 = vld [vmem:[%s1039_s27 + $0x128] sm:$0xff] }
  0x27   : > { %871 = vst [vmem:[%s1076_s6 + $0x38] sm:$0xff] %v743_v31   ;;  %v748_v42 = vpack.c.bf16 %v427_v32, %v426_v26  ;;  %v430_v43 = vmax.f32 %v366_v33, 0.0  ;;  %v368_v44 = vadd.f32 %v1044_v1, %v300_v34  ;;  %v302_v45 = vmul.f32 %v1033_v0, %v234_v30  ;;  %v248_v30 = vld [vmem:[%s1039_s27 + $0x130] sm:$0xff] }
  0x28   : > { %v753_v47 = vpack.c.bf16 %v429_v37, %v428_v36  ;;  %v431_v48 = vmax.f32 %v367_v38, 0.0  ;;  %v369_v49 = vadd.f32 %v1044_v1, %v301_v39  ;;  %v303_v50 = vmul.f32 %v1033_v0, %v235_v35  ;;  %v249_v35 = vld [vmem:[%s1039_s27 + $0x138] sm:$0xff] }
  0x29   : > { %872 = vst [vmem:[%s1076_s6 + $0x40] sm:$0xff] %v748_v42   ;;  %v432_v52 = vmax.f32 %v368_v44, 0.0  ;;  %v370_v53 = vadd.f32 %v1044_v1, %v302_v45  ;;  %v304_v54 = vmul.f32 %v1033_v0, %v236_v40  ;;  %v305_v55 = vmul.f32 %v1033_v0, %v237_v41  ;;  %v250_v40 = vld [vmem:[%s1039_s27 + $0x140] sm:$0xff]  ;;  %v251_v45 = vld [vmem:[%s1039_s27 + $0x148] sm:$0xff] }
  0x2a   : > { %873 = vst [vmem:[%s1076_s6 + $0x48] sm:$0xff] %v753_v47   ;;  %v758_v57 = vpack.c.bf16 %v431_v48, %v430_v43  ;;  %v433_v58 = vmax.f32 %v369_v49, 0.0  ;;  %v371_v59 = vadd.f32 %v1044_v1, %v303_v50  ;;  %v306_v60 = vmul.f32 %v1033_v0, %v238_v46  ;;  %v252_v50 = vld [vmem:[%s1039_s27 + $0x150] sm:$0xff] }
  0x2b   : > { %v434_v62 = vmax.f32 %v370_v53, 0.0  ;;  %v372_v63 = vadd.f32 %v1044_v1, %v304_v54  ;;  %v373_v2 = vadd.f32 %v1044_v1, %v305_v55  ;;  %v307_v3 = vmul.f32 %v1033_v0, %v239_v51  ;;  %v253_v51 = vld [vmem:[%s1039_s27 + $0x158] sm:$0xff] }
  0x2c   : > { %874 = vst [vmem:[%s1076_s6 + $0x50] sm:$0xff] %v758_v57   ;;  %v763_v5 = vpack.c.bf16 %v433_v58, %v432_v52  ;;  %v435_v6 = vmax.f32 %v371_v59, 0.0  ;;  %v374_v7 = vadd.f32 %v1044_v1, %v306_v60  ;;  %v308_v8 = vmul.f32 %v1033_v0, %v240_v56  ;;  %v254_v56 = vld [vmem:[%s1039_s27 + $0x160] sm:$0xff] }
  0x2d   : > { %v436_v10 = vmax.f32 %v372_v63, 0.0  ;;  %v437_v11 = vmax.f32 %v373_v2, 0.0  ;;  %v375_v12 = vadd.f32 %v1044_v1, %v307_v3  ;;  %v309_v13 = vmul.f32 %v1033_v0, %v241_v61  ;;  %v255_v61 = vld [vmem:[%s1039_s27 + $0x168] sm:$0xff] }
  0x2e   : > { %875 = vst [vmem:[%s1076_s6 + $0x58] sm:$0xff] %v763_v5   ;;  %v768_v16 = vpack.c.bf16 %v435_v6, %v434_v62  ;;  %v438_v17 = vmax.f32 %v374_v7, 0.0  ;;  %v376_v18 = vadd.f32 %v1044_v1, %v308_v8  ;;  %v310_v19 = vmul.f32 %v1033_v0, %v242_v4  ;;  %v256_v4 = vld [vmem:[%s1039_s27 + $0x170] sm:$0xff] }
  0x2f   : > { %v773_v21 = vpack.c.bf16 %v437_v11, %v436_v10  ;;  %v439_v22 = vmax.f32 %v375_v12, 0.0  ;;  %v377_v23 = vadd.f32 %v1044_v1, %v309_v13  ;;  %v311_v24 = vmul.f32 %v1033_v0, %v243_v9  ;;  %v257_v9 = vld [vmem:[%s1039_s27 + $0x178] sm:$0xff] }
  0x30   : > { %876 = vst [vmem:[%s1076_s6 + $0x60] sm:$0xff] %v768_v16   ;;  %v440_v26 = vmax.f32 %v376_v18, 0.0  ;;  %v378_v27 = vadd.f32 %v1044_v1, %v310_v19  ;;  %v312_v28 = vmul.f32 %v1033_v0, %v244_v14  ;;  %v313_v29 = vmul.f32 %v1033_v0, %v245_v15  ;;  %v258_v14 = vld [vmem:[%s1039_s27 + $0x180] sm:$0xff]  ;;  %v259_v19 = vld [vmem:[%s1039_s27 + $0x188] sm:$0xff] }
  0x31   : > { %877 = vst [vmem:[%s1076_s6 + $0x68] sm:$0xff] %v773_v21   ;;  %v778_v31 = vpack.c.bf16 %v439_v22, %v438_v17  ;;  %v441_v32 = vmax.f32 %v377_v23, 0.0  ;;  %v379_v33 = vadd.f32 %v1044_v1, %v311_v24  ;;  %v314_v34 = vmul.f32 %v1033_v0, %v246_v20  ;;  %v260_v24 = vld [vmem:[%s1039_s27 + $0x190] sm:$0xff] }
  0x32   : > { %v442_v36 = vmax.f32 %v378_v27, 0.0  ;;  %v380_v37 = vadd.f32 %v1044_v1, %v312_v28  ;;  %v381_v38 = vadd.f32 %v1044_v1, %v313_v29  ;;  %v315_v39 = vmul.f32 %v1033_v0, %v247_v25  ;;  %v261_v25 = vld [vmem:[%s1039_s27 + $0x198] sm:$0xff] }
  0x33   : > { %878 = vst [vmem:[%s1076_s6 + $0x70] sm:$0xff] %v778_v31   ;;  %v783_v41 = vpack.c.bf16 %v441_v32, %v440_v26  ;;  %v443_v42 = vmax.f32 %v379_v33, 0.0  ;;  %v382_v43 = vadd.f32 %v1044_v1, %v314_v34  ;;  %v316_v44 = vmul.f32 %v1033_v0, %v248_v30  ;;  %v262_v30 = vld [vmem:[%s1039_s27 + $0x1a0] sm:$0xff] }
  0x34   : > { %v444_v46 = vmax.f32 %v380_v37, 0.0  ;;  %v445_v47 = vmax.f32 %v381_v38, 0.0  ;;  %v383_v48 = vadd.f32 %v1044_v1, %v315_v39  ;;  %v317_v49 = vmul.f32 %v1033_v0, %v249_v35  ;;  %v263_v35 = vld [vmem:[%s1039_s27 + $0x1a8] sm:$0xff] }
  0x35   : > { %879 = vst [vmem:[%s1076_s6 + $0x78] sm:$0xff] %v783_v41   ;;  %v788_v52 = vpack.c.bf16 %v443_v42, %v442_v36  ;;  %v446_v53 = vmax.f32 %v382_v43, 0.0  ;;  %v384_v54 = vadd.f32 %v1044_v1, %v316_v44  ;;  %v318_v55 = vmul.f32 %v1033_v0, %v250_v40  ;;  %v264_v40 = vld [vmem:[%s1039_s27 + $0x1b0] sm:$0xff] }
  0x36   : > { %v793_v57 = vpack.c.bf16 %v445_v47, %v444_v46  ;;  %v447_v58 = vmax.f32 %v383_v48, 0.0  ;;  %v385_v59 = vadd.f32 %v1044_v1, %v317_v49  ;;  %v319_v60 = vmul.f32 %v1033_v0, %v251_v45  ;;  %v265_v45 = vld [vmem:[%s1039_s27 + $0x1b8] sm:$0xff] }
  0x37   : > { %880 = vst [vmem:[%s1076_s6 + $0x80] sm:$0xff] %v788_v52   ;;  %v448_v62 = vmax.f32 %v384_v54, 0.0  ;;  %v386_v63 = vadd.f32 %v1044_v1, %v318_v55  ;;  %v320_v2 = vmul.f32 %v1033_v0, %v252_v50  ;;  %v321_v3 = vmul.f32 %v1033_v0, %v253_v51  ;;  %v266_v50 = vld [vmem:[%s1039_s27 + $0x1c0] sm:$0xff]  ;;  %v267_v55 = vld [vmem:[%s1039_s27 + $0x1c8] sm:$0xff] }
  0x38   : > { %881 = vst [vmem:[%s1076_s6 + $0x88] sm:$0xff] %v793_v57   ;;  %v798_v5 = vpack.c.bf16 %v447_v58, %v446_v53  ;;  %v449_v6 = vmax.f32 %v385_v59, 0.0  ;;  %v387_v7 = vadd.f32 %v1044_v1, %v319_v60  ;;  %v322_v8 = vmul.f32 %v1033_v0, %v254_v56  ;;  %v268_v60 = vld [vmem:[%s1039_s27 + $0x1d0] sm:$0xff] }
  0x39   : > { %v450_v10 = vmax.f32 %v386_v63, 0.0  ;;  %v388_v11 = vadd.f32 %v1044_v1, %v320_v2  ;;  %v389_v12 = vadd.f32 %v1044_v1, %v321_v3  ;;  %v323_v13 = vmul.f32 %v1033_v0, %v255_v61  ;;  %v269_v61 = vld [vmem:[%s1039_s27 + $0x1d8] sm:$0xff] }
  0x3a   : > { %882 = vst [vmem:[%s1076_s6 + $0x90] sm:$0xff] %v798_v5   ;;  %v803_v15 = vpack.c.bf16 %v449_v6, %v448_v62  ;;  %v451_v16 = vmax.f32 %v387_v7, 0.0  ;;  %v390_v17 = vadd.f32 %v1044_v1, %v322_v8  ;;  %v324_v18 = vmul.f32 %v1033_v0, %v256_v4  ;;  %v270_v4 = vld [vmem:[%s1039_s27 + $0x1e0] sm:$0xff] }
  0x3b   : > { %v452_v20 = vmax.f32 %v388_v11, 0.0  ;;  %v453_v21 = vmax.f32 %v389_v12, 0.0  ;;  %v391_v22 = vadd.f32 %v1044_v1, %v323_v13  ;;  %v325_v23 = vmul.f32 %v1033_v0, %v257_v9  ;;  %v271_v9 = vld [vmem:[%s1039_s27 + $0x1e8] sm:$0xff] }
  0x3c   : > { %883 = vst [vmem:[%s1076_s6 + $0x98] sm:$0xff] %v803_v15   ;;  %v808_v26 = vpack.c.bf16 %v451_v16, %v450_v10  ;;  %v454_v27 = vmax.f32 %v390_v17, 0.0  ;;  %v392_v28 = vadd.f32 %v1044_v1, %v324_v18  ;;  %v326_v29 = vmul.f32 %v1033_v0, %v258_v14  ;;  %v272_v14 = vld [vmem:[%s1039_s27 + $0x1f0] sm:$0xff] }
  0x3d   : > { %v813_v31 = vpack.c.bf16 %v453_v21, %v452_v20  ;;  %v455_v32 = vmax.f32 %v391_v22, 0.0  ;;  %v393_v33 = vadd.f32 %v1044_v1, %v325_v23  ;;  %v327_v34 = vmul.f32 %v1033_v0, %v259_v19  ;;  %v273_v19 = vld [vmem:[%s1039_s27 + $0x1f8] sm:$0xff] }
  0x3e   : > { %884 = vst [vmem:[%s1076_s6 + $0xa0] sm:$0xff] %v808_v26   ;;  %v456_v36 = vmax.f32 %v392_v28, 0.0  ;;  %v394_v37 = vadd.f32 %v1044_v1, %v326_v29  ;;  %v328_v38 = vmul.f32 %v1033_v0, %v260_v24  ;;  %v329_v39 = vmul.f32 %v1033_v0, %v261_v25 }
  0x3f   : > { %885 = vst [vmem:[%s1076_s6 + $0xa8] sm:$0xff] %v813_v31   ;;  %v818_v41 = vpack.c.bf16 %v455_v32, %v454_v27  ;;  %v457_v42 = vmax.f32 %v393_v33, 0.0  ;;  %v395_v43 = vadd.f32 %v1044_v1, %v327_v34  ;;  %v330_v44 = vmul.f32 %v1033_v0, %v262_v30 }
  0x40   : > { %v458_v46 = vmax.f32 %v394_v37, 0.0  ;;  %v396_v47 = vadd.f32 %v1044_v1, %v328_v38  ;;  %v397_v48 = vadd.f32 %v1044_v1, %v329_v39  ;;  %v331_v49 = vmul.f32 %v1033_v0, %v263_v35 }
  0x41   : > { %886 = vst [vmem:[%s1076_s6 + $0xb0] sm:$0xff] %v818_v41   ;;  %v823_v51 = vpack.c.bf16 %v457_v42, %v456_v36  ;;  %v459_v52 = vmax.f32 %v395_v43, 0.0  ;;  %v398_v53 = vadd.f32 %v1044_v1, %v330_v44  ;;  %v332_v54 = vmul.f32 %v1033_v0, %v264_v40 }
  0x42   : > { %v460_v56 = vmax.f32 %v396_v47, 0.0  ;;  %v461_v57 = vmax.f32 %v397_v48, 0.0  ;;  %v399_v58 = vadd.f32 %v1044_v1, %v331_v49  ;;  %v333_v59 = vmul.f32 %v1033_v0, %v265_v45 }
  0x43   : > { %887 = vst [vmem:[%s1076_s6 + $0xb8] sm:$0xff] %v823_v51   ;;  %v828_v62 = vpack.c.bf16 %v459_v52, %v458_v46  ;;  %v462_v63 = vmax.f32 %v398_v53, 0.0  ;;  %v400_v2 = vadd.f32 %v1044_v1, %v332_v54  ;;  %v334_v3 = vmul.f32 %v1033_v0, %v266_v50 }
  0x44   : > { %v833_v5 = vpack.c.bf16 %v461_v57, %v460_v56  ;;  %v463_v6 = vmax.f32 %v399_v58, 0.0  ;;  %v401_v7 = vadd.f32 %v1044_v1, %v333_v59  ;;  %v335_v8 = vmul.f32 %v1033_v0, %v267_v55 }
  0x45   : > { %888 = vst [vmem:[%s1076_s6 + $0xc0] sm:$0xff] %v828_v62   ;;  %v464_v10 = vmax.f32 %v400_v2, 0.0  ;;  %v402_v11 = vadd.f32 %v1044_v1, %v334_v3  ;;  %v336_v12 = vmul.f32 %v1033_v0, %v268_v60  ;;  %v337_v13 = vmul.f32 %v1033_v0, %v269_v61 }
  0x46   : > { %889 = vst [vmem:[%s1076_s6 + $0xc8] sm:$0xff] %v833_v5   ;;  %v838_v15 = vpack.c.bf16 %v463_v6, %v462_v63  ;;  %v465_v16 = vmax.f32 %v401_v7, 0.0  ;;  %v403_v17 = vadd.f32 %v1044_v1, %v335_v8  ;;  %v338_v18 = vmul.f32 %v1033_v0, %v270_v4 }
  0x47   : > { %v466_v20 = vmax.f32 %v402_v11, 0.0  ;;  %v404_v21 = vadd.f32 %v1044_v1, %v336_v12  ;;  %v405_v22 = vadd.f32 %v1044_v1, %v337_v13  ;;  %v339_v23 = vmul.f32 %v1033_v0, %v271_v9 }
  0x48   : > { %890 = vst [vmem:[%s1076_s6 + $0xd0] sm:$0xff] %v838_v15   ;;  %v843_v24 = vpack.c.bf16 %v465_v16, %v464_v10  ;;  %v467_v25 = vmax.f32 %v403_v17, 0.0  ;;  %v406_v26 = vadd.f32 %v1044_v1, %v338_v18  ;;  %v340_v27 = vmul.f32 %v1033_v0, %v272_v14 }
  0x49   : > { %v468_v28 = vmax.f32 %v404_v21, 0.0  ;;  %v469_v29 = vmax.f32 %v405_v22, 0.0  ;;  %v407_v30 = vadd.f32 %v1044_v1, %v339_v23  ;;  %v341_v31 = vmul.f32 %v1033_v0, %v273_v19 }
  0x4a   : > { %891 = vst [vmem:[%s1076_s6 + $0xd8] sm:$0xff] %v843_v24   ;;  %v848_v32 = vpack.c.bf16 %v467_v25, %v466_v20  ;;  %v470_v33 = vmax.f32 %v406_v26, 0.0  ;;  %v408_v34 = vadd.f32 %v1044_v1, %v340_v27 }
  0x4b   : > { %v853_v35 = vpack.c.bf16 %v469_v29, %v468_v28  ;;  %v471_v36 = vmax.f32 %v407_v30, 0.0  ;;  %v409_v37 = vadd.f32 %v1044_v1, %v341_v31 }
  0x4c   : > { %892 = vst [vmem:[%s1076_s6 + $0xe0] sm:$0xff] %v848_v32   ;;  %v472_v38 = vmax.f32 %v408_v34, 0.0 }
  0x4d   : > { %893 = vst [vmem:[%s1076_s6 + $0xe8] sm:$0xff] %v853_v35   ;;  %v858_v39 = vpack.c.bf16 %v471_v36, %v470_v33  ;;  %v473_v40 = vmax.f32 %v409_v37, 0.0 }
  0x4f   : > { %894 = vst [vmem:[%s1076_s6 + $0xf0] sm:$0xff] %v858_v39   ;;  %v863_v41 = vpack.c.bf16 %v473_v40, %v472_v38 }
  0x51   : > { %895 = vst [vmem:[%s1076_s6 + $0xf8] sm:$0xff] %v863_v41  }
  0x52 PF: > { %s13_s16 = sadd.s32 1, %s976_s16   ;;  %s1295_s12 = smov %s968_s14 }
  0x53   : > { %p10_p7 = scmp.ge.s32.totalorder %s13_s16, 18   ;;  %s1296_s13 = smov %s972_s15 }
  0x54   : > { %s1297_s14 = smov %s1300_s17  ;;  %s1298_s15 = smov %s1304_s18 }
  0x55   :  { %12 = sbr.rel (!%p10_p7) target bundleno = 3 (0x3), region = 62 }

// kernel: generator128_forward.17
= control target key start
LH: loop header
LB: loop body
LE: loop exit
PB: predicated region body
PF: predicated region fallthrough
CT: control target
= control target key end

     0   :  { %s1484_s15 = smov 0   ;;  %s1486_s16 = smov 0   ;;  %s1985_s0 = inlined_call_operand.vmem [shape: bf16[4,8192,32], index: 0, kind: input, shape index: {}]   ;;  %s1986_s1 = inlined_call_operand.vmem [shape: bf16[4,32,128], index: 1, kind: input, shape index: {}]   ;;  %s1987_s2 = inlined_call_operand.vmem [shape: f32[4,8192,128], index: 2, kind: output, shape index: {0}]   ;;  %s1988_s3 = inlined_call_operand.vmem [shape: f32[1,128], index: 3, kind: output, shape index: {1}]   ;;  %s1989_s4 = inlined_call_operand.vmem [shape: f32[1,128], index: 4, kind: output, shape index: {2}]  }
   0x1   :  { %s1488_s17 = smov 0   ;;  %s1490_s18 = smov 0  }
   0x2   :  { %s1492_s19 = smov 0  }
   0x3 LB: > { %s24_s20 = sadd.s32 1, %s1448_s17  ;;  %s27_s21 = sadd.s32 1, %s1452_s18  ;;  %s1456_s19 = sphi %s1492_s19, %s15_s19   ;;  %s1452_s18 = sphi %s1490_s18, %s1993_s18   ;;  %s1448_s17 = sphi %s1488_s17, %s1992_s17   ;;  %s1444_s16 = sphi %s1486_s16, %s1991_s16   ;;  %s1440_s15 = sphi %s1484_s15, %s1990_s15  }
   0x4   : > { %p25_p0 = scmp.ge.s32.totalorder %s24_s20, 16  ;;  %p1157_p1 = scmp.ge.s32.totalorder %s1456_s19, 1 }
   0x5   : > { %p188_p2 = scmp.lt.s32.totalorder %s1456_s19, 65 }
   0x6   : > { %s1995_s20 = smov (%p25_p0, %s24_s20), 0  ;;  %s1997_s21 = smov (!%p25_p0, %s27_s21), %s1452_s18 }
   0x7   : > { %p189_p3 = pnand %p1157_p1, %p188_p2  ;;  %p29_p4 = scmp.ge.s32.totalorder %s1997_s21, 4 }
   0x8   : > { %s1158_s22 = sshll.u32 (!%p189_p3), %s1440_s15, 6  ;;  %p228_p5 = scmp.lt.s32.totalorder (!%p189_p3), %s1444_s16, 3 }
   0x9   : > { %s1999_s21 = smov (%p29_p4, %s1997_s21), 0  ;;  %192 = sbr.rel (%p189_p3) target bundleno = 396 (0x18c), region = 28 }
   0xa   : > { %p230_p6 = scmp.lt.s32.totalorder (!%p189_p3), %s1158_s22, 1023  ;;  %p253_p7 = scmp.eq.s32.totalorder (!%p189_p3), %s1444_s16, 0 }
   0xb   : > { %p254_p8 = scmp.eq.s32.totalorder (!%p189_p3), %s1440_s15, 0 }
   0xd   : > { %p255_p9 = pnand (!%p189_p3), %p254_p8, %p253_p7 }
   0xe   : > { %s2001_s16 = smov (!%p228_p5, %s1444_s16), 3  ;;  %s2003_s22 = smov (!%p230_p6, %s1158_s22), 1023 }
   0xf   : > { %s1159_s23 = sshll.u32 %s2001_s16, 10  ;;  %s1336_s24 = sshll.u32 %s2001_s16, 4 }
  0x10   : > { %s233_s25 = sadd.s32 %s1159_s23, %s2003_s22  ;;  %s241_s28 = scalar_lea.vmem %s1986_s1, %s1336_s24 }
  0x11   : > { %s1160_s29 = sshll.u32 %s233_s25, 2  ;;  %s1165_s30 = sshll.u32 %s233_s25, 3 }
  0x12   : > { %s1528_s7 = scalar_lea.vmem %s1985_s0, %s1160_s29  ;;  %s1533_s10 = scalar_lea.vmem %s1987_s2, %s1165_s30 }
  0x13   : > { %258 = sbr.rel (%p255_p9) target bundleno = 27 (0x1b), region = 32 }
  0x18   : > { %v1458_v0 = vmov 0.0  }
  0x19   : > { %259 = vst [vmem:[%s1988_s3] sm:$0x1] %v1458_v0 }
  0x1a   : > { %260 = vst [vmem:[%s1989_s4] sm:$0x1] %v1458_v0 }
  0x1b PF: > { %v1370_v1 = vld [vmem:[%s241_s28 + $0x8] sm:$0xff]  ;;  %v1369_v2 = vld [vmem:[%s241_s28] sm:$0xff]  ;;  %vm501_vm0 = vcmask 261120   ;;  %v1339_v8 = vld [vmem:[%s1528_s7 + $0x10] sm:$0xff] }
  0x1c   : > { %604 = vmatpush.bf16.msra.mxu0 %v1370_v1  ;;  %1371 = vmatpush.bf16.msra.mxu1 %v1370_v1  ;;  %v1337_v3 = vld [vmem:[%s1528_s7] sm:$0xff]  ;;  %v1338_v5 = vld [vmem:[%s1528_s7 + $0x8] sm:$0xff]  ;;  %v1347_v9 = vld [vmem:[%s1528_s7 + $0x50] sm:$0xff] }
  0x1d   : > { %1372 = vmatpush.bf16.msra.mxu2 %v1370_v1  ;;  %1373 = vmatpush.bf16.msra.mxu3 %v1370_v1  ;;  %v1345_v4 = vld [vmem:[%s1528_s7 + $0x40] sm:$0xff]  ;;  %v1346_v6 = vld [vmem:[%s1528_s7 + $0x48] sm:$0xff]  ;;  %v1340_v11 = vld [vmem:[%s1528_s7 + $0x18] sm:$0xff] }
  0x1e   : > { %v1353_v7 = vld [vmem:[%s1528_s7 + $0x80] sm:$0xff]  ;;  %v1354_v10 = vld [vmem:[%s1528_s7 + $0x88] sm:$0xff]  ;;  %v1348_v12 = vld [vmem:[%s1528_s7 + $0x58] sm:$0xff] }
  0x1f   : > { %v1355_v13 = vld [vmem:[%s1528_s7 + $0x90] sm:$0xff]  ;;  %v1361_v14 = vld [vmem:[%s1528_s7 + $0xc0] sm:$0xff]  ;;  %v1356_v17 = vld [vmem:[%s1528_s7 + $0x98] sm:$0xff] }
  0x20   : > { %605 = vmatpush.bf16.msra.mxu0 %v1369_v2  ;;  %1374 = vmatpush.bf16.msra.mxu1 %v1369_v2  ;;  %v1341_v15 = vld [vmem:[%s1528_s7 + $0x20] sm:$0xff]  ;;  %v1362_v18 = vld [vmem:[%s1528_s7 + $0xc8] sm:$0xff]  ;;  %v1363_v22 = vld [vmem:[%s1528_s7 + $0xd0] sm:$0xff] }
  0x21   : > { %1375 = vmatpush.bf16.msra.mxu2 %v1369_v2  ;;  %1376 = vmatpush.bf16.msra.mxu3 %v1369_v2  ;;  %v1349_v16 = vld [vmem:[%s1528_s7 + $0x60] sm:$0xff]  ;;  %v1342_v19 = vld [vmem:[%s1528_s7 + $0x28] sm:$0xff]  ;;  %v1343_v23 = vld [vmem:[%s1528_s7 + $0x30] sm:$0xff] }
  0x22   : > { %v1350_v20 = vld [vmem:[%s1528_s7 + $0x68] sm:$0xff]  ;;  %v1357_v21 = vld [vmem:[%s1528_s7 + $0xa0] sm:$0xff]  ;;  %v1351_v24 = vld [vmem:[%s1528_s7 + $0x70] sm:$0xff] }
  0x23   : > { %1302 = vmatmul.msk.bf16.vlgmr.msra.gmra.mxu0 %vm501_vm0, %v1337_v3  ;;  %1310 = vmatmul.msk.bf16.vlgmr.msra.gmra.mxu1 %vm501_vm0, %v1345_v4  ;;  %v1358_v25 = vld [vmem:[%s1528_s7 + $0xa8] sm:$0xff]  ;;  %v1364_v26 = vld [vmem:[%s1528_s7 + $0xd8] sm:$0xff]  ;;  %v1359_v29 = vld [vmem:[%s1528_s7 + $0xb0] sm:$0xff] }
  0x24   : > { %1318 = vmatmul.msk.bf16.vlgmr.msra.gmra.mxu2 %vm501_vm0, %v1353_v7  ;;  %1326 = vmatmul.msk.bf16.vlgmr.msra.gmra.mxu3 %vm501_vm0, %v1361_v14  ;;  %v1344_v27 = vld [vmem:[%s1528_s7 + $0x38] sm:$0xff]  ;;  %v1365_v30 = vld [vmem:[%s1528_s7 + $0xe0] sm:$0xff]  ;;  %v1366_v34 = vld [vmem:[%s1528_s7 + $0xe8] sm:$0xff] }
  0x25   : > { %v1352_v28 = vld [vmem:[%s1528_s7 + $0x78] sm:$0xff]  ;;  %v1367_v46 = vld [vmem:[%s1528_s7 + $0xf0] sm:$0xff] }
  0x26   : > { %v1360_v33 = vld [vmem:[%s1528_s7 + $0xb8] sm:$0xff] }
  0x27   : > { %v1368_v59 = vld [vmem:[%s1528_s7 + $0xf8] sm:$0xff] }
  0x33   : > { %1303 = vmatmul.msk.bf16.gmra.mxu0 %vm501_vm0, %v1338_v5  ;;  %1311 = vmatmul.msk.bf16.gmra.mxu1 %vm501_vm0, %v1346_v6 }
  0x34   : > { %1319 = vmatmul.msk.bf16.gmra.mxu2 %vm501_vm0, %v1354_v10  ;;  %1327 = vmatmul.msk.bf16.gmra.mxu3 %vm501_vm0, %v1362_v18 }
  0x43   : > { %1304 = vmatmul.msk.bf16.gmra.mxu0 %vm501_vm0, %v1339_v8  ;;  %1312 = vmatmul.msk.bf16.gmra.mxu1 %vm501_vm0, %v1347_v9 }
  0x44   : > { %1320 = vmatmul.msk.bf16.gmra.mxu2 %vm501_vm0, %v1355_v13  ;;  %1328 = vmatmul.msk.bf16.gmra.mxu3 %vm501_vm0, %v1363_v22 }
  0x53   : > { %1305 = vmatmul.msk.bf16.gmra.mxu0 %vm501_vm0, %v1340_v11  ;;  %1313 = vmatmul.msk.bf16.gmra.mxu1 %vm501_vm0, %v1348_v12 }
  0x54   : > { %1321 = vmatmul.msk.bf16.gmra.mxu2 %vm501_vm0, %v1356_v17  ;;  %1329 = vmatmul.msk.bf16.gmra.mxu3 %vm501_vm0, %v1364_v26 }
  0x63   : > { %1306 = vmatmul.msk.bf16.gmra.mxu0 %vm501_vm0, %v1341_v15  ;;  %1314 = vmatmul.msk.bf16.gmra.mxu1 %vm501_vm0, %v1349_v16 }
  0x64   : > { %1322 = vmatmul.msk.bf16.gmra.mxu2 %vm501_vm0, %v1357_v21  ;;  %1330 = vmatmul.msk.bf16.gmra.mxu3 %vm501_vm0, %v1365_v30 }
  0x73   : > { %1307 = vmatmul.msk.bf16.gmra.mxu0 %vm501_vm0, %v1342_v19  ;;  %1315 = vmatmul.msk.bf16.gmra.mxu1 %vm501_vm0, %v1350_v20 }
  0x74   : > { %1323 = vmatmul.msk.bf16.gmra.mxu2 %vm501_vm0, %v1358_v25  ;;  %1331 = vmatmul.msk.bf16.gmra.mxu3 %vm501_vm0, %v1366_v34 }
  0x83   : > { %1308 = vmatmul.msk.bf16.gmra.mxu0 %vm501_vm0, %v1343_v23  ;;  %1316 = vmatmul.msk.bf16.gmra.mxu1 %vm501_vm0, %v1351_v24 }
  0x84   : > { %1324 = vmatmul.msk.bf16.gmra.mxu2 %vm501_vm0, %v1359_v29  ;;  %1332 = vmatmul.msk.bf16.gmra.mxu3 %vm501_vm0, %v1367_v46 }
  0x93   : > { %1309 = vmatmul.msk.bf16.gmra.mxu0 %vm501_vm0, %v1344_v27  ;;  %1317 = vmatmul.msk.bf16.gmra.mxu1 %vm501_vm0, %v1352_v28 }
  0x94   : > { %1325 = vmatmul.msk.bf16.gmra.mxu2 %vm501_vm0, %v1360_v33  ;;  %1333 = vmatmul.msk.bf16.gmra.mxu3 %vm501_vm0, %v1368_v59 }
  0xa0   : > { %v607_v31 = vpop.f32.mrf.mxu0  ;;  %v1598_v32 = vpop.f32.mrf.mxu1 }
  0xa1   : > { %767 = vst [vmem:[%s1533_s10] sm:$0xff] %v607_v31  ;;  %v904_v37 = vmul.f32 %v607_v31, %v607_v31 }
  0xa2   : > { %783 = vst [vmem:[%s1533_s10 + $0x80] sm:$0xff] %v1598_v32 }
  0xa7   : > { %v1622_v51 = vpop.f32.mrf.mxu2  ;;  %v1666_v5 = vpop.f32.mrf.mxu3 }
  0xa8   : > { %v609_v35 = vpop.f32.mrf.mxu0  ;;  %v1607_v36 = vpop.f32.mrf.mxu1  ;;  %799 = vst [vmem:[%s1533_s10 + $0x100] sm:$0xff] %v1622_v51 }
  0xa9   : > { %768 = vst [vmem:[%s1533_s10 + $0x8] sm:$0xff] %v609_v35  ;;  %v832_v38 = vadd.f32 %v609_v35, %v607_v31  ;;  %v905_v39 = vmul.f32 %v609_v35, %v609_v35 }
  0xaa   : > { %784 = vst [vmem:[%s1533_s10 + $0x88] sm:$0xff] %v1607_v36 }
  0xab   : > { %v968_v40 = vadd.f32 %v905_v39, %v904_v37  ;;  %815 = vst [vmem:[%s1533_s10 + $0x180] sm:$0xff] %v1666_v5 }
  0xaf   : > { %v1633_v57 = vpop.f32.mrf.mxu2  ;;  %v1679_v9 = vpop.f32.mrf.mxu3 }
  0xb0   : > { %v612_v41 = vpop.f32.mrf.mxu0  ;;  %v1612_v42 = vpop.f32.mrf.mxu1  ;;  %800 = vst [vmem:[%s1533_s10 + $0x108] sm:$0xff] %v1633_v57 }
  0xb1   : > { %769 = vst [vmem:[%s1533_s10 + $0x10] sm:$0xff] %v612_v41  ;;  %v833_v43 = vadd.f32 %v832_v38, %v612_v41  ;;  %v906_v44 = vmul.f32 %v612_v41, %v612_v41 }
  0xb2   : > { %785 = vst [vmem:[%s1533_s10 + $0x90] sm:$0xff] %v1612_v42 }
  0xb3   : > { %v969_v45 = vadd.f32 %v968_v40, %v906_v44  ;;  %816 = vst [vmem:[%s1533_s10 + $0x188] sm:$0xff] %v1679_v9 }
  0xb7   : > { %v1646_v62 = vpop.f32.mrf.mxu2  ;;  %v1692_v13 = vpop.f32.mrf.mxu3 }
  0xb8   : > { %v614_v47 = vpop.f32.mrf.mxu0  ;;  %v1619_v48 = vpop.f32.mrf.mxu1  ;;  %801 = vst [vmem:[%s1533_s10 + $0x110] sm:$0xff] %v1646_v62 }
  0xb9   : > { %770 = vst [vmem:[%s1533_s10 + $0x18] sm:$0xff] %v614_v47  ;;  %v834_v49 = vadd.f32 %v833_v43, %v614_v47  ;;  %v907_v50 = vmul.f32 %v614_v47, %v614_v47 }
  0xba   : > { %786 = vst [vmem:[%s1533_s10 + $0x98] sm:$0xff] %v1619_v48 }
  0xbb   : > { %v970_v52 = vadd.f32 %v969_v45, %v907_v50  ;;  %817 = vst [vmem:[%s1533_s10 + $0x190] sm:$0xff] %v1692_v13 }
  0xbf   : > { %v1655_v1 = vpop.f32.mrf.mxu2  ;;  %v1705_v17 = vpop.f32.mrf.mxu3 }
  0xc0   : > { %v617_v53 = vpop.f32.mrf.mxu0  ;;  %v1628_v54 = vpop.f32.mrf.mxu1  ;;  %802 = vst [vmem:[%s1533_s10 + $0x118] sm:$0xff] %v1655_v1 }
  0xc1   : > { %771 = vst [vmem:[%s1533_s10 + $0x20] sm:$0xff] %v617_v53  ;;  %v1631_v55 = vadd.f32 %v834_v49, %v617_v53  ;;  %v908_v56 = vmul.f32 %v617_v53, %v617_v53 }
  0xc2   : > { %787 = vst [vmem:[%s1533_s10 + $0xa0] sm:$0xff] %v1628_v54 }
  0xc3   : > { %v1637_v58 = vadd.f32 %v970_v52, %v908_v56  ;;  %818 = vst [vmem:[%s1533_s10 + $0x198] sm:$0xff] %v1705_v17 }
  0xc7   : > { %v1664_v4 = vpop.f32.mrf.mxu2  ;;  %v1718_v21 = vpop.f32.mrf.mxu3 }
  0xc8   : > { %v619_v60 = vpop.f32.mrf.mxu0  ;;  %v1643_v61 = vpop.f32.mrf.mxu1  ;;  %803 = vst [vmem:[%s1533_s10 + $0x120] sm:$0xff] %v1664_v4 }
  0xc9   : > { %772 = vst [vmem:[%s1533_s10 + $0x28] sm:$0xff] %v619_v60  ;;  %v909_v26 = vmul.f32 %v619_v60, %v619_v60  ;;  %v836_v27 = vadd.f32 %v1631_v55, %v619_v60 }
  0xca   : > { %788 = vst [vmem:[%s1533_s10 + $0xa8] sm:$0xff] %v1643_v61 }
  0xcb   : > { %819 = vst [vmem:[%s1533_s10 + $0x1a0] sm:$0xff] %v1718_v21  ;;  %v972_v29 = vadd.f32 %v1637_v58, %v909_v26 }
  0xcf   : > { %v1677_v8 = vpop.f32.mrf.mxu2  ;;  %v1731_v25 = vpop.f32.mrf.mxu3 }
  0xd0   : > { %v622_v63 = vpop.f32.mrf.mxu0  ;;  %v1652_v0 = vpop.f32.mrf.mxu1  ;;  %804 = vst [vmem:[%s1533_s10 + $0x128] sm:$0xff] %v1677_v8 }
  0xd1   : > { %773 = vst [vmem:[%s1533_s10 + $0x30] sm:$0xff] %v622_v63  ;;  %v910_v28 = vmul.f32 %v622_v63, %v622_v63  ;;  %v837_v30 = vadd.f32 %v836_v27, %v622_v63 }
  0xd2   : > { %789 = vst [vmem:[%s1533_s10 + $0xb0] sm:$0xff] %v1652_v0 }
  0xd3   : > { %820 = vst [vmem:[%s1533_s10 + $0x1a8] sm:$0xff] %v1731_v25  ;;  %v973_v35 = vadd.f32 %v972_v29, %v910_v28 }
  0xd7   : > { %v1690_v12 = vpop.f32.mrf.mxu2  ;;  %v1746_v40 = vpop.f32.mrf.mxu3 }
  0xd8   : > { %v624_v2 = vpop.f32.mrf.mxu0  ;;  %v1661_v3 = vpop.f32.mrf.mxu1  ;;  %805 = vst [vmem:[%s1533_s10 + $0x130] sm:$0xff] %v1690_v12 }
  0xd9   : > { %774 = vst [vmem:[%s1533_s10 + $0x38] sm:$0xff] %v624_v2  ;;  %v911_v31 = vmul.f32 %v624_v2, %v624_v2  ;;  %v838_v37 = vadd.f32 %v837_v30, %v624_v2 }
  0xda   : > { %790 = vst [vmem:[%s1533_s10 + $0xb8] sm:$0xff] %v1661_v3 }
  0xdb   : > { %v974_v41 = vadd.f32 %v973_v35, %v911_v31  ;;  %821 = vst [vmem:[%s1533_s10 + $0x1b0] sm:$0xff] %v1746_v40 }
  0xdf   : > { %v1703_v16 = vpop.f32.mrf.mxu2  ;;  %v1759_v63 = vpop.f32.mrf.mxu3 }
  0xe0   : > { %v627_v6 = vpop.f32.mrf.mxu0  ;;  %v1674_v7 = vpop.f32.mrf.mxu1  ;;  %806 = vst [vmem:[%s1533_s10 + $0x138] sm:$0xff] %v1703_v16 }
  0xe1   : > { %775 = vst [vmem:[%s1533_s10 + $0x40] sm:$0xff] %v627_v6  ;;  %v912_v38 = vmul.f32 %v627_v6, %v627_v6  ;;  %v839_v43 = vadd.f32 %v838_v37, %v627_v6 }
  0xe2   : > { %791 = vst [vmem:[%s1533_s10 + $0xc0] sm:$0xff] %v1674_v7 }
  0xe3   : > { %v975_v45 = vadd.f32 %v974_v41, %v912_v38  ;;  %822 = vst [vmem:[%s1533_s10 + $0x1b8] sm:$0xff] %v1759_v63 }
  0xe7   : > { %v1716_v20 = vpop.f32.mrf.mxu2  ;;  %v1772_v38 = vpop.f32.mrf.mxu3 }
  0xe8   : > { %v629_v10 = vpop.f32.mrf.mxu0  ;;  %v1687_v11 = vpop.f32.mrf.mxu1  ;;  %807 = vst [vmem:[%s1533_s10 + $0x140] sm:$0xff] %v1716_v20 }
  0xe9   : > { %776 = vst [vmem:[%s1533_s10 + $0x48] sm:$0xff] %v629_v10  ;;  %v913_v44 = vmul.f32 %v629_v10, %v629_v10  ;;  %v840_v46 = vadd.f32 %v839_v43, %v629_v10 }
  0xea   : > { %792 = vst [vmem:[%s1533_s10 + $0xc8] sm:$0xff] %v1687_v11 }
  0xeb   : > { %v976_v49 = vadd.f32 %v975_v45, %v913_v44  ;;  %823 = vst [vmem:[%s1533_s10 + $0x1c0] sm:$0xff] %v1772_v38  ;;  %v921_v44 = vmul.f32 %v1607_v36, %v1607_v36 }
  0xef   : > { %v1729_v24 = vpop.f32.mrf.mxu2 }
  0xf0   : > { %v632_v14 = vpop.f32.mrf.mxu0  ;;  %v1700_v15 = vpop.f32.mrf.mxu1  ;;  %808 = vst [vmem:[%s1533_s10 + $0x148] sm:$0xff] %v1729_v24 }
  0xf1   : > { %777 = vst [vmem:[%s1533_s10 + $0x50] sm:$0xff] %v632_v14  ;;  %v914_v47 = vmul.f32 %v632_v14, %v632_v14  ;;  %v841_v50 = vadd.f32 %v840_v46, %v632_v14 }
  0xf2   : > { %793 = vst [vmem:[%s1533_s10 + $0xd0] sm:$0xff] %v1700_v15 }
  0xf3   : > { %v977_v56 = vadd.f32 %v976_v49, %v914_v47  ;;  %v922_v47 = vmul.f32 %v1612_v42, %v1612_v42 }
  0xf7   : > { %v1744_v39 = vpop.f32.mrf.mxu2 }
  0xf8   : > { %v634_v18 = vpop.f32.mrf.mxu0  ;;  %v1713_v19 = vpop.f32.mrf.mxu1  ;;  %809 = vst [vmem:[%s1533_s10 + $0x150] sm:$0xff] %v1744_v39 }
  0xf9   : > { %778 = vst [vmem:[%s1533_s10 + $0x58] sm:$0xff] %v634_v18  ;;  %v915_v52 = vmul.f32 %v634_v18, %v634_v18  ;;  %v842_v58 = vadd.f32 %v841_v50, %v634_v18 }
  0xfa   : > { %794 = vst [vmem:[%s1533_s10 + $0xd8] sm:$0xff] %v1713_v19 }
  0xfb   : > { %v978_v2 = vadd.f32 %v977_v56, %v915_v52 }
  0xff   : > { %v1757_v60 = vpop.f32.mrf.mxu2 }
 0x100   : > { %v637_v22 = vpop.f32.mrf.mxu0  ;;  %v1726_v23 = vpop.f32.mrf.mxu1  ;;  %810 = vst [vmem:[%s1533_s10 + $0x158] sm:$0xff] %v1757_v60 }
 0x101   : > { %779 = vst [vmem:[%s1533_s10 + $0x60] sm:$0xff] %v637_v22  ;;  %v916_v59 = vmul.f32 %v637_v22, %v637_v22  ;;  %v843_v6 = vadd.f32 %v842_v58, %v637_v22  ;;  %v1794_v58 = vpop.f32.mrf.mxu3 }
 0x102   : > { %795 = vst [vmem:[%s1533_s10 + $0xe0] sm:$0xff] %v1726_v23 }
 0x103   : > { %v979_v14 = vadd.f32 %v978_v2, %v916_v59  ;;  %824 = vst [vmem:[%s1533_s10 + $0x1c8] sm:$0xff] %v1794_v58 }
 0x107   : > { %v1770_v37 = vpop.f32.mrf.mxu2 }
 0x108   : > { %v639_v33 = vpop.f32.mrf.mxu0  ;;  %v1741_v34 = vpop.f32.mrf.mxu1  ;;  %811 = vst [vmem:[%s1533_s10 + $0x160] sm:$0xff] %v1770_v37 }
 0x109   : > { %780 = vst [vmem:[%s1533_s10 + $0x68] sm:$0xff] %v639_v33  ;;  %v917_v10 = vmul.f32 %v639_v33, %v639_v33  ;;  %v844_v26 = vadd.f32 %v843_v6, %v639_v33  ;;  %v920_v33 = vmul.f32 %v1598_v32, %v1598_v32 }
 0x10a   : > { %796 = vst [vmem:[%s1533_s10 + $0xe8] sm:$0xff] %v1741_v34 }
 0x10b   : > { %v980_v27 = vadd.f32 %v979_v14, %v917_v10  ;;  %v926_v10 = vmul.f32 %v1652_v0, %v1652_v0 }
 0x10f   : > { %v1792_v56 = vpop.f32.mrf.mxu2 }
 0x110   : > { %v642_v53 = vpop.f32.mrf.mxu0  ;;  %v1754_v55 = vpop.f32.mrf.mxu1  ;;  %812 = vst [vmem:[%s1533_s10 + $0x168] sm:$0xff] %v1792_v56 }
 0x111   : > { %781 = vst [vmem:[%s1533_s10 + $0x70] sm:$0xff] %v642_v53  ;;  %v918_v18 = vmul.f32 %v642_v53, %v642_v53  ;;  %v845_v28 = vadd.f32 %v844_v26, %v642_v53 }
 0x112   : > { %797 = vst [vmem:[%s1533_s10 + $0xf0] sm:$0xff] %v1754_v55 }
 0x113   : > { %v981_v31 = vadd.f32 %v980_v27, %v918_v18  ;;  %v927_v18 = vmul.f32 %v1661_v3, %v1661_v3 }
 0x118   : > { %v644_v29 = vpop.f32.mrf.mxu0  ;;  %v1767_v30 = vpop.f32.mrf.mxu1 }
 0x119   : > { %782 = vst [vmem:[%s1533_s10 + $0x78] sm:$0xff] %v644_v29  ;;  %v846_v35 = vadd.f32 %v845_v28, %v644_v29  ;;  %v919_v22 = vmul.f32 %v644_v29, %v644_v29  ;;  %v1812_v28 = vpop.f32.mrf.mxu2  ;;  %v1814_v29 = vpop.f32.mrf.mxu3 }
 0x11a   : > { %798 = vst [vmem:[%s1533_s10 + $0xf8] sm:$0xff] %v1767_v30 }
 0x11b   : > { %v847_v41 = vadd.f32 %v846_v35, %v1598_v32  ;;  %v982_v43 = vadd.f32 %v981_v31, %v919_v22  ;;  %v923_v32 = vmul.f32 %v1619_v48, %v1619_v48  ;;  %813 = vst [vmem:[%s1533_s10 + $0x170] sm:$0xff] %v1812_v28 }
 0x11c   : > { %825 = vst [vmem:[%s1533_s10 + $0x1d0] sm:$0xff] %v1814_v29 }
 0x11d   : > { %v848_v45 = vadd.f32 %v847_v41, %v1607_v36  ;;  %v983_v46 = vadd.f32 %v982_v43, %v920_v33  ;;  %v924_v36 = vmul.f32 %v1628_v54, %v1628_v54  ;;  %v930_v33 = vmul.f32 %v1700_v15, %v1700_v15 }
 0x11f   : > { %v849_v49 = vadd.f32 %v848_v45, %v1612_v42  ;;  %v984_v50 = vadd.f32 %v983_v46, %v921_v44  ;;  %v931_v44 = vmul.f32 %v1713_v19, %v1713_v19 }
 0x121   : > { %v850_v52 = vadd.f32 %v849_v49, %v1619_v48  ;;  %v985_v53 = vadd.f32 %v984_v50, %v922_v47  ;;  %v925_v48 = vmul.f32 %v1643_v61, %v1643_v61  ;;  %v1832_v46 = vpop.f32.mrf.mxu2  ;;  %v1834_v47 = vpop.f32.mrf.mxu3  ;;  %v932_v49 = vmul.f32 %v1726_v23, %v1726_v23 }
 0x122   : > { %814 = vst [vmem:[%s1533_s10 + $0x178] sm:$0xff] %v1832_v46 }
 0x123   : > { %v851_v59 = vadd.f32 %v850_v52, %v1628_v54  ;;  %v986_v42 = vadd.f32 %v985_v53, %v923_v32  ;;  %826 = vst [vmem:[%s1533_s10 + $0x1d8] sm:$0xff] %v1834_v47 }
 0x125   : > { %v852_v2 = vadd.f32 %v851_v59, %v1643_v61  ;;  %v987_v6 = vadd.f32 %v986_v42, %v924_v36  ;;  %v928_v61 = vmul.f32 %v1674_v7, %v1674_v7  ;;  %v934_v36 = vmul.f32 %v1754_v55, %v1754_v55 }
 0x127   : > { %v988_v14 = vadd.f32 %v987_v6, %v925_v48  ;;  %v853_v26 = vadd.f32 %v852_v2, %v1652_v0  ;;  %v929_v0 = vmul.f32 %v1687_v11, %v1687_v11 }
 0x129   : > { %v854_v54 = vadd.f32 %v853_v26, %v1661_v3  ;;  %v989_v27 = vadd.f32 %v988_v14, %v926_v10  ;;  %v1852_v48 = vpop.f32.mrf.mxu3 }
 0x12a   : > { %827 = vst [vmem:[%s1533_s10 + $0x1e0] sm:$0xff] %v1852_v48 }
 0x12b   : > { %v855_v31 = vadd.f32 %v854_v54, %v1674_v7  ;;  %v990_v35 = vadd.f32 %v989_v27, %v927_v18  ;;  %v939_v54 = vmul.f32 %v1655_v1, %v1655_v1 }
 0x12d   : > { %v856_v3 = vadd.f32 %v855_v31, %v1687_v11  ;;  %v991_v22 = vadd.f32 %v990_v35, %v928_v61 }
 0x12f   : > { %v857_v41 = vadd.f32 %v856_v3, %v1700_v15  ;;  %v992_v43 = vadd.f32 %v991_v22, %v929_v0 }
 0x131   : > { %v858_v7 = vadd.f32 %v857_v41, %v1713_v19  ;;  %v993_v45 = vadd.f32 %v992_v43, %v930_v33  ;;  %v933_v19 = vmul.f32 %v1741_v34, %v1741_v34  ;;  %v943_v41 = vmul.f32 %v1703_v16, %v1703_v16 }
 0x133   : > { %v859_v11 = vadd.f32 %v858_v7, %v1726_v23  ;;  %v994_v15 = vadd.f32 %v993_v45, %v931_v44  ;;  %v935_v23 = vmul.f32 %v1767_v30, %v1767_v30 }
 0x135   : > { %v995_v50 = vadd.f32 %v994_v15, %v932_v49  ;;  %v860_v32 = vadd.f32 %v859_v11, %v1741_v34  ;;  %v936_v34 = vmul.f32 %v1622_v51, %v1622_v51 }
 0x137   : > { %v996_v52 = vadd.f32 %v995_v50, %v933_v19  ;;  %v861_v53 = vadd.f32 %v860_v32, %v1754_v55  ;;  %v937_v55 = vmul.f32 %v1633_v57, %v1633_v57  ;;  %v947_v19 = vmul.f32 %v1757_v60, %v1757_v60 }
 0x139   : > { %v997_v59 = vadd.f32 %v996_v52, %v934_v36  ;;  %v862_v42 = vadd.f32 %v861_v53, %v1767_v30  ;;  %v938_v30 = vmul.f32 %v1646_v62, %v1646_v62 }
 0x13b   : > { %v863_v2 = vadd.f32 %v862_v42, %v1622_v51  ;;  %v998_v6 = vadd.f32 %v997_v59, %v935_v23  ;;  %v1868_v51 = vpop.f32.mrf.mxu3 }
 0x13c   : > { %828 = vst [vmem:[%s1533_s10 + $0x1e8] sm:$0xff] %v1868_v51 }
 0x13d   : > { %v864_v10 = vadd.f32 %v863_v2, %v1633_v57  ;;  %v999_v14 = vadd.f32 %v998_v6, %v936_v34  ;;  %v940_v57 = vmul.f32 %v1664_v4, %v1664_v4 }
 0x13f   : > { %v865_v26 = vadd.f32 %v864_v10, %v1646_v62  ;;  %v1000_v18 = vadd.f32 %v999_v14, %v937_v55  ;;  %v941_v62 = vmul.f32 %v1677_v8, %v1677_v8  ;;  %v951_v55 = vmul.f32 %v1832_v46, %v1832_v46 }
 0x141   : > { %v866_v27 = vadd.f32 %v865_v26, %v1655_v1  ;;  %v1001_v61 = vadd.f32 %v1000_v18, %v938_v30  ;;  %v942_v1 = vmul.f32 %v1690_v12, %v1690_v12 }
 0x143   : > { %v867_v31 = vadd.f32 %v866_v27, %v1664_v4  ;;  %v1002_v35 = vadd.f32 %v1001_v61, %v939_v54  ;;  %v1884_v4 = vpop.f32.mrf.mxu3 }
 0x144   : > { %829 = vst [vmem:[%s1533_s10 + $0x1f0] sm:$0xff] %v1884_v4 }
 0x145   : > { %v868_v0 = vadd.f32 %v867_v31, %v1677_v8  ;;  %v1003_v3 = vadd.f32 %v1002_v35, %v940_v57  ;;  %v944_v8 = vmul.f32 %v1716_v20, %v1716_v20 }
 0x147   : > { %v1004_v22 = vadd.f32 %v1003_v3, %v941_v62  ;;  %v869_v33 = vadd.f32 %v868_v0, %v1690_v12  ;;  %v945_v12 = vmul.f32 %v1729_v24, %v1729_v24 }
 0x149   : > { %v870_v43 = vadd.f32 %v869_v33, %v1703_v16  ;;  %v1005_v44 = vadd.f32 %v1004_v22, %v942_v1  ;;  %v946_v16 = vmul.f32 %v1744_v39, %v1744_v39 }
 0x14b   : > { %v871_v7 = vadd.f32 %v870_v43, %v1716_v20  ;;  %v1006_v45 = vadd.f32 %v1005_v44, %v943_v41  ;;  %v764_v20 = vpop.f32.mrf.mxu3 }
 0x14c   : > { %830 = vst [vmem:[%s1533_s10 + $0x1f8] sm:$0xff] %v764_v20 }
 0x14d   : > { %v872_v11 = vadd.f32 %v871_v7, %v1729_v24  ;;  %v1007_v49 = vadd.f32 %v1006_v45, %v944_v8  ;;  %v948_v24 = vmul.f32 %v1770_v37, %v1770_v37  ;;  %v963_v45 = vmul.f32 %v1834_v47, %v1834_v47 }
 0x14f   : > { %v873_v15 = vadd.f32 %v872_v11, %v1744_v39  ;;  %v1008_v50 = vadd.f32 %v1007_v49, %v945_v12  ;;  %v949_v39 = vmul.f32 %v1792_v56, %v1792_v56  ;;  %v964_v49 = vmul.f32 %v1852_v48, %v1852_v48 }
 0x151   : > { %v874_v32 = vadd.f32 %v873_v15, %v1757_v60  ;;  %v1009_v52 = vadd.f32 %v1008_v50, %v946_v16  ;;  %v950_v60 = vmul.f32 %v1812_v28, %v1812_v28  ;;  %v965_v15 = vmul.f32 %v1868_v51, %v1868_v51 }
 0x153   : > { %v1010_v53 = vadd.f32 %v1009_v52, %v947_v19  ;;  %v875_v36 = vadd.f32 %v874_v32, %v1770_v37  ;;  %v952_v37 = vmul.f32 %v1666_v5, %v1666_v5  ;;  %v966_v32 = vmul.f32 %v1884_v4, %v1884_v4 }
 0x154   : > { %v967_v52 = vmul.f32 %v764_v20, %v764_v20 }
 0x155   : > { %v1011_v59 = vadd.f32 %v1010_v53, %v948_v24  ;;  %v876_v42 = vadd.f32 %v875_v36, %v1792_v56  ;;  %v953_v56 = vmul.f32 %v1679_v9, %v1679_v9 }
 0x157   : > { %v1012_v23 = vadd.f32 %v1011_v59, %v949_v39  ;;  %v877_v34 = vadd.f32 %v876_v42, %v1812_v28  ;;  %v954_v28 = vmul.f32 %v1692_v13, %v1692_v13 }
 0x159   : > { %v1013_v2 = vadd.f32 %v1012_v23, %v950_v60  ;;  %v878_v6 = vadd.f32 %v877_v34, %v1832_v46  ;;  %v955_v46 = vmul.f32 %v1705_v17, %v1705_v17 }
 0x15b   : > { %v879_v10 = vadd.f32 %v878_v6, %v1666_v5  ;;  %v1014_v14 = vadd.f32 %v1013_v2, %v951_v55  ;;  %v956_v5 = vmul.f32 %v1718_v21, %v1718_v21 }
 0x15d   : > { %v880_v30 = vadd.f32 %v879_v10, %v1679_v9  ;;  %v1015_v26 = vadd.f32 %v1014_v14, %v952_v37  ;;  %v957_v9 = vmul.f32 %v1731_v25, %v1731_v25 }
 0x15f   : > { %v881_v18 = vadd.f32 %v880_v30, %v1692_v13  ;;  %v1016_v54 = vadd.f32 %v1015_v26, %v953_v56  ;;  %v958_v13 = vmul.f32 %v1746_v40, %v1746_v40 }
 0x161   : > { %v882_v27 = vadd.f32 %v881_v18, %v1705_v17  ;;  %v1017_v61 = vadd.f32 %v1016_v54, %v954_v28  ;;  %v959_v17 = vmul.f32 %v1759_v63, %v1759_v63 }
 0x163   : > { %v883_v57 = vadd.f32 %v882_v27, %v1718_v21  ;;  %v1018_v31 = vadd.f32 %v1017_v61, %v955_v46  ;;  %v960_v21 = vmul.f32 %v1772_v38, %v1772_v38 }
 0x165   : > { %v884_v35 = vadd.f32 %v883_v57, %v1731_v25  ;;  %v1019_v62 = vadd.f32 %v1018_v31, %v956_v5  ;;  %v961_v25 = vmul.f32 %v1794_v58, %v1794_v58 }
 0x167   : > { %v1020_v0 = vadd.f32 %v1019_v62, %v957_v9  ;;  %v885_v3 = vadd.f32 %v884_v35, %v1746_v40  ;;  %v962_v40 = vmul.f32 %v1814_v29, %v1814_v29 }
 0x169   : > { %v886_v1 = vadd.f32 %v885_v3, %v1759_v63  ;;  %v1021_v22 = vadd.f32 %v1020_v0, %v958_v13 }
 0x16b   : > { %v887_v33 = vadd.f32 %v886_v1, %v1772_v38  ;;  %v1022_v41 = vadd.f32 %v1021_v22, %v959_v17 }
 0x16d   : > { %v888_v43 = vadd.f32 %v887_v33, %v1794_v58  ;;  %v1023_v44 = vadd.f32 %v1022_v41, %v960_v21 }
 0x16f   : > { %v889_v8 = vadd.f32 %v888_v43, %v1814_v29  ;;  %v1024_v7 = vadd.f32 %v1023_v44, %v961_v25 }
 0x171   : > { %v890_v63 = vadd.f32 %v889_v8, %v1834_v47  ;;  %v1025_v12 = vadd.f32 %v1024_v7, %v962_v40 }
 0x173   : > { %v1026_v38 = vadd.f32 %v1025_v12, %v963_v45  ;;  %v891_v11 = vadd.f32 %v890_v63, %v1852_v48 }
 0x175   : > { %v1027_v58 = vadd.f32 %v1026_v38, %v964_v49  ;;  %v892_v16 = vadd.f32 %v891_v11, %v1868_v51  ;;  %v831_v51 = vld [vmem:[%s1988_s3] sm:$0x1] }
 0x177   : > { %v1028_v29 = vadd.f32 %v1027_v58, %v965_v15  ;;  %v893_v50 = vadd.f32 %v892_v16, %v1884_v4  ;;  %v903_v4 = vld [vmem:[%s1989_s4] sm:$0x1] }
 0x179   : > { %v1029_v47 = vadd.f32 %v1028_v29, %v966_v32  ;;  %v894_v19 = vadd.f32 %v893_v50, %v764_v20 }
 0x17b   : > { %v895_v53 = vrot.slane %v894_v19, 4  ;;  %v1030_v36 = vadd.f32 %v1029_v47, %v967_v52 }
 0x17d   : > { %v896_v24 = vadd.f32 %v895_v53, %v894_v19  ;;  %v1031_v59 = vrot.slane %v1030_v36, 4 }
 0x17f   : > { %v897_v48 = vrot.slane %v896_v24, 2  ;;  %v1032_v42 = vadd.f32 %v1031_v59, %v1030_v36 }
 0x181   : > { %v898_v39 = vadd.f32 %v897_v48, %v896_v24  ;;  %v1033_v23 = vrot.slane %v1032_v42, 2 }
 0x183   : > { %v899_v34 = vrot.slane %v898_v39, 1  ;;  %v1034_v60 = vadd.f32 %v1033_v23, %v1032_v42 }
 0x185   : > { %v900_v2 = vadd.f32 %v899_v34, %v898_v39  ;;  %v1035_v6 = vrot.slane %v1034_v60, 1 }
 0x187   : > { %v901_v20 = vadd.f32 %v900_v2, %v831_v51  ;;  %v1036_v55 = vadd.f32 %v1035_v6, %v1034_v60 }
 0x189   : > { %902 = vst [vmem:[%s1988_s3] sm:$0x1] %v901_v20  ;;  %v1037_v37 = vadd.f32 %v1036_v55, %v903_v4 }
 0x18b   : > { %1038 = vst [vmem:[%s1989_s4] sm:$0x1] %v1037_v37 }
 0x18c PF: > { %s15_s19 = sadd.s32 1, %s1456_s19   ;;  %s1990_s15 = smov %s1448_s17 }
 0x18d   : > { %p12_p10 = scmp.ge.s32.totalorder %s15_s19, 66   ;;  %s1991_s16 = smov %s1452_s18 }
 0x18e   : > { %s1992_s17 = smov %s1995_s20  ;;  %s1993_s18 = smov %s1999_s21 }
 0x18f   :  { %14 = sbr.rel (!%p12_p10) target bundleno = 3 (0x3), region = 81 }

// kernel: generator128_forward.18
= control target key start
LH: loop header
LB: loop body
LE: loop exit
PB: predicated region body
PF: predicated region fallthrough
CT: control target
= control target key end

     0   :  { %s998_s12 = smov 0   ;;  %s1000_s13 = smov 0   ;;  %s1291_s0 = inlined_call_operand.vmem [shape: f32[4,8192,128], index: 0, kind: input, shape index: {}]   ;;  %s1292_s1 = inlined_call_operand.vmem [shape: f32[1,128], index: 1, kind: input, shape index: {}]   ;;  %s1293_s2 = inlined_call_operand.vmem [shape: f32[1,128], index: 2, kind: input, shape index: {}]   ;;  %s1294_s3 = inlined_call_operand.vmem [shape: bf16[4,8192,128], index: 3, kind: output, shape index: {}]  }
   0x1   :  { %s1002_s14 = smov 0   ;;  %s1004_s15 = smov 0  }
   0x2   :  { %s1006_s16 = smov 0  }
   0x3 LB: > { %s22_s17 = sadd.s32 1, %s968_s14  ;;  %s25_s18 = sadd.s32 1, %s972_s15  ;;  %s976_s16 = sphi %s1006_s16, %s13_s16   ;;  %s972_s15 = sphi %s1004_s15, %s1298_s15   ;;  %s968_s14 = sphi %s1002_s14, %s1297_s14   ;;  %s964_s13 = sphi %s1000_s13, %s1296_s13   ;;  %s960_s12 = sphi %s998_s12, %s1295_s12  }
   0x4   : > { %p23_p0 = scmp.ge.s32.totalorder %s22_s17, 16  ;;  %p696_p1 = scmp.ge.s32.totalorder %s976_s16, 1 }
   0x5   : > { %p158_p2 = scmp.lt.s32.totalorder %s976_s16, 65 }
   0x6   : > { %s1300_s17 = smov (%p23_p0, %s22_s17), 0  ;;  %s1302_s18 = smov (!%p23_p0, %s25_s18), %s972_s15 }
   0x7   : > { %p159_p3 = pnand %p696_p1, %p158_p2  ;;  %p27_p4 = scmp.ge.s32.totalorder %s1302_s18, 4 }
   0x8   : > { %s697_s19 = sshll.u32 (!%p159_p3), %s960_s12, 6  ;;  %p191_p5 = scmp.lt.s32.totalorder (!%p159_p3), %s964_s13, 3 }
   0x9   : > { %s1304_s18 = smov (%p27_p4, %s1302_s18), 0  ;;  %162 = sbr.rel (%p159_p3) target bundleno = 82 (0x52), region = 32 }
   0xa   : > { %p193_p6 = scmp.lt.s32.totalorder (!%p159_p3), %s697_s19, 1023 }
   0xe   : > { %s1306_s13 = smov (!%p191_p5, %s964_s13), 3  ;;  %s1308_s19 = smov (!%p193_p6, %s697_s19), 1023  ;;  %v1033_v0 = vld [vmem:[%s1292_s1] ss:$0 sm:$0xff] }
   0xf   : > { %s698_s20 = sshll.u32 %s1306_s13, 10  ;;  %v1044_v1 = vld [vmem:[%s1293_s2] ss:$0 sm:$0xff] }
  0x10   : > { %s1028_s21 = sadd.s32 %s698_s20, %s1308_s19 }
  0x11   : > { %s699_s24 = sshll.u32 %s1028_s21, 3  ;;  %s702_s30 = sshll.u32 %s1028_s21, 2 }
  0x12   : > { %s1039_s27 = scalar_lea.vmem %s1291_s0, %s699_s24  ;;  %s1076_s6 = scalar_lea.vmem %s1294_s3, %s702_s30 }
  0x13   : > { %v210_v2 = vld [vmem:[%s1039_s27] sm:$0xff]  ;;  %v211_v3 = vld [vmem:[%s1039_s27 + $0x8] sm:$0xff]  ;;  %v212_v4 = vld [vmem:[%s1039_s27 + $0x10] sm:$0xff] }
  0x14   : > { %v278_v5 = vmul.f32 %v1033_v0, %v210_v2  ;;  %v279_v6 = vmul.f32 %v1033_v0, %v211_v3  ;;  %v213_v7 = vld [vmem:[%s1039_s27 + $0x18] sm:$0xff]  ;;  %v280_v8 = vmul.f32 %v1033_v0, %v212_v4  ;;  %v214_v9 = vld [vmem:[%s1039_s27 + $0x20] sm:$0xff]  ;;  %v215_v10 = vld [vmem:[%s1039_s27 + $0x28] sm:$0xff] }
  0x15   : > { %v281_v11 = vmul.f32 %v1033_v0, %v213_v7  ;;  %v282_v12 = vmul.f32 %v1033_v0, %v214_v9  ;;  %v283_v13 = vmul.f32 %v1033_v0, %v215_v10  ;;  %v216_v14 = vld [vmem:[%s1039_s27 + $0x30] sm:$0xff]  ;;  %v217_v15 = vld [vmem:[%s1039_s27 + $0x38] sm:$0xff]  ;;  %v218_v24 = vld [vmem:[%s1039_s27 + $0x40] sm:$0xff] }
  0x16   : > { %v346_v16 = vadd.f32 %v1044_v1, %v278_v5  ;;  %v347_v17 = vadd.f32 %v1044_v1, %v279_v6  ;;  %v348_v18 = vadd.f32 %v1044_v1, %v280_v8  ;;  %v284_v19 = vmul.f32 %v1033_v0, %v216_v14  ;;  %v219_v25 = vld [vmem:[%s1039_s27 + $0x48] sm:$0xff]  ;;  %v220_v30 = vld [vmem:[%s1039_s27 + $0x50] sm:$0xff]  ;;  %v221_v35 = vld [vmem:[%s1039_s27 + $0x58] sm:$0xff] }
  0x17   : > { %v349_v20 = vadd.f32 %v1044_v1, %v281_v11  ;;  %v350_v21 = vadd.f32 %v1044_v1, %v282_v12  ;;  %v351_v22 = vadd.f32 %v1044_v1, %v283_v13  ;;  %v285_v23 = vmul.f32 %v1033_v0, %v217_v15  ;;  %v222_v36 = vld [vmem:[%s1039_s27 + $0x60] sm:$0xff]  ;;  %v223_v41 = vld [vmem:[%s1039_s27 + $0x68] sm:$0xff]  ;;  %v224_v42 = vld [vmem:[%s1039_s27 + $0x70] sm:$0xff] }
  0x18   : > { %v410_v26 = vmax.f32 %v346_v16, 0.0  ;;  %v411_v27 = vmax.f32 %v347_v17, 0.0  ;;  %v412_v28 = vmax.f32 %v348_v18, 0.0  ;;  %v352_v29 = vadd.f32 %v1044_v1, %v284_v19  ;;  %v225_v51 = vld [vmem:[%s1039_s27 + $0x78] sm:$0xff]  ;;  %v226_v56 = vld [vmem:[%s1039_s27 + $0x80] sm:$0xff]  ;;  %v227_v61 = vld [vmem:[%s1039_s27 + $0x88] sm:$0xff] }
  0x19   : > { %v413_v31 = vmax.f32 %v349_v20, 0.0  ;;  %v414_v32 = vmax.f32 %v350_v21, 0.0  ;;  %v415_v33 = vmax.f32 %v351_v22, 0.0  ;;  %v353_v34 = vadd.f32 %v1044_v1, %v285_v23  ;;  %v228_v4 = vld [vmem:[%s1039_s27 + $0x90] sm:$0xff]  ;;  %v229_v5 = vld [vmem:[%s1039_s27 + $0x98] sm:$0xff]  ;;  %v230_v10 = vld [vmem:[%s1039_s27 + $0xa0] sm:$0xff] }
  0x1a   : > { %v708_v37 = vpack.c.bf16 %v411_v27, %v410_v26  ;;  %v416_v38 = vmax.f32 %v352_v29, 0.0  ;;  %v286_v39 = vmul.f32 %v1033_v0, %v218_v24  ;;  %v287_v40 = vmul.f32 %v1033_v0, %v219_v25  ;;  %v231_v15 = vld [vmem:[%s1039_s27 + $0xa8] sm:$0xff]  ;;  %v232_v20 = vld [vmem:[%s1039_s27 + $0xb0] sm:$0xff]  ;;  %v233_v25 = vld [vmem:[%s1039_s27 + $0xb8] sm:$0xff] }
  0x1b   : > { %v713_v43 = vpack.c.bf16 %v413_v31, %v412_v28  ;;  %v718_v44 = vpack.c.bf16 %v415_v33, %v414_v32  ;;  %v417_v45 = vmax.f32 %v353_v34, 0.0  ;;  %v288_v46 = vmul.f32 %v1033_v0, %v220_v30  ;;  %v234_v30 = vld [vmem:[%s1039_s27 + $0xc0] sm:$0xff] }
  0x1c   : > { %709 = vst [vmem:[%s1076_s6] sm:$0xff] %v708_v37   ;;  %v354_v47 = vadd.f32 %v1044_v1, %v286_v39  ;;  %v355_v48 = vadd.f32 %v1044_v1, %v287_v40  ;;  %v289_v49 = vmul.f32 %v1033_v0, %v221_v35  ;;  %v290_v50 = vmul.f32 %v1033_v0, %v222_v36  ;;  %v235_v35 = vld [vmem:[%s1039_s27 + $0xc8] sm:$0xff]  ;;  %v236_v40 = vld [vmem:[%s1039_s27 + $0xd0] sm:$0xff] }
  0x1d   : > { %865 = vst [vmem:[%s1076_s6 + $0x8] sm:$0xff] %v713_v43   ;;  %v723_v52 = vpack.c.bf16 %v417_v45, %v416_v38  ;;  %v356_v53 = vadd.f32 %v1044_v1, %v288_v46  ;;  %v291_v54 = vmul.f32 %v1033_v0, %v223_v41  ;;  %v292_v55 = vmul.f32 %v1033_v0, %v224_v42  ;;  %v237_v41 = vld [vmem:[%s1039_s27 + $0xd8] sm:$0xff]  ;;  %v238_v46 = vld [vmem:[%s1039_s27 + $0xe0] sm:$0xff] }
  0x1e   : > { %866 = vst [vmem:[%s1076_s6 + $0x10] sm:$0xff] %v718_v44   ;;  %v418_v57 = vmax.f32 %v354_v47, 0.0  ;;  %v419_v58 = vmax.f32 %v355_v48, 0.0  ;;  %v357_v59 = vadd.f32 %v1044_v1, %v289_v49  ;;  %v358_v60 = vadd.f32 %v1044_v1, %v290_v50 }
  0x1f   : > { %867 = vst [vmem:[%s1076_s6 + $0x18] sm:$0xff] %v723_v52   ;;  %v420_v62 = vmax.f32 %v356_v53, 0.0  ;;  %v359_v63 = vadd.f32 %v1044_v1, %v291_v54  ;;  %v293_v2 = vmul.f32 %v1033_v0, %v225_v51  ;;  %v360_v3 = vadd.f32 %v1044_v1, %v292_v55  ;;  %v239_v51 = vld [vmem:[%s1039_s27 + $0xe8] sm:$0xff] }
  0x20   : > { %v728_v6 = vpack.c.bf16 %v419_v58, %v418_v57  ;;  %v421_v7 = vmax.f32 %v357_v59, 0.0  ;;  %v422_v8 = vmax.f32 %v358_v60, 0.0  ;;  %v294_v9 = vmul.f32 %v1033_v0, %v226_v56  ;;  %v240_v56 = vld [vmem:[%s1039_s27 + $0xf0] sm:$0xff] }
  0x21   : > { %v423_v11 = vmax.f32 %v359_v63, 0.0  ;;  %v361_v12 = vadd.f32 %v1044_v1, %v293_v2  ;;  %v424_v13 = vmax.f32 %v360_v3, 0.0  ;;  %v295_v14 = vmul.f32 %v1033_v0, %v227_v61  ;;  %v241_v61 = vld [vmem:[%s1039_s27 + $0xf8] sm:$0xff] }
  0x22   : > { %868 = vst [vmem:[%s1076_s6 + $0x20] sm:$0xff] %v728_v6   ;;  %v733_v16 = vpack.c.bf16 %v421_v7, %v420_v62  ;;  %v362_v17 = vadd.f32 %v1044_v1, %v294_v9  ;;  %v296_v18 = vmul.f32 %v1033_v0, %v228_v4  ;;  %v297_v19 = vmul.f32 %v1033_v0, %v229_v5  ;;  %v242_v4 = vld [vmem:[%s1039_s27 + $0x100] sm:$0xff]  ;;  %v243_v9 = vld [vmem:[%s1039_s27 + $0x108] sm:$0xff] }
  0x23   : > { %v738_v21 = vpack.c.bf16 %v423_v11, %v422_v8  ;;  %v425_v22 = vmax.f32 %v361_v12, 0.0  ;;  %v363_v23 = vadd.f32 %v1044_v1, %v295_v14  ;;  %v298_v24 = vmul.f32 %v1033_v0, %v230_v10  ;;  %v244_v14 = vld [vmem:[%s1039_s27 + $0x110] sm:$0xff] }
  0x24   : > { %869 = vst [vmem:[%s1076_s6 + $0x28] sm:$0xff] %v733_v16   ;;  %v426_v26 = vmax.f32 %v362_v17, 0.0  ;;  %v364_v27 = vadd.f32 %v1044_v1, %v296_v18  ;;  %v365_v28 = vadd.f32 %v1044_v1, %v297_v19  ;;  %v299_v29 = vmul.f32 %v1033_v0, %v231_v15  ;;  %v245_v15 = vld [vmem:[%s1039_s27 + $0x118] sm:$0xff] }
  0x25   : > { %870 = vst [vmem:[%s1076_s6 + $0x30] sm:$0xff] %v738_v21   ;;  %v743_v31 = vpack.c.bf16 %v425_v22, %v424_v13  ;;  %v427_v32 = vmax.f32 %v363_v23, 0.0  ;;  %v366_v33 = vadd.f32 %v1044_v1, %v298_v24  ;;  %v300_v34 = vmul.f32 %v1033_v0, %v232_v20  ;;  %v246_v20 = vld [vmem:[%s1039_s27 + $0x120] sm:$0xff] }
  0x26   : > { %v428_v36 = vmax.f32 %v364_v27, 0.0  ;;  %v429_v37 = vmax.f32 %v365_v28, 0.0  ;;  %v367_v38 = vadd.f32 %v1044_v1, %v299_v29  ;;  %v301_v39 = vmul.f32 %v1033_v0, %v233_v25  ;;  %v247_v25 = vld [vmem:[%s1039_s27 + $0x128] sm:$0xff] }
  0x27   : > { %871 = vst [vmem:[%s1076_s6 + $0x38] sm:$0xff] %v743_v31   ;;  %v748_v42 = vpack.c.bf16 %v427_v32, %v426_v26  ;;  %v430_v43 = vmax.f32 %v366_v33, 0.0  ;;  %v368_v44 = vadd.f32 %v1044_v1, %v300_v34  ;;  %v302_v45 = vmul.f32 %v1033_v0, %v234_v30  ;;  %v248_v30 = vld [vmem:[%s1039_s27 + $0x130] sm:$0xff] }
  0x28   : > { %v753_v47 = vpack.c.bf16 %v429_v37, %v428_v36  ;;  %v431_v48 = vmax.f32 %v367_v38, 0.0  ;;  %v369_v49 = vadd.f32 %v1044_v1, %v301_v39  ;;  %v303_v50 = vmul.f32 %v1033_v0, %v235_v35  ;;  %v249_v35 = vld [vmem:[%s1039_s27 + $0x138] sm:$0xff] }
  0x29   : > { %872 = vst [vmem:[%s1076_s6 + $0x40] sm:$0xff] %v748_v42   ;;  %v432_v52 = vmax.f32 %v368_v44, 0.0  ;;  %v370_v53 = vadd.f32 %v1044_v1, %v302_v45  ;;  %v304_v54 = vmul.f32 %v1033_v0, %v236_v40  ;;  %v305_v55 = vmul.f32 %v1033_v0, %v237_v41  ;;  %v250_v40 = vld [vmem:[%s1039_s27 + $0x140] sm:$0xff]  ;;  %v251_v45 = vld [vmem:[%s1039_s27 + $0x148] sm:$0xff] }
  0x2a   : > { %873 = vst [vmem:[%s1076_s6 + $0x48] sm:$0xff] %v753_v47   ;;  %v758_v57 = vpack.c.bf16 %v431_v48, %v430_v43  ;;  %v433_v58 = vmax.f32 %v369_v49, 0.0  ;;  %v371_v59 = vadd.f32 %v1044_v1, %v303_v50  ;;  %v306_v60 = vmul.f32 %v1033_v0, %v238_v46  ;;  %v252_v50 = vld [vmem:[%s1039_s27 + $0x150] sm:$0xff] }
  0x2b   : > { %v434_v62 = vmax.f32 %v370_v53, 0.0  ;;  %v372_v63 = vadd.f32 %v1044_v1, %v304_v54  ;;  %v373_v2 = vadd.f32 %v1044_v1, %v305_v55  ;;  %v307_v3 = vmul.f32 %v1033_v0, %v239_v51  ;;  %v253_v51 = vld [vmem:[%s1039_s27 + $0x158] sm:$0xff] }
  0x2c   : > { %874 = vst [vmem:[%s1076_s6 + $0x50] sm:$0xff] %v758_v57   ;;  %v763_v5 = vpack.c.bf16 %v433_v58, %v432_v52  ;;  %v435_v6 = vmax.f32 %v371_v59, 0.0  ;;  %v374_v7 = vadd.f32 %v1044_v1, %v306_v60  ;;  %v308_v8 = vmul.f32 %v1033_v0, %v240_v56  ;;  %v254_v56 = vld [vmem:[%s1039_s27 + $0x160] sm:$0xff] }
  0x2d   : > { %v436_v10 = vmax.f32 %v372_v63, 0.0  ;;  %v437_v11 = vmax.f32 %v373_v2, 0.0  ;;  %v375_v12 = vadd.f32 %v1044_v1, %v307_v3  ;;  %v309_v13 = vmul.f32 %v1033_v0, %v241_v61  ;;  %v255_v61 = vld [vmem:[%s1039_s27 + $0x168] sm:$0xff] }
  0x2e   : > { %875 = vst [vmem:[%s1076_s6 + $0x58] sm:$0xff] %v763_v5   ;;  %v768_v16 = vpack.c.bf16 %v435_v6, %v434_v62  ;;  %v438_v17 = vmax.f32 %v374_v7, 0.0  ;;  %v376_v18 = vadd.f32 %v1044_v1, %v308_v8  ;;  %v310_v19 = vmul.f32 %v1033_v0, %v242_v4  ;;  %v256_v4 = vld [vmem:[%s1039_s27 + $0x170] sm:$0xff] }
  0x2f   : > { %v773_v21 = vpack.c.bf16 %v437_v11, %v436_v10  ;;  %v439_v22 = vmax.f32 %v375_v12, 0.0  ;;  %v377_v23 = vadd.f32 %v1044_v1, %v309_v13  ;;  %v311_v24 = vmul.f32 %v1033_v0, %v243_v9  ;;  %v257_v9 = vld [vmem:[%s1039_s27 + $0x178] sm:$0xff] }
  0x30   : > { %876 = vst [vmem:[%s1076_s6 + $0x60] sm:$0xff] %v768_v16   ;;  %v440_v26 = vmax.f32 %v376_v18, 0.0  ;;  %v378_v27 = vadd.f32 %v1044_v1, %v310_v19  ;;  %v312_v28 = vmul.f32 %v1033_v0, %v244_v14  ;;  %v313_v29 = vmul.f32 %v1033_v0, %v245_v15  ;;  %v258_v14 = vld [vmem:[%s1039_s27 + $0x180] sm:$0xff]  ;;  %v259_v19 = vld [vmem:[%s1039_s27 + $0x188] sm:$0xff] }
  0x31   : > { %877 = vst [vmem:[%s1076_s6 + $0x68] sm:$0xff] %v773_v21   ;;  %v778_v31 = vpack.c.bf16 %v439_v22, %v438_v17  ;;  %v441_v32 = vmax.f32 %v377_v23, 0.0  ;;  %v379_v33 = vadd.f32 %v1044_v1, %v311_v24  ;;  %v314_v34 = vmul.f32 %v1033_v0, %v246_v20  ;;  %v260_v24 = vld [vmem:[%s1039_s27 + $0x190] sm:$0xff] }
  0x32   : > { %v442_v36 = vmax.f32 %v378_v27, 0.0  ;;  %v380_v37 = vadd.f32 %v1044_v1, %v312_v28  ;;  %v381_v38 = vadd.f32 %v1044_v1, %v313_v29  ;;  %v315_v39 = vmul.f32 %v1033_v0, %v247_v25  ;;  %v261_v25 = vld [vmem:[%s1039_s27 + $0x198] sm:$0xff] }
  0x33   : > { %878 = vst [vmem:[%s1076_s6 + $0x70] sm:$0xff] %v778_v31   ;;  %v783_v41 = vpack.c.bf16 %v441_v32, %v440_v26  ;;  %v443_v42 = vmax.f32 %v379_v33, 0.0  ;;  %v382_v43 = vadd.f32 %v1044_v1, %v314_v34  ;;  %v316_v44 = vmul.f32 %v1033_v0, %v248_v30  ;;  %v262_v30 = vld [vmem:[%s1039_s27 + $0x1a0] sm:$0xff] }
  0x34   : > { %v444_v46 = vmax.f32 %v380_v37, 0.0  ;;  %v445_v47 = vmax.f32 %v381_v38, 0.0  ;;  %v383_v48 = vadd.f32 %v1044_v1, %v315_v39  ;;  %v317_v49 = vmul.f32 %v1033_v0, %v249_v35  ;;  %v263_v35 = vld [vmem:[%s1039_s27 + $0x1a8] sm:$0xff] }
  0x35   : > { %879 = vst [vmem:[%s1076_s6 + $0x78] sm:$0xff] %v783_v41   ;;  %v788_v52 = vpack.c.bf16 %v443_v42, %v442_v36  ;;  %v446_v53 = vmax.f32 %v382_v43, 0.0  ;;  %v384_v54 = vadd.f32 %v1044_v1, %v316_v44  ;;  %v318_v55 = vmul.f32 %v1033_v0, %v250_v40  ;;  %v264_v40 = vld [vmem:[%s1039_s27 + $0x1b0] sm:$0xff] }
  0x36   : > { %v793_v57 = vpack.c.bf16 %v445_v47, %v444_v46  ;;  %v447_v58 = vmax.f32 %v383_v48, 0.0  ;;  %v385_v59 = vadd.f32 %v1044_v1, %v317_v49  ;;  %v319_v60 = vmul.f32 %v1033_v0, %v251_v45  ;;  %v265_v45 = vld [vmem:[%s1039_s27 + $0x1b8] sm:$0xff] }
  0x37   : > { %880 = vst [vmem:[%s1076_s6 + $0x80] sm:$0xff] %v788_v52   ;;  %v448_v62 = vmax.f32 %v384_v54, 0.0  ;;  %v386_v63 = vadd.f32 %v1044_v1, %v318_v55  ;;  %v320_v2 = vmul.f32 %v1033_v0, %v252_v50  ;;  %v321_v3 = vmul.f32 %v1033_v0, %v253_v51  ;;  %v266_v50 = vld [vmem:[%s1039_s27 + $0x1c0] sm:$0xff]  ;;  %v267_v55 = vld [vmem:[%s1039_s27 + $0x1c8] sm:$0xff] }
  0x38   : > { %881 = vst [vmem:[%s1076_s6 + $0x88] sm:$0xff] %v793_v57   ;;  %v798_v5 = vpack.c.bf16 %v447_v58, %v446_v53  ;;  %v449_v6 = vmax.f32 %v385_v59, 0.0  ;;  %v387_v7 = vadd.f32 %v1044_v1, %v319_v60  ;;  %v322_v8 = vmul.f32 %v1033_v0, %v254_v56  ;;  %v268_v60 = vld [vmem:[%s1039_s27 + $0x1d0] sm:$0xff] }
  0x39   : > { %v450_v10 = vmax.f32 %v386_v63, 0.0  ;;  %v388_v11 = vadd.f32 %v1044_v1, %v320_v2  ;;  %v389_v12 = vadd.f32 %v1044_v1, %v321_v3  ;;  %v323_v13 = vmul.f32 %v1033_v0, %v255_v61  ;;  %v269_v61 = vld [vmem:[%s1039_s27 + $0x1d8] sm:$0xff] }
  0x3a   : > { %882 = vst [vmem:[%s1076_s6 + $0x90] sm:$0xff] %v798_v5   ;;  %v803_v15 = vpack.c.bf16 %v449_v6, %v448_v62  ;;  %v451_v16 = vmax.f32 %v387_v7, 0.0  ;;  %v390_v17 = vadd.f32 %v1044_v1, %v322_v8  ;;  %v324_v18 = vmul.f32 %v1033_v0, %v256_v4  ;;  %v270_v4 = vld [vmem:[%s1039_s27 + $0x1e0] sm:$0xff] }
  0x3b   : > { %v452_v20 = vmax.f32 %v388_v11, 0.0  ;;  %v453_v21 = vmax.f32 %v389_v12, 0.0  ;;  %v391_v22 = vadd.f32 %v1044_v1, %v323_v13  ;;  %v325_v23 = vmul.f32 %v1033_v0, %v257_v9  ;;  %v271_v9 = vld [vmem:[%s1039_s27 + $0x1e8] sm:$0xff] }
  0x3c   : > { %883 = vst [vmem:[%s1076_s6 + $0x98] sm:$0xff] %v803_v15   ;;  %v808_v26 = vpack.c.bf16 %v451_v16, %v450_v10  ;;  %v454_v27 = vmax.f32 %v390_v17, 0.0  ;;  %v392_v28 = vadd.f32 %v1044_v1, %v324_v18  ;;  %v326_v29 = vmul.f32 %v1033_v0, %v258_v14  ;;  %v272_v14 = vld [vmem:[%s1039_s27 + $0x1f0] sm:$0xff] }
  0x3d   : > { %v813_v31 = vpack.c.bf16 %v453_v21, %v452_v20  ;;  %v455_v32 = vmax.f32 %v391_v22, 0.0  ;;  %v393_v33 = vadd.f32 %v1044_v1, %v325_v23  ;;  %v327_v34 = vmul.f32 %v1033_v0, %v259_v19  ;;  %v273_v19 = vld [vmem:[%s1039_s27 + $0x1f8] sm:$0xff] }
  0x3e   : > { %884 = vst [vmem:[%s1076_s6 + $0xa0] sm:$0xff] %v808_v26   ;;  %v456_v36 = vmax.f32 %v392_v28, 0.0  ;;  %v394_v37 = vadd.f32 %v1044_v1, %v326_v29  ;;  %v328_v38 = vmul.f32 %v1033_v0, %v260_v24  ;;  %v329_v39 = vmul.f32 %v1033_v0, %v261_v25 }
  0x3f   : > { %885 = vst [vmem:[%s1076_s6 + $0xa8] sm:$0xff] %v813_v31   ;;  %v818_v41 = vpack.c.bf16 %v455_v32, %v454_v27  ;;  %v457_v42 = vmax.f32 %v393_v33, 0.0  ;;  %v395_v43 = vadd.f32 %v1044_v1, %v327_v34  ;;  %v330_v44 = vmul.f32 %v1033_v0, %v262_v30 }
  0x40   : > { %v458_v46 = vmax.f32 %v394_v37, 0.0  ;;  %v396_v47 = vadd.f32 %v1044_v1, %v328_v38  ;;  %v397_v48 = vadd.f32 %v1044_v1, %v329_v39  ;;  %v331_v49 = vmul.f32 %v1033_v0, %v263_v35 }
  0x41   : > { %886 = vst [vmem:[%s1076_s6 + $0xb0] sm:$0xff] %v818_v41   ;;  %v823_v51 = vpack.c.bf16 %v457_v42, %v456_v36  ;;  %v459_v52 = vmax.f32 %v395_v43, 0.0  ;;  %v398_v53 = vadd.f32 %v1044_v1, %v330_v44  ;;  %v332_v54 = vmul.f32 %v1033_v0, %v264_v40 }
  0x42   : > { %v460_v56 = vmax.f32 %v396_v47, 0.0  ;;  %v461_v57 = vmax.f32 %v397_v48, 0.0  ;;  %v399_v58 = vadd.f32 %v1044_v1, %v331_v49  ;;  %v333_v59 = vmul.f32 %v1033_v0, %v265_v45 }
  0x43   : > { %887 = vst [vmem:[%s1076_s6 + $0xb8] sm:$0xff] %v823_v51   ;;  %v828_v62 = vpack.c.bf16 %v459_v52, %v458_v46  ;;  %v462_v63 = vmax.f32 %v398_v53, 0.0  ;;  %v400_v2 = vadd.f32 %v1044_v1, %v332_v54  ;;  %v334_v3 = vmul.f32 %v1033_v0, %v266_v50 }
  0x44   : > { %v833_v5 = vpack.c.bf16 %v461_v57, %v460_v56  ;;  %v463_v6 = vmax.f32 %v399_v58, 0.0  ;;  %v401_v7 = vadd.f32 %v1044_v1, %v333_v59  ;;  %v335_v8 = vmul.f32 %v1033_v0, %v267_v55 }
  0x45   : > { %888 = vst [vmem:[%s1076_s6 + $0xc0] sm:$0xff] %v828_v62   ;;  %v464_v10 = vmax.f32 %v400_v2, 0.0  ;;  %v402_v11 = vadd.f32 %v1044_v1, %v334_v3  ;;  %v336_v12 = vmul.f32 %v1033_v0, %v268_v60  ;;  %v337_v13 = vmul.f32 %v1033_v0, %v269_v61 }
  0x46   : > { %889 = vst [vmem:[%s1076_s6 + $0xc8] sm:$0xff] %v833_v5   ;;  %v838_v15 = vpack.c.bf16 %v463_v6, %v462_v63  ;;  %v465_v16 = vmax.f32 %v401_v7, 0.0  ;;  %v403_v17 = vadd.f32 %v1044_v1, %v335_v8  ;;  %v338_v18 = vmul.f32 %v1033_v0, %v270_v4 }
  0x47   : > { %v466_v20 = vmax.f32 %v402_v11, 0.0  ;;  %v404_v21 = vadd.f32 %v1044_v1, %v336_v12  ;;  %v405_v22 = vadd.f32 %v1044_v1, %v337_v13  ;;  %v339_v23 = vmul.f32 %v1033_v0, %v271_v9 }
  0x48   : > { %890 = vst [vmem:[%s1076_s6 + $0xd0] sm:$0xff] %v838_v15   ;;  %v843_v24 = vpack.c.bf16 %v465_v16, %v464_v10  ;;  %v467_v25 = vmax.f32 %v403_v17, 0.0  ;;  %v406_v26 = vadd.f32 %v1044_v1, %v338_v18  ;;  %v340_v27 = vmul.f32 %v1033_v0, %v272_v14 }
  0x49   : > { %v468_v28 = vmax.f32 %v404_v21, 0.0  ;;  %v469_v29 = vmax.f32 %v405_v22, 0.0  ;;  %v407_v30 = vadd.f32 %v1044_v1, %v339_v23  ;;  %v341_v31 = vmul.f32 %v1033_v0, %v273_v19 }
  0x4a   : > { %891 = vst [vmem:[%s1076_s6 + $0xd8] sm:$0xff] %v843_v24   ;;  %v848_v32 = vpack.c.bf16 %v467_v25, %v466_v20  ;;  %v470_v33 = vmax.f32 %v406_v26, 0.0  ;;  %v408_v34 = vadd.f32 %v1044_v1, %v340_v27 }
  0x4b   : > { %v853_v35 = vpack.c.bf16 %v469_v29, %v468_v28  ;;  %v471_v36 = vmax.f32 %v407_v30, 0.0  ;;  %v409_v37 = vadd.f32 %v1044_v1, %v341_v31 }
  0x4c   : > { %892 = vst [vmem:[%s1076_s6 + $0xe0] sm:$0xff] %v848_v32   ;;  %v472_v38 = vmax.f32 %v408_v34, 0.0 }
  0x4d   : > { %893 = vst [vmem:[%s1076_s6 + $0xe8] sm:$0xff] %v853_v35   ;;  %v858_v39 = vpack.c.bf16 %v471_v36, %v470_v33  ;;  %v473_v40 = vmax.f32 %v409_v37, 0.0 }
  0x4f   : > { %894 = vst [vmem:[%s1076_s6 + $0xf0] sm:$0xff] %v858_v39   ;;  %v863_v41 = vpack.c.bf16 %v473_v40, %v472_v38 }
  0x51   : > { %895 = vst [vmem:[%s1076_s6 + $0xf8] sm:$0xff] %v863_v41  }
  0x52 PF: > { %s13_s16 = sadd.s32 1, %s976_s16   ;;  %s1295_s12 = smov %s968_s14 }
  0x53   : > { %p10_p7 = scmp.ge.s32.totalorder %s13_s16, 66   ;;  %s1296_s13 = smov %s972_s15 }
  0x54   : > { %s1297_s14 = smov %s1300_s17  ;;  %s1298_s15 = smov %s1304_s18 }
  0x55   :  { %12 = sbr.rel (!%p10_p7) target bundleno = 3 (0x3), region = 62 }

// kernel: generator128_forward.19
= control target key start
LH: loop header
LB: loop body
LE: loop exit
PB: predicated region body
PF: predicated region fallthrough
CT: control target
= control target key end

     0   :  { %s1227_s9 = smov 0   ;;  %s1389_s0 = inlined_call_operand.vmem [shape: bf16[32768,36], index: 0, kind: input, shape index: {}]   ;;  %s1390_s1 = inlined_call_operand.vmem [shape: bf16[36,128], index: 1, kind: input, shape index: {}]   ;;  %s1391_s2 = inlined_call_operand.vmem [shape: f32[32768,128], index: 2, kind: output, shape index: {}]  }
   0x1 LB: > { %s846_s10 = sadd.s32 4294967295, %s1210_s9   ;;  %p850_p0 = scmp.ge.s32.totalorder %s1210_s9, 1  ;;  %s1210_s9 = sphi %s1227_s9, %s12_s9  }
   0x2   : > { %p113_p1 = scmp.lt.s32.totalorder %s1210_s9, 65 }
   0x4   : > { %p114_p2 = pnand %p850_p0, %p113_p1 }
   0x5   : > { %s851_s13 = sshll.u32 (!%p114_p2), %s846_s10, 6 }
   0x6   : > { %117 = sbr.rel (%p114_p2) target bundleno = 290 (0x122), region = 28  ;;  %p136_p3 = scmp.lt.s32.totalorder (!%p114_p2), %s851_s13, 4095 }
   0xb   : > { %v216_v0 = vld [vmem:[%s1390_s1 + $0x10] sm:$0x3]  ;;  %vm489_vm0 = vcmask 1041408   ;;  %s1393_s13 = smov (!%p136_p3, %s851_s13), 4095  ;;  %v1058_v4 = vld [vmem:[%s1390_s1 + $0x8] sm:$0xff]  ;;  %v1057_v5 = vld [vmem:[%s1390_s1] sm:$0xff] }
   0xc   : > { %v386_v1 = vunpack.c.l.b16 %v216_v0  ;;  %s852_s16 = sshll.u32 %s1393_s13, 2  ;;  %vm392_vm1 = vcmask 293888   ;;  %s854_s22 = sshll.u32 %s1393_s13, 3 }
   0xd   : > { %s1250_s21 = scalar_lea.vmem %s1389_s0, %s852_s16  ;;  %s1320_s25 = scalar_lea.vmem %s1391_s2, %s854_s22 }
   0xe   : > { %v389_v2 = vpack.c.b16 %v386_v1, %v386_v1  ;;  %v1025_v6 = vld [vmem:[%s1250_s21] sm:$0xff]  ;;  %v1026_v10 = vld [vmem:[%s1250_s21 + $0x8] sm:$0xff]  ;;  %v1027_v14 = vld [vmem:[%s1250_s21 + $0x10] sm:$0xff] }
   0xf   : > { %v1033_v7 = vld [vmem:[%s1250_s21 + $0x40] sm:$0xff]  ;;  %v1034_v11 = vld [vmem:[%s1250_s21 + $0x48] sm:$0xff]  ;;  %v1035_v15 = vld [vmem:[%s1250_s21 + $0x50] sm:$0xff] }
  0x10   : > { %v491_v3 = vsel %vm489_vm0, %v389_v2, 0  ;;  %v1041_v8 = vld [vmem:[%s1250_s21 + $0x80] sm:$0xff]  ;;  %v1042_v12 = vld [vmem:[%s1250_s21 + $0x88] sm:$0xff]  ;;  %v1043_v16 = vld [vmem:[%s1250_s21 + $0x90] sm:$0xff] }
  0x11   : > { %498 = vmatpush.bf16.msra.mxu0 %v491_v3  ;;  %1059 = vmatpush.bf16.msra.mxu1 %v491_v3  ;;  %v1049_v9 = vld [vmem:[%s1250_s21 + $0xc0] sm:$0xff]  ;;  %v1050_v13 = vld [vmem:[%s1250_s21 + $0xc8] sm:$0xff]  ;;  %v1051_v17 = vld [vmem:[%s1250_s21 + $0xd0] sm:$0xff] }
  0x12   : > { %1060 = vmatpush.bf16.msra.mxu2 %v491_v3  ;;  %1061 = vmatpush.bf16.msra.mxu3 %v491_v3  ;;  %v1028_v18 = vld [vmem:[%s1250_s21 + $0x18] sm:$0xff]  ;;  %v1029_v22 = vld [vmem:[%s1250_s21 + $0x20] sm:$0xff]  ;;  %v1030_v26 = vld [vmem:[%s1250_s21 + $0x28] sm:$0xff] }
  0x13   : > { %v1036_v19 = vld [vmem:[%s1250_s21 + $0x58] sm:$0xff]  ;;  %v1037_v23 = vld [vmem:[%s1250_s21 + $0x60] sm:$0xff]  ;;  %v1038_v27 = vld [vmem:[%s1250_s21 + $0x68] sm:$0xff] }
  0x14   : > { %v1044_v20 = vld [vmem:[%s1250_s21 + $0x98] sm:$0xff]  ;;  %v1045_v24 = vld [vmem:[%s1250_s21 + $0xa0] sm:$0xff]  ;;  %v1046_v28 = vld [vmem:[%s1250_s21 + $0xa8] sm:$0xff] }
  0x15   : > { %499 = vmatpush.bf16.msra.mxu0 %v1058_v4  ;;  %1062 = vmatpush.bf16.msra.mxu1 %v1058_v4  ;;  %v1052_v21 = vld [vmem:[%s1250_s21 + $0xd8] sm:$0xff]  ;;  %v1053_v25 = vld [vmem:[%s1250_s21 + $0xe0] sm:$0xff]  ;;  %v1054_v29 = vld [vmem:[%s1250_s21 + $0xe8] sm:$0xff] }
  0x16   : > { %1063 = vmatpush.bf16.msra.mxu2 %v1058_v4  ;;  %1064 = vmatpush.bf16.msra.mxu3 %v1058_v4  ;;  %v1031_v30 = vld [vmem:[%s1250_s21 + $0x30] sm:$0xff]  ;;  %v1032_v34 = vld [vmem:[%s1250_s21 + $0x38] sm:$0xff] }
  0x17   : > { %v1039_v31 = vld [vmem:[%s1250_s21 + $0x70] sm:$0xff]  ;;  %v1040_v35 = vld [vmem:[%s1250_s21 + $0x78] sm:$0xff] }
  0x18   : > { %v1047_v32 = vld [vmem:[%s1250_s21 + $0xb0] sm:$0xff]  ;;  %v1048_v36 = vld [vmem:[%s1250_s21 + $0xb8] sm:$0xff] }
  0x19   : > { %500 = vmatpush.bf16.msra.mxu0 %v1057_v5  ;;  %1065 = vmatpush.bf16.msra.mxu1 %v1057_v5  ;;  %v1055_v33 = vld [vmem:[%s1250_s21 + $0xf0] sm:$0xff]  ;;  %v1056_v37 = vld [vmem:[%s1250_s21 + $0xf8] sm:$0xff] }
  0x1a   : > { %1066 = vmatpush.bf16.msra.mxu2 %v1057_v5  ;;  %1067 = vmatpush.bf16.msra.mxu3 %v1057_v5 }
  0x1c   : > { %991 = vmatmul.msk.bf16.vlgmr.msra.gmra.mxu0 %vm392_vm1, %v1025_v6  ;;  %999 = vmatmul.msk.bf16.vlgmr.msra.gmra.mxu1 %vm392_vm1, %v1033_v7 }
  0x1d   : > { %1007 = vmatmul.msk.bf16.vlgmr.msra.gmra.mxu2 %vm392_vm1, %v1041_v8  ;;  %1015 = vmatmul.msk.bf16.vlgmr.msra.gmra.mxu3 %vm392_vm1, %v1049_v9 }
  0x2c   : > { %992 = vmatmul.msk.bf16.gmra.mxu0 %vm392_vm1, %v1026_v10  ;;  %1000 = vmatmul.msk.bf16.gmra.mxu1 %vm392_vm1, %v1034_v11 }
  0x2d   : > { %1008 = vmatmul.msk.bf16.gmra.mxu2 %vm392_vm1, %v1042_v12  ;;  %1016 = vmatmul.msk.bf16.gmra.mxu3 %vm392_vm1, %v1050_v13 }
  0x3c   : > { %993 = vmatmul.msk.bf16.gmra.mxu0 %vm392_vm1, %v1027_v14  ;;  %1001 = vmatmul.msk.bf16.gmra.mxu1 %vm392_vm1, %v1035_v15 }
  0x3d   : > { %1009 = vmatmul.msk.bf16.gmra.mxu2 %vm392_vm1, %v1043_v16  ;;  %1017 = vmatmul.msk.bf16.gmra.mxu3 %vm392_vm1, %v1051_v17 }
  0x4c   : > { %994 = vmatmul.msk.bf16.gmra.mxu0 %vm392_vm1, %v1028_v18  ;;  %1002 = vmatmul.msk.bf16.gmra.mxu1 %vm392_vm1, %v1036_v19 }
  0x4d   : > { %1010 = vmatmul.msk.bf16.gmra.mxu2 %vm392_vm1, %v1044_v20  ;;  %1018 = vmatmul.msk.bf16.gmra.mxu3 %vm392_vm1, %v1052_v21 }
  0x5c   : > { %995 = vmatmul.msk.bf16.gmra.mxu0 %vm392_vm1, %v1029_v22  ;;  %1003 = vmatmul.msk.bf16.gmra.mxu1 %vm392_vm1, %v1037_v23 }
  0x5d   : > { %1011 = vmatmul.msk.bf16.gmra.mxu2 %vm392_vm1, %v1045_v24  ;;  %1019 = vmatmul.msk.bf16.gmra.mxu3 %vm392_vm1, %v1053_v25 }
  0x6c   : > { %996 = vmatmul.msk.bf16.gmra.mxu0 %vm392_vm1, %v1030_v26  ;;  %1004 = vmatmul.msk.bf16.gmra.mxu1 %vm392_vm1, %v1038_v27 }
  0x6d   : > { %1012 = vmatmul.msk.bf16.gmra.mxu2 %vm392_vm1, %v1046_v28  ;;  %1020 = vmatmul.msk.bf16.gmra.mxu3 %vm392_vm1, %v1054_v29 }
  0x7c   : > { %997 = vmatmul.msk.bf16.gmra.mxu0 %vm392_vm1, %v1031_v30  ;;  %1005 = vmatmul.msk.bf16.gmra.mxu1 %vm392_vm1, %v1039_v31 }
  0x7d   : > { %1013 = vmatmul.msk.bf16.gmra.mxu2 %vm392_vm1, %v1047_v32  ;;  %1021 = vmatmul.msk.bf16.gmra.mxu3 %vm392_vm1, %v1055_v33 }
  0x8c   : > { %998 = vmatmul.msk.bf16.gmra.mxu0 %vm392_vm1, %v1032_v34  ;;  %1006 = vmatmul.msk.bf16.gmra.mxu1 %vm392_vm1, %v1040_v35 }
  0x8d   : > { %1014 = vmatmul.msk.bf16.gmra.mxu2 %vm392_vm1, %v1048_v36  ;;  %1022 = vmatmul.msk.bf16.gmra.mxu3 %vm392_vm1, %v1056_v37 }
  0x99   : > { %v502_v38 = vpop.f32.mrf.mxu0  ;;  %v542_v39 = vpop.f32.mrf.mxu1 }
  0x9a   : > { %1076 = vtanh.f32 %v502_v38 }
  0x9b   : > { %1078 = vtanh.f32 %v542_v39 }
  0xa0   : > { %v1077_v40 = vpop.eup %1076  ;;  %v582_v41 = vpop.f32.mrf.mxu2 }
  0xa1   : > { %v622_v42 = vpop.f32.mrf.mxu3  ;;  %v1079_v43 = vpop.eup %1078  ;;  %726 = vst [vmem:[%s1320_s25] sm:$0xff] %v1077_v40  ;;  %1080 = vtanh.f32 %v582_v41 }
  0xa2   : > { %v504_v44 = vpop.f32.mrf.mxu0  ;;  %v544_v45 = vpop.f32.mrf.mxu1  ;;  %742 = vst [vmem:[%s1320_s25 + $0x80] sm:$0xff] %v1079_v43  ;;  %1082 = vtanh.f32 %v622_v42 }
  0xa3   : > { %1084 = vtanh.f32 %v504_v44 }
  0xa4   : > { %1086 = vtanh.f32 %v544_v45 }
  0xa7   : > { %v1081_v46 = vpop.eup %1080 }
  0xa8   : > { %v1083_v47 = vpop.eup %1082  ;;  %758 = vst [vmem:[%s1320_s25 + $0x100] sm:$0xff] %v1081_v46  ;;  %v584_v48 = vpop.f32.mrf.mxu2 }
  0xa9   : > { %v624_v49 = vpop.f32.mrf.mxu3  ;;  %v1085_v50 = vpop.eup %1084  ;;  %774 = vst [vmem:[%s1320_s25 + $0x180] sm:$0xff] %v1083_v47  ;;  %1088 = vtanh.f32 %v584_v48 }
  0xaa   : > { %v507_v51 = vpop.f32.mrf.mxu0  ;;  %v547_v52 = vpop.f32.mrf.mxu1  ;;  %727 = vst [vmem:[%s1320_s25 + $0x8] sm:$0xff] %v1085_v50  ;;  %1090 = vtanh.f32 %v624_v49 }
  0xab   : > { %v1087_v53 = vpop.eup %1086  ;;  %1092 = vtanh.f32 %v507_v51 }
  0xac   : > { %743 = vst [vmem:[%s1320_s25 + $0x88] sm:$0xff] %v1087_v53  ;;  %1094 = vtanh.f32 %v547_v52 }
  0xaf   : > { %v1089_v54 = vpop.eup %1088 }
  0xb0   : > { %v1091_v55 = vpop.eup %1090  ;;  %759 = vst [vmem:[%s1320_s25 + $0x108] sm:$0xff] %v1089_v54  ;;  %v587_v56 = vpop.f32.mrf.mxu2 }
  0xb1   : > { %v627_v57 = vpop.f32.mrf.mxu3  ;;  %v1093_v58 = vpop.eup %1092  ;;  %775 = vst [vmem:[%s1320_s25 + $0x188] sm:$0xff] %v1091_v55  ;;  %1096 = vtanh.f32 %v587_v56 }
  0xb2   : > { %v509_v59 = vpop.f32.mrf.mxu0  ;;  %v549_v60 = vpop.f32.mrf.mxu1  ;;  %728 = vst [vmem:[%s1320_s25 + $0x10] sm:$0xff] %v1093_v58  ;;  %1098 = vtanh.f32 %v627_v57 }
  0xb3   : > { %v1095_v61 = vpop.eup %1094  ;;  %1100 = vtanh.f32 %v509_v59 }
  0xb4   : > { %744 = vst [vmem:[%s1320_s25 + $0x90] sm:$0xff] %v1095_v61  ;;  %1102 = vtanh.f32 %v549_v60 }
  0xb7   : > { %v1097_v62 = vpop.eup %1096 }
  0xb8   : > { %v1099_v63 = vpop.eup %1098  ;;  %760 = vst [vmem:[%s1320_s25 + $0x110] sm:$0xff] %v1097_v62  ;;  %v589_v0 = vpop.f32.mrf.mxu2 }
  0xb9   : > { %v629_v1 = vpop.f32.mrf.mxu3  ;;  %v1101_v2 = vpop.eup %1100  ;;  %776 = vst [vmem:[%s1320_s25 + $0x190] sm:$0xff] %v1099_v63  ;;  %1104 = vtanh.f32 %v589_v0 }
  0xba   : > { %v512_v3 = vpop.f32.mrf.mxu0  ;;  %v552_v4 = vpop.f32.mrf.mxu1  ;;  %729 = vst [vmem:[%s1320_s25 + $0x18] sm:$0xff] %v1101_v2  ;;  %1106 = vtanh.f32 %v629_v1 }
  0xbb   : > { %v1103_v5 = vpop.eup %1102  ;;  %1108 = vtanh.f32 %v512_v3 }
  0xbc   : > { %745 = vst [vmem:[%s1320_s25 + $0x98] sm:$0xff] %v1103_v5  ;;  %1110 = vtanh.f32 %v552_v4 }
  0xbf   : > { %v1105_v6 = vpop.eup %1104 }
  0xc0   : > { %v1107_v7 = vpop.eup %1106  ;;  %761 = vst [vmem:[%s1320_s25 + $0x118] sm:$0xff] %v1105_v6  ;;  %v592_v8 = vpop.f32.mrf.mxu2 }
  0xc1   : > { %v632_v9 = vpop.f32.mrf.mxu3  ;;  %v1109_v10 = vpop.eup %1108  ;;  %777 = vst [vmem:[%s1320_s25 + $0x198] sm:$0xff] %v1107_v7  ;;  %1112 = vtanh.f32 %v592_v8 }
  0xc2   : > { %v514_v11 = vpop.f32.mrf.mxu0  ;;  %v554_v12 = vpop.f32.mrf.mxu1  ;;  %730 = vst [vmem:[%s1320_s25 + $0x20] sm:$0xff] %v1109_v10  ;;  %1114 = vtanh.f32 %v632_v9 }
  0xc3   : > { %v1111_v13 = vpop.eup %1110  ;;  %1116 = vtanh.f32 %v514_v11 }
  0xc4   : > { %746 = vst [vmem:[%s1320_s25 + $0xa0] sm:$0xff] %v1111_v13  ;;  %1118 = vtanh.f32 %v554_v12 }
  0xc7   : > { %v1113_v14 = vpop.eup %1112 }
  0xc8   : > { %v1115_v15 = vpop.eup %1114  ;;  %762 = vst [vmem:[%s1320_s25 + $0x120] sm:$0xff] %v1113_v14  ;;  %v594_v16 = vpop.f32.mrf.mxu2 }
  0xc9   : > { %v634_v17 = vpop.f32.mrf.mxu3  ;;  %v1117_v18 = vpop.eup %1116  ;;  %778 = vst [vmem:[%s1320_s25 + $0x1a0] sm:$0xff] %v1115_v15  ;;  %1120 = vtanh.f32 %v594_v16 }
  0xca   : > { %v517_v19 = vpop.f32.mrf.mxu0  ;;  %v557_v20 = vpop.f32.mrf.mxu1  ;;  %731 = vst [vmem:[%s1320_s25 + $0x28] sm:$0xff] %v1117_v18  ;;  %1122 = vtanh.f32 %v634_v17 }
  0xcb   : > { %v1119_v21 = vpop.eup %1118  ;;  %1124 = vtanh.f32 %v517_v19 }
  0xcc   : > { %747 = vst [vmem:[%s1320_s25 + $0xa8] sm:$0xff] %v1119_v21  ;;  %1126 = vtanh.f32 %v557_v20 }
  0xcf   : > { %v1121_v22 = vpop.eup %1120 }
  0xd0   : > { %v1123_v23 = vpop.eup %1122  ;;  %763 = vst [vmem:[%s1320_s25 + $0x128] sm:$0xff] %v1121_v22  ;;  %v597_v24 = vpop.f32.mrf.mxu2 }
  0xd1   : > { %v637_v25 = vpop.f32.mrf.mxu3  ;;  %v1125_v26 = vpop.eup %1124  ;;  %779 = vst [vmem:[%s1320_s25 + $0x1a8] sm:$0xff] %v1123_v23  ;;  %1128 = vtanh.f32 %v597_v24 }
  0xd2   : > { %v519_v27 = vpop.f32.mrf.mxu0  ;;  %v559_v28 = vpop.f32.mrf.mxu1  ;;  %732 = vst [vmem:[%s1320_s25 + $0x30] sm:$0xff] %v1125_v26  ;;  %1130 = vtanh.f32 %v637_v25 }
  0xd3   : > { %v1127_v29 = vpop.eup %1126  ;;  %1132 = vtanh.f32 %v519_v27 }
  0xd4   : > { %748 = vst [vmem:[%s1320_s25 + $0xb0] sm:$0xff] %v1127_v29  ;;  %1134 = vtanh.f32 %v559_v28 }
  0xd7   : > { %v1129_v30 = vpop.eup %1128 }
  0xd8   : > { %v1131_v31 = vpop.eup %1130  ;;  %764 = vst [vmem:[%s1320_s25 + $0x130] sm:$0xff] %v1129_v30  ;;  %v599_v32 = vpop.f32.mrf.mxu2 }
  0xd9   : > { %v639_v33 = vpop.f32.mrf.mxu3  ;;  %v1133_v34 = vpop.eup %1132  ;;  %780 = vst [vmem:[%s1320_s25 + $0x1b0] sm:$0xff] %v1131_v31  ;;  %1136 = vtanh.f32 %v599_v32 }
  0xda   : > { %v522_v35 = vpop.f32.mrf.mxu0  ;;  %v562_v36 = vpop.f32.mrf.mxu1  ;;  %733 = vst [vmem:[%s1320_s25 + $0x38] sm:$0xff] %v1133_v34  ;;  %1138 = vtanh.f32 %v639_v33 }
  0xdb   : > { %v1135_v37 = vpop.eup %1134  ;;  %1140 = vtanh.f32 %v522_v35 }
  0xdc   : > { %749 = vst [vmem:[%s1320_s25 + $0xb8] sm:$0xff] %v1135_v37  ;;  %1142 = vtanh.f32 %v562_v36 }
  0xdf   : > { %v1137_v38 = vpop.eup %1136 }
  0xe0   : > { %v1139_v39 = vpop.eup %1138  ;;  %765 = vst [vmem:[%s1320_s25 + $0x138] sm:$0xff] %v1137_v38  ;;  %v602_v40 = vpop.f32.mrf.mxu2 }
  0xe1   : > { %v642_v41 = vpop.f32.mrf.mxu3  ;;  %v1141_v42 = vpop.eup %1140  ;;  %781 = vst [vmem:[%s1320_s25 + $0x1b8] sm:$0xff] %v1139_v39  ;;  %1144 = vtanh.f32 %v602_v40 }
  0xe2   : > { %v524_v43 = vpop.f32.mrf.mxu0  ;;  %v564_v44 = vpop.f32.mrf.mxu1  ;;  %734 = vst [vmem:[%s1320_s25 + $0x40] sm:$0xff] %v1141_v42  ;;  %1146 = vtanh.f32 %v642_v41 }
  0xe3   : > { %v1143_v45 = vpop.eup %1142  ;;  %1148 = vtanh.f32 %v524_v43 }
  0xe4   : > { %750 = vst [vmem:[%s1320_s25 + $0xc0] sm:$0xff] %v1143_v45  ;;  %1150 = vtanh.f32 %v564_v44 }
  0xe7   : > { %v1145_v46 = vpop.eup %1144 }
  0xe8   : > { %v1147_v47 = vpop.eup %1146  ;;  %766 = vst [vmem:[%s1320_s25 + $0x140] sm:$0xff] %v1145_v46  ;;  %v604_v48 = vpop.f32.mrf.mxu2 }
  0xe9   : > { %v644_v49 = vpop.f32.mrf.mxu3  ;;  %v1149_v50 = vpop.eup %1148  ;;  %782 = vst [vmem:[%s1320_s25 + $0x1c0] sm:$0xff] %v1147_v47  ;;  %1152 = vtanh.f32 %v604_v48 }
  0xea   : > { %v527_v51 = vpop.f32.mrf.mxu0  ;;  %v567_v52 = vpop.f32.mrf.mxu1  ;;  %735 = vst [vmem:[%s1320_s25 + $0x48] sm:$0xff] %v1149_v50  ;;  %1154 = vtanh.f32 %v644_v49 }
  0xeb   : > { %v1151_v53 = vpop.eup %1150  ;;  %1156 = vtanh.f32 %v527_v51 }
  0xec   : > { %751 = vst [vmem:[%s1320_s25 + $0xc8] sm:$0xff] %v1151_v53  ;;  %1158 = vtanh.f32 %v567_v52 }
  0xef   : > { %v1153_v54 = vpop.eup %1152 }
  0xf0   : > { %v1155_v55 = vpop.eup %1154  ;;  %767 = vst [vmem:[%s1320_s25 + $0x148] sm:$0xff] %v1153_v54  ;;  %v607_v56 = vpop.f32.mrf.mxu2 }
  0xf1   : > { %v647_v57 = vpop.f32.mrf.mxu3  ;;  %v1157_v58 = vpop.eup %1156  ;;  %783 = vst [vmem:[%s1320_s25 + $0x1c8] sm:$0xff] %v1155_v55  ;;  %1160 = vtanh.f32 %v607_v56 }
  0xf2   : > { %v529_v59 = vpop.f32.mrf.mxu0  ;;  %v569_v60 = vpop.f32.mrf.mxu1  ;;  %736 = vst [vmem:[%s1320_s25 + $0x50] sm:$0xff] %v1157_v58  ;;  %1162 = vtanh.f32 %v647_v57 }
  0xf3   : > { %v1159_v61 = vpop.eup %1158  ;;  %1164 = vtanh.f32 %v529_v59 }
  0xf4   : > { %752 = vst [vmem:[%s1320_s25 + $0xd0] sm:$0xff] %v1159_v61  ;;  %1166 = vtanh.f32 %v569_v60 }
  0xf7   : > { %v1161_v62 = vpop.eup %1160 }
  0xf8   : > { %v1163_v63 = vpop.eup %1162  ;;  %768 = vst [vmem:[%s1320_s25 + $0x150] sm:$0xff] %v1161_v62  ;;  %v609_v0 = vpop.f32.mrf.mxu2 }
  0xf9   : > { %v649_v1 = vpop.f32.mrf.mxu3  ;;  %v1165_v2 = vpop.eup %1164  ;;  %784 = vst [vmem:[%s1320_s25 + $0x1d0] sm:$0xff] %v1163_v63  ;;  %1168 = vtanh.f32 %v609_v0 }
  0xfa   : > { %v532_v3 = vpop.f32.mrf.mxu0  ;;  %v572_v4 = vpop.f32.mrf.mxu1  ;;  %737 = vst [vmem:[%s1320_s25 + $0x58] sm:$0xff] %v1165_v2  ;;  %1170 = vtanh.f32 %v649_v1 }
  0xfb   : > { %v1167_v5 = vpop.eup %1166  ;;  %1172 = vtanh.f32 %v532_v3 }
  0xfc   : > { %753 = vst [vmem:[%s1320_s25 + $0xd8] sm:$0xff] %v1167_v5  ;;  %1174 = vtanh.f32 %v572_v4 }
  0xff   : > { %v1169_v6 = vpop.eup %1168 }
 0x100   : > { %v1171_v7 = vpop.eup %1170  ;;  %769 = vst [vmem:[%s1320_s25 + $0x158] sm:$0xff] %v1169_v6  ;;  %v612_v8 = vpop.f32.mrf.mxu2 }
 0x101   : > { %v652_v9 = vpop.f32.mrf.mxu3  ;;  %v1173_v10 = vpop.eup %1172  ;;  %785 = vst [vmem:[%s1320_s25 + $0x1d8] sm:$0xff] %v1171_v7  ;;  %1176 = vtanh.f32 %v612_v8 }
 0x102   : > { %v534_v11 = vpop.f32.mrf.mxu0  ;;  %v574_v12 = vpop.f32.mrf.mxu1  ;;  %738 = vst [vmem:[%s1320_s25 + $0x60] sm:$0xff] %v1173_v10  ;;  %1178 = vtanh.f32 %v652_v9 }
 0x103   : > { %v1175_v13 = vpop.eup %1174  ;;  %1180 = vtanh.f32 %v534_v11 }
 0x104   : > { %754 = vst [vmem:[%s1320_s25 + $0xe0] sm:$0xff] %v1175_v13  ;;  %1182 = vtanh.f32 %v574_v12 }
 0x107   : > { %v1177_v14 = vpop.eup %1176 }
 0x108   : > { %v1179_v15 = vpop.eup %1178  ;;  %770 = vst [vmem:[%s1320_s25 + $0x160] sm:$0xff] %v1177_v14  ;;  %v614_v16 = vpop.f32.mrf.mxu2 }
 0x109   : > { %v654_v17 = vpop.f32.mrf.mxu3  ;;  %v1181_v18 = vpop.eup %1180  ;;  %786 = vst [vmem:[%s1320_s25 + $0x1e0] sm:$0xff] %v1179_v15  ;;  %1184 = vtanh.f32 %v614_v16 }
 0x10a   : > { %v537_v19 = vpop.f32.mrf.mxu0  ;;  %v577_v20 = vpop.f32.mrf.mxu1  ;;  %739 = vst [vmem:[%s1320_s25 + $0x68] sm:$0xff] %v1181_v18  ;;  %1186 = vtanh.f32 %v654_v17 }
 0x10b   : > { %v1183_v21 = vpop.eup %1182  ;;  %1188 = vtanh.f32 %v537_v19 }
 0x10c   : > { %755 = vst [vmem:[%s1320_s25 + $0xe8] sm:$0xff] %v1183_v21  ;;  %1190 = vtanh.f32 %v577_v20 }
 0x10f   : > { %v1185_v22 = vpop.eup %1184 }
 0x110   : > { %v1187_v23 = vpop.eup %1186  ;;  %771 = vst [vmem:[%s1320_s25 + $0x168] sm:$0xff] %v1185_v22  ;;  %v617_v24 = vpop.f32.mrf.mxu2 }
 0x111   : > { %v657_v25 = vpop.f32.mrf.mxu3  ;;  %v1189_v26 = vpop.eup %1188  ;;  %787 = vst [vmem:[%s1320_s25 + $0x1e8] sm:$0xff] %v1187_v23  ;;  %1192 = vtanh.f32 %v617_v24 }
 0x112   : > { %v539_v27 = vpop.f32.mrf.mxu0  ;;  %v579_v28 = vpop.f32.mrf.mxu1  ;;  %740 = vst [vmem:[%s1320_s25 + $0x70] sm:$0xff] %v1189_v26  ;;  %1194 = vtanh.f32 %v657_v25 }
 0x113   : > { %v1191_v29 = vpop.eup %1190  ;;  %1196 = vtanh.f32 %v539_v27 }
 0x114   : > { %756 = vst [vmem:[%s1320_s25 + $0xf0] sm:$0xff] %v1191_v29  ;;  %1198 = vtanh.f32 %v579_v28 }
 0x117   : > { %v1193_v30 = vpop.eup %1192 }
 0x118   : > { %v1195_v31 = vpop.eup %1194  ;;  %772 = vst [vmem:[%s1320_s25 + $0x170] sm:$0xff] %v1193_v30  ;;  %v619_v32 = vpop.f32.mrf.mxu2 }
 0x119   : > { %v659_v33 = vpop.f32.mrf.mxu3  ;;  %v1197_v34 = vpop.eup %1196  ;;  %788 = vst [vmem:[%s1320_s25 + $0x1f0] sm:$0xff] %v1195_v31  ;;  %1200 = vtanh.f32 %v619_v32 }
 0x11a   : > { %v1199_v35 = vpop.eup %1198  ;;  %741 = vst [vmem:[%s1320_s25 + $0x78] sm:$0xff] %v1197_v34  ;;  %1202 = vtanh.f32 %v659_v33 }
 0x11b   : > { %757 = vst [vmem:[%s1320_s25 + $0xf8] sm:$0xff] %v1199_v35 }
 0x11f   : > { %v1201_v36 = vpop.eup %1200 }
 0x120   : > { %v1203_v37 = vpop.eup %1202  ;;  %773 = vst [vmem:[%s1320_s25 + $0x178] sm:$0xff] %v1201_v36 }
 0x121   : > { %789 = vst [vmem:[%s1320_s25 + $0x1f8] sm:$0xff] %v1203_v37 }
 0x122 PF: > { %s12_s9 = sadd.s32 1, %s1210_s9  }
 0x123   : > { %p9_p4 = scmp.ge.s32.totalorder %s12_s9, 66  }
 0x125   :  { %11 = sbr.rel (!%p9_p4) target bundleno = 1 (0x1), region = 58 }

</bundles_post_ra>
